<compile_context>
chip_gen: v6e
topology: v6e:2x2x1
jax: 0.10.0
libtpu: 0.0.40
codegen_flags: <defaults>
</compile_context>

<pallas_src>
import math

import jax
import jax.numpy as jnp
from jax.experimental import pallas as pl
from jax.experimental.pallas import tpu as pltpu

_LANE = 128
_SUBLANE = 8
_VMEM_LIMIT_BYTES = 48 * 1024 * 1024   # fits v7x (64 MiB phys), raised vs 32 MiB default


def _round_up(x, m):
    return ((x + m - 1) // m) * m


# ---------------------------------------------------------------------------
# Fused per-layer kernel: chunked input projection + bidirectional recurrence
# ---------------------------------------------------------------------------
def _make_layer_kernel(TC, HP, mxu_dtype, gate_dtype):
    """gate_dtype=None keeps all elementwise gate math in f32 (required on v5e)."""
    H4 = 4 * HP

    def kernel(len_ref, x_ref, w_in_ref, whh_ref, b_ref,
               y_ref, h_sc, c_sc, gx_sc):
        d = pl.program_id(1)                 # direction: 0 = fwd, 1 = bwd
        s = pl.program_id(2)                 # time-chunk counter
        Tg = pl.num_programs(2)

        @pl.when(s == 0)
        def _():
            h_sc[...] = jnp.zeros_like(h_sc)
            c_sc[...] = jnp.zeros_like(c_sc)

        # ---- hoisted chunk-level input projection (stays in VMEM) -------------
        x = x_ref[...]                       # [TC, BB, Dp] (mxu_dtype)
        TCb, BB, Dp = x.shape
        gx = jnp.dot(x.reshape(TCb * BB, Dp), w_in_ref[...],
                     preferred_element_type=jnp.float32)        # [TC*BB, 4*HP]
        gx_sc[...] = (gx + b_ref[...]).reshape(TCb, BB, H4)

        whh = whh_ref[...]                   # [HP, 4*HP] resident (mxu_dtype)
        lens = len_ref[...]                  # [BB, 1] f32 (padded rows have len 0)

        # actual time-block this chunk covers (reversed traversal for bwd dir)
        t_blk = s + d * (Tg - 1 - 2 * s)

        # fully unrolled over the chunk; bwd dir walks local indices in reverse
        for u in range(TC):
            loc = u + d * (TC - 1 - 2 * u)                       # traced int32
            t = (t_blk * TC + loc).astype(jnp.float32)           # absolute time

            h_old = h_sc[...]                                    # [BB, HP] f32
            c_old = c_sc[...]
            rec = jnp.dot(h_old.astype(mxu_dtype), whh,
                          preferred_element_type=jnp.float32)    # [BB, 4*HP]
            gates = rec + gx_sc[loc]                             # f32
            if gate_dtype is not None:
                gates = gates.astype(gate_dtype)                 # bf16 EUP/VPU path

            i_g = jax.nn.sigmoid(gates[:, 0:HP])
            f_g = jax.nn.sigmoid(gates[:, HP:2 * HP])
            g_g = jnp.tanh(gates[:, 2 * HP:3 * HP])
            o_g = jax.nn.sigmoid(gates[:, 3 * HP:4 * HP])

            # c-state accumulate and h/c scratch stay f32 always
            c_new = (f_g.astype(jnp.float32) * c_old
                     + i_g.astype(jnp.float32) * g_g.astype(jnp.float32))
            h_new = o_g.astype(jnp.float32) * jnp.tanh(c_new)

            m = lens > t                                         # [BB, 1] bool
            c_sc[...] = jnp.where(m, c_new, c_old)
            h_sc[...] = jnp.where(m, h_new, h_old)
            y_ref[loc] = jnp.where(m, h_new, 0.0).astype(y_ref.dtype)

    return kernel


def _lstm_layer(x, lens_col, w_in, whh, bias, *, TC, BB, HP, mxu_dtype, gate_dtype):
    """x: [Tp, Bp, Dp] (mxu_dtype), lens_col: [Bp, 1] f32,
       w_in: [2, Dp, 4*HP], whh: [2, HP, 4*HP], bias: [2, 1, 4*HP]
       -> y: [Tp, Bp, 2*HP] (fwd cols 0:HP, bwd cols HP:2*HP, natural time order)."""
    Tp, Bp, Dp = x.shape
    Tg = Tp // TC
    nb = Bp // BB
    H4 = 4 * HP

    return pl.pallas_call(
        _make_layer_kernel(TC, HP, mxu_dtype, gate_dtype),
        out_shape=jax.ShapeDtypeStruct((Tp, Bp, 2 * HP), mxu_dtype),
        grid=(nb, 2, Tg),
        in_specs=[
            # per-example lengths, resident per batch block
            pl.BlockSpec((BB, 1), lambda b, d, s: (b, 0)),
            # layer-input chunk: fwd dir walks time blocks forward, bwd in reverse
            pl.BlockSpec((TC, BB, Dp),
                         lambda b, d, s: (s + d * (Tg - 1 - 2 * s), b, 0)),
            # direction's input-projection weights / recurrent weights / bias (resident)
            pl.BlockSpec((None, Dp, H4), lambda b, d, s: (d, 0, 0)),
            pl.BlockSpec((None, HP, H4), lambda b, d, s: (d, 0, 0)),
            pl.BlockSpec((None, 1, H4), lambda b, d, s: (d, 0, 0)),
        ],
        out_specs=pl.BlockSpec(
            (TC, BB, HP),
            lambda b, d, s: (s + d * (Tg - 1 - 2 * s), b, d)),   # fwd|bwd column block
        scratch_shapes=[
            pltpu.VMEM((BB, HP), jnp.float32),       # h state
            pltpu.VMEM((BB, HP), jnp.float32),       # c state
            pltpu.VMEM((TC, BB, H4), jnp.float32),   # chunk gates_x (never hits HBM)
        ],
        compiler_params=pltpu.CompilerParams(
            dimension_semantics=("parallel", "parallel", "arbitrary"),
            vmem_limit_bytes=_VMEM_LIMIT_BYTES),
    )(lens_col, x, w_in, whh, bias)


# ---------------------------------------------------------------------------
# Parameters
# ---------------------------------------------------------------------------
def init_lstm_params(key, input_size, hidden_size, num_layers, bidirectional=True):
    """PyTorch-style init: U(-1/sqrt(H), 1/sqrt(H)).  Raw (unpadded) tensors."""
    H = hidden_size
    num_dirs = 2 if bidirectional else 1
    k = 1.0 / math.sqrt(H)
    params = []
    for layer in range(num_layers):
        d_in = input_size if layer == 0 else H * num_dirs
        dirs = []
        for _ in range(num_dirs):
            key, k1, k2, k3, k4 = jax.random.split(key, 5)
            w_ih = jax.random.uniform(k1, (4 * H, d_in), jnp.float32, -k, k)
            w_hh = jax.random.uniform(k2, (4 * H, H), jnp.float32, -k, k)
            b_ih = jax.random.uniform(k3, (4 * H,), jnp.float32, -k, k)
            b_hh = jax.random.uniform(k4, (4 * H,), jnp.float32, -k, k)
            dirs.append(dict(
                wih_t=w_ih.T,                       # [d_in, 4H]
                whh_t=w_hh.T,                       # [H, 4H]
                bias=(b_ih + b_hh)[None, :],        # [1, 4H]
            ))
        params.append(dirs)
    return params


def _pad_gate_cols(w, H, HP):
    """[D, 4H] -> [D, 4*HP]: gate k moved to lane-aligned columns [k*HP, k*HP+H)."""
    out = jnp.zeros((w.shape[0], 4 * HP), w.dtype)
    for g in range(4):
        out = out.at[:, g * HP:g * HP + H].set(w[:, g * H:(g + 1) * H])
    return out


def prepare_kernel_params(params_raw, input_size, hidden_size,
                          mxu_dtype=jnp.float32):
    """One-time (init-time) repack into lane-padded, direction-stacked tensors.
    Padded gate columns / weight rows / bias entries are all exactly zero, which keeps
    padded h columns identically zero through the recurrence."""
    H = hidden_size
    HP = _round_up(H, _LANE)
    Dp0 = _round_up(input_size, _LANE)
    prepped = []
    for layer, dirs in enumerate(params_raw):
        Dp = Dp0 if layer == 0 else 2 * HP
        w_in = jnp.zeros((2, Dp, 4 * HP), jnp.float32)
        whh = jnp.zeros((2, HP, 4 * HP), jnp.float32)
        bias = jnp.zeros((2, 1, 4 * HP), jnp.float32)
        for d, p in enumerate(dirs):
            wih_g = _pad_gate_cols(p["wih_t"], H, HP)           # [d_in, 4*HP]
            if layer == 0:
                w_in = w_in.at[d, :input_size, :].set(wih_g)
            else:
                # layer input is [fwd h (cols 0:HP) | bwd h (cols HP:2HP)]
                w_in = w_in.at[d, 0:H, :].set(wih_g[0:H])
                w_in = w_in.at[d, HP:HP + H, :].set(wih_g[H:2 * H])
            whh = whh.at[d, 0:H, :].set(_pad_gate_cols(p["whh_t"], H, HP))
            bias = bias.at[d, 0, :].set(_pad_gate_cols(p["bias"], H, HP)[0])
        prepped.append(dict(w_in=w_in.astype(mxu_dtype),
                            whh=whh.astype(mxu_dtype),
                            bias=bias.astype(jnp.float32)))
    return prepped, HP, Dp0


# ---------------------------------------------------------------------------
# Forward pass (== LstmEncoder.forward, eval semantics)
# ---------------------------------------------------------------------------
def lstm_encoder_forward(x, mask, kparams, hidden_size, HP, Dp0, *,
                         mxu_dtype=jnp.float32, gate_dtype=None,
                         time_chunk=16, batch_block=128):
    """x: [B, T, input_size] f32, mask: [B, T] {0,1} -> [B, T, 2*hidden_size] f32.
    Padded positions are exactly zero (pad_packed_sequence + restoration)."""
    B, T, Din = x.shape
    H = hidden_size

    TC = max(1, min(time_chunk, T))
    Tp = _round_up(T, TC)
    Bp = _round_up(B, _SUBLANE)
    BB = Bp if Bp <= batch_block else batch_block
    Bp = _round_up(Bp, BB)

    lens = mask.astype(jnp.float32).sum(-1)                     # [B]
    lens_col = jnp.pad(lens, (0, Bp - B))[:, None]              # [Bp, 1], pads -> len 0

    x_p = jnp.pad(x.astype(jnp.float32),
                  ((0, Bp - B), (0, Tp - T), (0, Dp0 - Din)))   # lane-align layer-0 Din
    y = jnp.transpose(x_p, (1, 0, 2)).astype(mxu_dtype)         # [Tp, Bp, Dp0] time-major

    for lp in kparams:
        y = _lstm_layer(y, lens_col, lp["w_in"], lp["whh"], lp["bias"],
                        TC=TC, BB=BB, HP=HP,
                        mxu_dtype=mxu_dtype, gate_dtype=gate_dtype)
        # TODO(synk): nn.LSTM inter-layer dropout (p=0.5, training only) not applied.

    # y: [Tp, Bp, 2*HP] with fwd in cols 0:HP, bwd in cols HP:2*HP (natural time order)
    out = jnp.concatenate([y[:, :, 0:H], y[:, :, HP:HP + H]], axis=-1)
    out = jnp.transpose(out, (1, 0, 2)).astype(jnp.float32)     # [Bp, Tp, 2H]
    return out[:B, :T]


# ---------------- pure-JAX reference (same math, plain loops) ----------------
def _ref_dir(x_bm, lengths, wih_t, whh_t, bias, reverse):
    B, T, _ = x_bm.shape
    H = whh_t.shape[0]
    h = jnp.zeros((B, H), jnp.float32)
    c = jnp.zeros((B, H), jnp.float32)
    ys = [None] * T
    order = range(T - 1, -1, -1) if reverse else range(T)
    for t in order:
        gates = x_bm[:, t] @ wih_t + h @ whh_t + bias
        i = jax.nn.sigmoid(gates[:, :H])
        f = jax.nn.sigmoid(gates[:, H:2 * H])
        g = jnp.tanh(gates[:, 2 * H:3 * H])
        o = jax.nn.sigmoid(gates[:, 3 * H:])
        c_new = f * c + i * g
        h_new = o * jnp.tanh(c_new)
        m = (t < lengths)[:, None]
        c = jnp.where(m, c_new, c)
        h = jnp.where(m, h_new, h)
        ys[t] = jnp.where(m, h_new, 0.0)
    return jnp.stack(ys, axis=1)


def _ref_forward(x, mask, params):
    lengths = mask.astype(jnp.int32).sum(-1)
    layer_in = x.astype(jnp.float32)
    for dirs in params:
        f = _ref_dir(layer_in, lengths, dirs[0]["wih_t"], dirs[0]["whh_t"],
                     dirs[0]["bias"], False)
        b = _ref_dir(layer_in, lengths, dirs[1]["wih_t"], dirs[1]["whh_t"],
                     dirs[1]["bias"], True)
        layer_in = jnp.concatenate([f, b], axis=-1)
    return layer_in


if __name__ == "__main__":
    B, T, INPUT, HIDDEN, LAYERS = 4, 8, 16, 32, 2

    key = jax.random.PRNGKey(0)
    k_x, k_p = jax.random.split(key)

    x = jax.random.normal(k_x, (B, T, INPUT), jnp.float32)
    lengths = jnp.array([8, 5, 3, 8], jnp.int32)            # max == T
    mask = (jnp.arange(T)[None, :] < lengths[:, None]).astype(jnp.float32)

    params_raw = init_lstm_params(k_p, INPUT, HIDDEN, LAYERS, bidirectional=True)

    max_len = int(lengths.max())
    ref = _ref_forward(x, mask, params_raw)[:, :max_len, :]

    # --- f32 MXU path: tight correctness check (weights repacked once) -----------
    kp32, HP, Dp0 = prepare_kernel_params(params_raw, INPUT, HIDDEN, jnp.float32)
    out = lstm_encoder_forward(x, mask, kp32, HIDDEN, HP, Dp0,
                               mxu_dtype=jnp.float32, gate_dtype=None,
                               time_chunk=16)
    out = jax.block_until_ready(out)[:, :max_len, :]
    assert out.shape == (B, max_len, 2 * HIDDEN), out.shape
    assert jnp.allclose(out, ref, atol=2e-4, rtol=2e-4), float(jnp.abs(out - ref).max())
    assert float(jnp.abs(out * (1.0 - mask[:, :max_len, None])).max()) == 0.0

    # --- bf16 path (v6e/v7x: bf16 MXU operands + bf16 gate math; c-state f32) ----
    kp_bf, HP, Dp0 = prepare_kernel_params(params_raw, INPUT, HIDDEN, jnp.bfloat16)
    out_bf = lstm_encoder_forward(x, mask, kp_bf, HIDDEN, HP, Dp0,
                                  mxu_dtype=jnp.bfloat16, gate_dtype=jnp.bfloat16,
                                  time_chunk=16)
    out_bf = jax.block_until_ready(out_bf)[:, :max_len, :]
    assert out_bf.shape == (B, max_len, 2 * HIDDEN), out_bf.shape
    assert bool(jnp.all(jnp.isfinite(out_bf)))
    assert float(jnp.abs(out_bf - ref).max()) < 0.3
    assert float(jnp.abs(out_bf * (1.0 - mask[:, :max_len, None])).max()) == 0.0

    print("KERNEL_OK")
</pallas_src>

<mosaic_0001>
module attributes {stable_mosaic.version = 11 : i64} {
  func.func @kernel(%arg0: i32, %arg1: i32, %arg2: i32, %arg3: memref<8x1xf32, #tpu.memory_space<vmem>>, %arg4: memref<8x8x128xf32, #tpu.memory_space<vmem>>, %arg5: memref<1x128x512xf32, #tpu.memory_space<vmem>>, %arg6: memref<1x128x512xf32, #tpu.memory_space<vmem>>, %arg7: memref<1x1x512xf32, #tpu.memory_space<vmem>>, %arg8: memref<8x8x128xf32, #tpu.memory_space<vmem>>, %arg9: memref<8x128xf32, #tpu.memory_space<vmem>>, %arg10: memref<8x128xf32, #tpu.memory_space<vmem>>, %arg11: memref<8x8x512xf32, #tpu.memory_space<vmem>>) attributes {dimension_semantics = [#tpu.dimension_semantics<parallel>, #tpu.dimension_semantics<parallel>, #tpu.dimension_semantics<arbitrary>], iteration_bounds = array<i64: 1, 2, 1>, scalar_prefetch = 0 : i64, scratch_operands = 3 : i64, tpu.core_type = #tpu.core_type<tc>, window_params = [{transform_indices = @transform_0, window_bounds = array<i64: 8, 1>}, {transform_indices = @transform_1, window_bounds = array<i64: 8, 8, 128>}, {transform_indices = @transform_2, window_bounds = array<i64: 1, 128, 512>}, {transform_indices = @transform_3, window_bounds = array<i64: 1, 128, 512>}, {transform_indices = @transform_4, window_bounds = array<i64: 1, 1, 512>}, {transform_indices = @transform_5, window_bounds = array<i64: 8, 8, 128>}]} {
    %c0_i32 = arith.constant 0 : i32
    %0 = arith.cmpi eq, %arg2, %c0_i32 : i32
    %1 = arith.extui %0 : i1 to i32
    %c0_i32_0 = arith.constant 0 : i32
    %2 = arith.cmpi ne, %1, %c0_i32_0 : i32
    scf.if %2 {
      %cst_167 = arith.constant 0.000000e+00 : f32
      %461 = vector.broadcast %cst_167 : f32 to vector<8x128xf32>
      %c0_168 = arith.constant 0 : index
      %c0_169 = arith.constant 0 : index
      %462 = vector.load %arg9[%c0_168, %c0_169] : memref<8x128xf32, #tpu.memory_space<vmem>>, vector<8x128xf32>
      tpu.vector_store %arg9[%c0_168, %c0_169], %461 {strides = array<i32>} : memref<8x128xf32, #tpu.memory_space<vmem>>, vector<8x128xf32>,
      %cst_170 = arith.constant 0.000000e+00 : f32
      %463 = vector.broadcast %cst_170 : f32 to vector<8x128xf32>
      %c0_171 = arith.constant 0 : index
      %c0_172 = arith.constant 0 : index
      %464 = vector.load %arg10[%c0_171, %c0_172] : memref<8x128xf32, #tpu.memory_space<vmem>>, vector<8x128xf32>
      tpu.vector_store %arg10[%c0_171, %c0_172], %463 {strides = array<i32>} : memref<8x128xf32, #tpu.memory_space<vmem>>, vector<8x128xf32>,
    } else {
    }
    %c0 = arith.constant 0 : index
    %c0_1 = arith.constant 0 : index
    %c0_2 = arith.constant 0 : index
    %3 = vector.load %arg4[%c0, %c0_1, %c0_2] : memref<8x8x128xf32, #tpu.memory_space<vmem>>, vector<8x8x128xf32>
    %4 = vector.shape_cast %3 : vector<8x8x128xf32> to vector<64x128xf32>
    %c0_3 = arith.constant 0 : index
    %c0_4 = arith.constant 0 : index
    %c0_5 = arith.constant 0 : index
    %5 = vector.load %arg5[%c0_3, %c0_4, %c0_5] : memref<1x128x512xf32, #tpu.memory_space<vmem>>, vector<1x128x512xf32>
    %6 = vector.shape_cast %5 : vector<1x128x512xf32> to vector<128x512xf32>
    %cst = arith.constant dense<0.000000e+00> : vector<64x512xf32>
    %7 = tpu.matmul %4, %6, %cst {dimension_numbers = #tpu.dot_dimension_numbers<[1], [0], [0], [1], [0, 0, 1, 1], [], []>} : vector<64x128xf32>, vector<128x512xf32>, vector<64x512xf32> -> vector<64x512xf32>
    %c0_6 = arith.constant 0 : index
    %c0_7 = arith.constant 0 : index
    %c0_8 = arith.constant 0 : index
    %8 = vector.load %arg7[%c0_6, %c0_7, %c0_8] : memref<1x1x512xf32, #tpu.memory_space<vmem>>, vector<1x1x512xf32>
    %9 = vector.shape_cast %8 : vector<1x1x512xf32> to vector<1x512xf32>
    %10 = vector.broadcast %9 : vector<1x512xf32> to vector<64x512xf32>
    %11 = arith.addf %7, %10 : vector<64x512xf32>
    %12 = vector.shape_cast %11 : vector<64x512xf32> to vector<8x8x512xf32>
    %c0_9 = arith.constant 0 : index
    %c0_10 = arith.constant 0 : index
    %c0_11 = arith.constant 0 : index
    %13 = vector.load %arg11[%c0_9, %c0_10, %c0_11] : memref<8x8x512xf32, #tpu.memory_space<vmem>>, vector<8x8x512xf32>
    tpu.vector_store %arg11[%c0_9, %c0_10, %c0_11], %12 {strides = array<i32>} : memref<8x8x512xf32, #tpu.memory_space<vmem>>, vector<8x8x512xf32>,
    %c0_12 = arith.constant 0 : index
    %c0_13 = arith.constant 0 : index
    %c0_14 = arith.constant 0 : index
    %14 = vector.load %arg6[%c0_12, %c0_13, %c0_14] : memref<1x128x512xf32, #tpu.memory_space<vmem>>, vector<1x128x512xf32>
    %15 = vector.shape_cast %14 : vector<1x128x512xf32> to vector<128x512xf32>
    %c0_15 = arith.constant 0 : index
    %c0_16 = arith.constant 0 : index
    %16 = vector.load %arg3[%c0_15, %c0_16] : memref<8x1xf32, #tpu.memory_space<vmem>>, vector<8x1xf32>
    %c2_i32 = arith.constant 2 : i32
    %17 = arith.muli %c2_i32, %arg2 : i32
    %c0_i32_17 = arith.constant 0 : i32
    %18 = arith.subi %c0_i32_17, %17 : i32
    %19 = arith.muli %arg1, %18 : i32
    %20 = arith.addi %arg2, %19 : i32
    %c7_i32 = arith.constant 7 : i32
    %21 = arith.muli %arg1, %c7_i32 : i32
    %c0_i32_18 = arith.constant 0 : i32
    %22 = arith.addi %c0_i32_18, %21 : i32
    %c8_i32 = arith.constant 8 : i32
    %23 = arith.muli %20, %c8_i32 : i32
    %24 = arith.addi %23, %22 : i32
    %25 = arith.sitofp %24 : i32 to f32
    %c0_19 = arith.constant 0 : index
    %c0_20 = arith.constant 0 : index
    %26 = vector.load %arg9[%c0_19, %c0_20] : memref<8x128xf32, #tpu.memory_space<vmem>>, vector<8x128xf32>
    %c0_21 = arith.constant 0 : index
    %c0_22 = arith.constant 0 : index
    %27 = vector.load %arg10[%c0_21, %c0_22] : memref<8x128xf32, #tpu.memory_space<vmem>>, vector<8x128xf32>
    %cst_23 = arith.constant dense<0.000000e+00> : vector<8x512xf32>
    %28 = tpu.matmul %26, %15, %cst_23 {dimension_numbers = #tpu.dot_dimension_numbers<[1], [0], [0], [1], [0, 0, 1, 1], [], []>} : vector<8x128xf32>, vector<128x512xf32>, vector<8x512xf32> -> vector<8x512xf32>
    %29 = arith.index_cast %22 : i32 to index
    %c0_24 = arith.constant 0 : index
    %c0_25 = arith.constant 0 : index
    %30 = vector.load %arg11[%29, %c0_24, %c0_25] : memref<8x8x512xf32, #tpu.memory_space<vmem>>, vector<1x8x512xf32>
    %31 = vector.shape_cast %30 : vector<1x8x512xf32> to vector<8x512xf32>
    %32 = arith.addf %28, %31 : vector<8x512xf32>
    %33 = vector.extract_strided_slice %32 {offsets = [0, 0], sizes = [8, 128], strides = [1, 1]} : vector<8x512xf32> to vector<8x128xf32>
    %34 = arith.negf %33 : vector<8x128xf32>
    %35 = math.exp %34 : vector<8x128xf32>
    %cst_26 = arith.constant 1.000000e+00 : f32
    %36 = vector.broadcast %cst_26 : f32 to vector<8x128xf32>
    %37 = arith.addf %36, %35 : vector<8x128xf32>
    %38 = arith.divf %36, %37 : vector<8x128xf32>
    %39 = vector.extract_strided_slice %32 {offsets = [0, 128], sizes = [8, 128], strides = [1, 1]} : vector<8x512xf32> to vector<8x128xf32>
    %40 = arith.negf %39 : vector<8x128xf32>
    %41 = math.exp %40 : vector<8x128xf32>
    %cst_27 = arith.constant 1.000000e+00 : f32
    %42 = vector.broadcast %cst_27 : f32 to vector<8x128xf32>
    %43 = arith.addf %42, %41 : vector<8x128xf32>
    %44 = arith.divf %42, %43 : vector<8x128xf32>
    %45 = vector.extract_strided_slice %32 {offsets = [0, 256], sizes = [8, 128], strides = [1, 1]} : vector<8x512xf32> to vector<8x128xf32>
    %46 = math.tanh %45 : vector<8x128xf32>
    %47 = vector.extract_strided_slice %32 {offsets = [0, 384], sizes = [8, 128], strides = [1, 1]} : vector<8x512xf32> to vector<8x128xf32>
    %48 = arith.negf %47 : vector<8x128xf32>
    %49 = math.exp %48 : vector<8x128xf32>
    %cst_28 = arith.constant 1.000000e+00 : f32
    %50 = vector.broadcast %cst_28 : f32 to vector<8x128xf32>
    %51 = arith.addf %50, %49 : vector<8x128xf32>
    %52 = arith.divf %50, %51 : vector<8x128xf32>
    %53 = arith.mulf %44, %27 : vector<8x128xf32>
    %54 = arith.mulf %38, %46 : vector<8x128xf32>
    %55 = arith.addf %53, %54 : vector<8x128xf32>
    %56 = math.tanh %55 : vector<8x128xf32>
    %57 = arith.mulf %52, %56 : vector<8x128xf32>
    %58 = vector.broadcast %25 : f32 to vector<8x1xf32>
    %59 = arith.cmpf ogt, %16, %58 : vector<8x1xf32>
    %60 = vector.shape_cast %59 : vector<8x1xi1> to vector<8x1xi1>
    %61 = vector.broadcast %60 : vector<8x1xi1> to vector<8x128xi1>
    %62 = arith.select %61, %55, %27 : vector<8x128xi1>, vector<8x128xf32>
    %c0_29 = arith.constant 0 : index
    %c0_30 = arith.constant 0 : index
    %63 = vector.load %arg10[%c0_29, %c0_30] : memref<8x128xf32, #tpu.memory_space<vmem>>, vector<8x128xf32>
    tpu.vector_store %arg10[%c0_29, %c0_30], %62 {strides = array<i32>} : memref<8x128xf32, #tpu.memory_space<vmem>>, vector<8x128xf32>,
    %64 = vector.shape_cast %59 : vector<8x1xi1> to vector<8x1xi1>
    %65 = vector.broadcast %64 : vector<8x1xi1> to vector<8x128xi1>
    %66 = arith.select %65, %57, %26 : vector<8x128xi1>, vector<8x128xf32>
    %c0_31 = arith.constant 0 : index
    %c0_32 = arith.constant 0 : index
    %67 = vector.load %arg9[%c0_31, %c0_32] : memref<8x128xf32, #tpu.memory_space<vmem>>, vector<8x128xf32>
    tpu.vector_store %arg9[%c0_31, %c0_32], %66 {strides = array<i32>} : memref<8x128xf32, #tpu.memory_space<vmem>>, vector<8x128xf32>,
    %cst_33 = arith.constant 0.000000e+00 : f32
    %68 = vector.shape_cast %59 : vector<8x1xi1> to vector<8x1xi1>
    %69 = vector.broadcast %68 : vector<8x1xi1> to vector<8x128xi1>
    %70 = vector.broadcast %cst_33 : f32 to vector<8x128xf32>
    %71 = arith.select %69, %57, %70 : vector<8x128xi1>, vector<8x128xf32>
    %72 = arith.index_cast %22 : i32 to index
    %c0_34 = arith.constant 0 : index
    %c0_35 = arith.constant 0 : index
    %73 = vector.load %arg8[%72, %c0_34, %c0_35] : memref<8x8x128xf32, #tpu.memory_space<vmem>>, vector<1x8x128xf32>
    %74 = vector.shape_cast %73 : vector<1x8x128xf32> to vector<8x128xf32>
    %75 = vector.shape_cast %71 : vector<8x128xf32> to vector<1x8x128xf32>
    tpu.vector_store %arg8[%72, %c0_34, %c0_35], %75 {strides = array<i32>} : memref<8x8x128xf32, #tpu.memory_space<vmem>>, vector<1x8x128xf32>,
    %c5_i32 = arith.constant 5 : i32
    %76 = arith.muli %arg1, %c5_i32 : i32
    %c1_i32 = arith.constant 1 : i32
    %77 = arith.addi %c1_i32, %76 : i32
    %c8_i32_36 = arith.constant 8 : i32
    %78 = arith.muli %20, %c8_i32_36 : i32
    %79 = arith.addi %78, %77 : i32
    %80 = arith.sitofp %79 : i32 to f32
    %c0_37 = arith.constant 0 : index
    %c0_38 = arith.constant 0 : index
    %81 = vector.load %arg9[%c0_37, %c0_38] : memref<8x128xf32, #tpu.memory_space<vmem>>, vector<8x128xf32>
    %c0_39 = arith.constant 0 : index
    %c0_40 = arith.constant 0 : index
    %82 = vector.load %arg10[%c0_39, %c0_40] : memref<8x128xf32, #tpu.memory_space<vmem>>, vector<8x128xf32>
    %cst_41 = arith.constant dense<0.000000e+00> : vector<8x512xf32>
    %83 = tpu.matmul %81, %15, %cst_41 {dimension_numbers = #tpu.dot_dimension_numbers<[1], [0], [0], [1], [0, 0, 1, 1], [], []>} : vector<8x128xf32>, vector<128x512xf32>, vector<8x512xf32> -> vector<8x512xf32>
    %84 = arith.index_cast %77 : i32 to index
    %c0_42 = arith.constant 0 : index
    %c0_43 = arith.constant 0 : index
    %85 = vector.load %arg11[%84, %c0_42, %c0_43] : memref<8x8x512xf32, #tpu.memory_space<vmem>>, vector<1x8x512xf32>
    %86 = vector.shape_cast %85 : vector<1x8x512xf32> to vector<8x512xf32>
    %87 = arith.addf %83, %86 : vector<8x512xf32>
    %88 = vector.extract_strided_slice %87 {offsets = [0, 0], sizes = [8, 128], strides = [1, 1]} : vector<8x512xf32> to vector<8x128xf32>
    %89 = arith.negf %88 : vector<8x128xf32>
    %90 = math.exp %89 : vector<8x128xf32>
    %cst_44 = arith.constant 1.000000e+00 : f32
    %91 = vector.broadcast %cst_44 : f32 to vector<8x128xf32>
    %92 = arith.addf %91, %90 : vector<8x128xf32>
    %93 = arith.divf %91, %92 : vector<8x128xf32>
    %94 = vector.extract_strided_slice %87 {offsets = [0, 128], sizes = [8, 128], strides = [1, 1]} : vector<8x512xf32> to vector<8x128xf32>
    %95 = arith.negf %94 : vector<8x128xf32>
    %96 = math.exp %95 : vector<8x128xf32>
    %cst_45 = arith.constant 1.000000e+00 : f32
    %97 = vector.broadcast %cst_45 : f32 to vector<8x128xf32>
    %98 = arith.addf %97, %96 : vector<8x128xf32>
    %99 = arith.divf %97, %98 : vector<8x128xf32>
    %100 = vector.extract_strided_slice %87 {offsets = [0, 256], sizes = [8, 128], strides = [1, 1]} : vector<8x512xf32> to vector<8x128xf32>
    %101 = math.tanh %100 : vector<8x128xf32>
    %102 = vector.extract_strided_slice %87 {offsets = [0, 384], sizes = [8, 128], strides = [1, 1]} : vector<8x512xf32> to vector<8x128xf32>
    %103 = arith.negf %102 : vector<8x128xf32>
    %104 = math.exp %103 : vector<8x128xf32>
    %cst_46 = arith.constant 1.000000e+00 : f32
    %105 = vector.broadcast %cst_46 : f32 to vector<8x128xf32>
    %106 = arith.addf %105, %104 : vector<8x128xf32>
    %107 = arith.divf %105, %106 : vector<8x128xf32>
    %108 = arith.mulf %99, %82 : vector<8x128xf32>
    %109 = arith.mulf %93, %101 : vector<8x128xf32>
    %110 = arith.addf %108, %109 : vector<8x128xf32>
    %111 = math.tanh %110 : vector<8x128xf32>
    %112 = arith.mulf %107, %111 : vector<8x128xf32>
    %113 = vector.broadcast %80 : f32 to vector<8x1xf32>
    %114 = arith.cmpf ogt, %16, %113 : vector<8x1xf32>
    %115 = vector.shape_cast %114 : vector<8x1xi1> to vector<8x1xi1>
    %116 = vector.broadcast %115 : vector<8x1xi1> to vector<8x128xi1>
    %117 = arith.select %116, %110, %82 : vector<8x128xi1>, vector<8x128xf32>
    %c0_47 = arith.constant 0 : index
    %c0_48 = arith.constant 0 : index
    %118 = vector.load %arg10[%c0_47, %c0_48] : memref<8x128xf32, #tpu.memory_space<vmem>>, vector<8x128xf32>
    tpu.vector_store %arg10[%c0_47, %c0_48], %117 {strides = array<i32>} : memref<8x128xf32, #tpu.memory_space<vmem>>, vector<8x128xf32>,
    %119 = vector.shape_cast %114 : vector<8x1xi1> to vector<8x1xi1>
    %120 = vector.broadcast %119 : vector<8x1xi1> to vector<8x128xi1>
    %121 = arith.select %120, %112, %81 : vector<8x128xi1>, vector<8x128xf32>
    %c0_49 = arith.constant 0 : index
    %c0_50 = arith.constant 0 : index
    %122 = vector.load %arg9[%c0_49, %c0_50] : memref<8x128xf32, #tpu.memory_space<vmem>>, vector<8x128xf32>
    tpu.vector_store %arg9[%c0_49, %c0_50], %121 {strides = array<i32>} : memref<8x128xf32, #tpu.memory_space<vmem>>, vector<8x128xf32>,
    %cst_51 = arith.constant 0.000000e+00 : f32
    %123 = vector.shape_cast %114 : vector<8x1xi1> to vector<8x1xi1>
    %124 = vector.broadcast %123 : vector<8x1xi1> to vector<8x128xi1>
    %125 = vector.broadcast %cst_51 : f32 to vector<8x128xf32>
    %126 = arith.select %124, %112, %125 : vector<8x128xi1>, vector<8x128xf32>
    %127 = arith.index_cast %77 : i32 to index
    %c0_52 = arith.constant 0 : index
    %c0_53 = arith.constant 0 : index
    %128 = vector.load %arg8[%127, %c0_52, %c0_53] : memref<8x8x128xf32, #tpu.memory_space<vmem>>, vector<1x8x128xf32>
    %129 = vector.shape_cast %128 : vector<1x8x128xf32> to vector<8x128xf32>
    %130 = vector.shape_cast %126 : vector<8x128xf32> to vector<1x8x128xf32>
    tpu.vector_store %arg8[%127, %c0_52, %c0_53], %130 {strides = array<i32>} : memref<8x8x128xf32, #tpu.memory_space<vmem>>, vector<1x8x128xf32>,
    %c3_i32 = arith.constant 3 : i32
    %131 = arith.muli %arg1, %c3_i32 : i32
    %c2_i32_54 = arith.constant 2 : i32
    %132 = arith.addi %c2_i32_54, %131 : i32
    %c8_i32_55 = arith.constant 8 : i32
    %133 = arith.muli %20, %c8_i32_55 : i32
    %134 = arith.addi %133, %132 : i32
    %135 = arith.sitofp %134 : i32 to f32
    %c0_56 = arith.constant 0 : index
    %c0_57 = arith.constant 0 : index
    %136 = vector.load %arg9[%c0_56, %c0_57] : memref<8x128xf32, #tpu.memory_space<vmem>>, vector<8x128xf32>
    %c0_58 = arith.constant 0 : index
    %c0_59 = arith.constant 0 : index
    %137 = vector.load %arg10[%c0_58, %c0_59] : memref<8x128xf32, #tpu.memory_space<vmem>>, vector<8x128xf32>
    %cst_60 = arith.constant dense<0.000000e+00> : vector<8x512xf32>
    %138 = tpu.matmul %136, %15, %cst_60 {dimension_numbers = #tpu.dot_dimension_numbers<[1], [0], [0], [1], [0, 0, 1, 1], [], []>} : vector<8x128xf32>, vector<128x512xf32>, vector<8x512xf32> -> vector<8x512xf32>
    %139 = arith.index_cast %132 : i32 to index
    %c0_61 = arith.constant 0 : index
    %c0_62 = arith.constant 0 : index
    %140 = vector.load %arg11[%139, %c0_61, %c0_62] : memref<8x8x512xf32, #tpu.memory_space<vmem>>, vector<1x8x512xf32>
    %141 = vector.shape_cast %140 : vector<1x8x512xf32> to vector<8x512xf32>
    %142 = arith.addf %138, %141 : vector<8x512xf32>
    %143 = vector.extract_strided_slice %142 {offsets = [0, 0], sizes = [8, 128], strides = [1, 1]} : vector<8x512xf32> to vector<8x128xf32>
    %144 = arith.negf %143 : vector<8x128xf32>
    %145 = math.exp %144 : vector<8x128xf32>
    %cst_63 = arith.constant 1.000000e+00 : f32
    %146 = vector.broadcast %cst_63 : f32 to vector<8x128xf32>
    %147 = arith.addf %146, %145 : vector<8x128xf32>
    %148 = arith.divf %146, %147 : vector<8x128xf32>
    %149 = vector.extract_strided_slice %142 {offsets = [0, 128], sizes = [8, 128], strides = [1, 1]} : vector<8x512xf32> to vector<8x128xf32>
    %150 = arith.negf %149 : vector<8x128xf32>
    %151 = math.exp %150 : vector<8x128xf32>
    %cst_64 = arith.constant 1.000000e+00 : f32
    %152 = vector.broadcast %cst_64 : f32 to vector<8x128xf32>
    %153 = arith.addf %152, %151 : vector<8x128xf32>
    %154 = arith.divf %152, %153 : vector<8x128xf32>
    %155 = vector.extract_strided_slice %142 {offsets = [0, 256], sizes = [8, 128], strides = [1, 1]} : vector<8x512xf32> to vector<8x128xf32>
    %156 = math.tanh %155 : vector<8x128xf32>
    %157 = vector.extract_strided_slice %142 {offsets = [0, 384], sizes = [8, 128], strides = [1, 1]} : vector<8x512xf32> to vector<8x128xf32>
    %158 = arith.negf %157 : vector<8x128xf32>
    %159 = math.exp %158 : vector<8x128xf32>
    %cst_65 = arith.constant 1.000000e+00 : f32
    %160 = vector.broadcast %cst_65 : f32 to vector<8x128xf32>
    %161 = arith.addf %160, %159 : vector<8x128xf32>
    %162 = arith.divf %160, %161 : vector<8x128xf32>
    %163 = arith.mulf %154, %137 : vector<8x128xf32>
    %164 = arith.mulf %148, %156 : vector<8x128xf32>
    %165 = arith.addf %163, %164 : vector<8x128xf32>
    %166 = math.tanh %165 : vector<8x128xf32>
    %167 = arith.mulf %162, %166 : vector<8x128xf32>
    %168 = vector.broadcast %135 : f32 to vector<8x1xf32>
    %169 = arith.cmpf ogt, %16, %168 : vector<8x1xf32>
    %170 = vector.shape_cast %169 : vector<8x1xi1> to vector<8x1xi1>
    %171 = vector.broadcast %170 : vector<8x1xi1> to vector<8x128xi1>
    %172 = arith.select %171, %165, %137 : vector<8x128xi1>, vector<8x128xf32>
    %c0_66 = arith.constant 0 : index
    %c0_67 = arith.constant 0 : index
    %173 = vector.load %arg10[%c0_66, %c0_67] : memref<8x128xf32, #tpu.memory_space<vmem>>, vector<8x128xf32>
    tpu.vector_store %arg10[%c0_66, %c0_67], %172 {strides = array<i32>} : memref<8x128xf32, #tpu.memory_space<vmem>>, vector<8x128xf32>,
    %174 = vector.shape_cast %169 : vector<8x1xi1> to vector<8x1xi1>
    %175 = vector.broadcast %174 : vector<8x1xi1> to vector<8x128xi1>
    %176 = arith.select %175, %167, %136 : vector<8x128xi1>, vector<8x128xf32>
    %c0_68 = arith.constant 0 : index
    %c0_69 = arith.constant 0 : index
    %177 = vector.load %arg9[%c0_68, %c0_69] : memref<8x128xf32, #tpu.memory_space<vmem>>, vector<8x128xf32>
    tpu.vector_store %arg9[%c0_68, %c0_69], %176 {strides = array<i32>} : memref<8x128xf32, #tpu.memory_space<vmem>>, vector<8x128xf32>,
    %cst_70 = arith.constant 0.000000e+00 : f32
    %178 = vector.shape_cast %169 : vector<8x1xi1> to vector<8x1xi1>
    %179 = vector.broadcast %178 : vector<8x1xi1> to vector<8x128xi1>
    %180 = vector.broadcast %cst_70 : f32 to vector<8x128xf32>
    %181 = arith.select %179, %167, %180 : vector<8x128xi1>, vector<8x128xf32>
    %182 = arith.index_cast %132 : i32 to index
    %c0_71 = arith.constant 0 : index
    %c0_72 = arith.constant 0 : index
    %183 = vector.load %arg8[%182, %c0_71, %c0_72] : memref<8x8x128xf32, #tpu.memory_space<vmem>>, vector<1x8x128xf32>
    %184 = vector.shape_cast %183 : vector<1x8x128xf32> to vector<8x128xf32>
    %185 = vector.shape_cast %181 : vector<8x128xf32> to vector<1x8x128xf32>
    tpu.vector_store %arg8[%182, %c0_71, %c0_72], %185 {strides = array<i32>} : memref<8x8x128xf32, #tpu.memory_space<vmem>>, vector<1x8x128xf32>,
    %c1_i32_73 = arith.constant 1 : i32
    %186 = arith.muli %arg1, %c1_i32_73 : i32
    %c3_i32_74 = arith.constant 3 : i32
    %187 = arith.addi %c3_i32_74, %186 : i32
    %c8_i32_75 = arith.constant 8 : i32
    %188 = arith.muli %20, %c8_i32_75 : i32
    %189 = arith.addi %188, %187 : i32
    %190 = arith.sitofp %189 : i32 to f32
    %c0_76 = arith.constant 0 : index
    %c0_77 = arith.constant 0 : index
    %191 = vector.load %arg9[%c0_76, %c0_77] : memref<8x128xf32, #tpu.memory_space<vmem>>, vector<8x128xf32>
    %c0_78 = arith.constant 0 : index
    %c0_79 = arith.constant 0 : index
    %192 = vector.load %arg10[%c0_78, %c0_79] : memref<8x128xf32, #tpu.memory_space<vmem>>, vector<8x128xf32>
    %cst_80 = arith.constant dense<0.000000e+00> : vector<8x512xf32>
    %193 = tpu.matmul %191, %15, %cst_80 {dimension_numbers = #tpu.dot_dimension_numbers<[1], [0], [0], [1], [0, 0, 1, 1], [], []>} : vector<8x128xf32>, vector<128x512xf32>, vector<8x512xf32> -> vector<8x512xf32>
    %194 = arith.index_cast %187 : i32 to index
    %c0_81 = arith.constant 0 : index
    %c0_82 = arith.constant 0 : index
    %195 = vector.load %arg11[%194, %c0_81, %c0_82] : memref<8x8x512xf32, #tpu.memory_space<vmem>>, vector<1x8x512xf32>
    %196 = vector.shape_cast %195 : vector<1x8x512xf32> to vector<8x512xf32>
    %197 = arith.addf %193, %196 : vector<8x512xf32>
    %198 = vector.extract_strided_slice %197 {offsets = [0, 0], sizes = [8, 128], strides = [1, 1]} : vector<8x512xf32> to vector<8x128xf32>
    %199 = arith.negf %198 : vector<8x128xf32>
    %200 = math.exp %199 : vector<8x128xf32>
    %cst_83 = arith.constant 1.000000e+00 : f32
    %201 = vector.broadcast %cst_83 : f32 to vector<8x128xf32>
    %202 = arith.addf %201, %200 : vector<8x128xf32>
    %203 = arith.divf %201, %202 : vector<8x128xf32>
    %204 = vector.extract_strided_slice %197 {offsets = [0, 128], sizes = [8, 128], strides = [1, 1]} : vector<8x512xf32> to vector<8x128xf32>
    %205 = arith.negf %204 : vector<8x128xf32>
    %206 = math.exp %205 : vector<8x128xf32>
    %cst_84 = arith.constant 1.000000e+00 : f32
    %207 = vector.broadcast %cst_84 : f32 to vector<8x128xf32>
    %208 = arith.addf %207, %206 : vector<8x128xf32>
    %209 = arith.divf %207, %208 : vector<8x128xf32>
    %210 = vector.extract_strided_slice %197 {offsets = [0, 256], sizes = [8, 128], strides = [1, 1]} : vector<8x512xf32> to vector<8x128xf32>
    %211 = math.tanh %210 : vector<8x128xf32>
    %212 = vector.extract_strided_slice %197 {offsets = [0, 384], sizes = [8, 128], strides = [1, 1]} : vector<8x512xf32> to vector<8x128xf32>
    %213 = arith.negf %212 : vector<8x128xf32>
    %214 = math.exp %213 : vector<8x128xf32>
    %cst_85 = arith.constant 1.000000e+00 : f32
    %215 = vector.broadcast %cst_85 : f32 to vector<8x128xf32>
    %216 = arith.addf %215, %214 : vector<8x128xf32>
    %217 = arith.divf %215, %216 : vector<8x128xf32>
    %218 = arith.mulf %209, %192 : vector<8x128xf32>
    %219 = arith.mulf %203, %211 : vector<8x128xf32>
    %220 = arith.addf %218, %219 : vector<8x128xf32>
    %221 = math.tanh %220 : vector<8x128xf32>
    %222 = arith.mulf %217, %221 : vector<8x128xf32>
    %223 = vector.broadcast %190 : f32 to vector<8x1xf32>
    %224 = arith.cmpf ogt, %16, %223 : vector<8x1xf32>
    %225 = vector.shape_cast %224 : vector<8x1xi1> to vector<8x1xi1>
    %226 = vector.broadcast %225 : vector<8x1xi1> to vector<8x128xi1>
    %227 = arith.select %226, %220, %192 : vector<8x128xi1>, vector<8x128xf32>
    %c0_86 = arith.constant 0 : index
    %c0_87 = arith.constant 0 : index
    %228 = vector.load %arg10[%c0_86, %c0_87] : memref<8x128xf32, #tpu.memory_space<vmem>>, vector<8x128xf32>
    tpu.vector_store %arg10[%c0_86, %c0_87], %227 {strides = array<i32>} : memref<8x128xf32, #tpu.memory_space<vmem>>, vector<8x128xf32>,
    %229 = vector.shape_cast %224 : vector<8x1xi1> to vector<8x1xi1>
    %230 = vector.broadcast %229 : vector<8x1xi1> to vector<8x128xi1>
    %231 = arith.select %230, %222, %191 : vector<8x128xi1>, vector<8x128xf32>
    %c0_88 = arith.constant 0 : index
    %c0_89 = arith.constant 0 : index
    %232 = vector.load %arg9[%c0_88, %c0_89] : memref<8x128xf32, #tpu.memory_space<vmem>>, vector<8x128xf32>
    tpu.vector_store %arg9[%c0_88, %c0_89], %231 {strides = array<i32>} : memref<8x128xf32, #tpu.memory_space<vmem>>, vector<8x128xf32>,
    %cst_90 = arith.constant 0.000000e+00 : f32
    %233 = vector.shape_cast %224 : vector<8x1xi1> to vector<8x1xi1>
    %234 = vector.broadcast %233 : vector<8x1xi1> to vector<8x128xi1>
    %235 = vector.broadcast %cst_90 : f32 to vector<8x128xf32>
    %236 = arith.select %234, %222, %235 : vector<8x128xi1>, vector<8x128xf32>
    %237 = arith.index_cast %187 : i32 to index
    %c0_91 = arith.constant 0 : index
    %c0_92 = arith.constant 0 : index
    %238 = vector.load %arg8[%237, %c0_91, %c0_92] : memref<8x8x128xf32, #tpu.memory_space<vmem>>, vector<1x8x128xf32>
    %239 = vector.shape_cast %238 : vector<1x8x128xf32> to vector<8x128xf32>
    %240 = vector.shape_cast %236 : vector<8x128xf32> to vector<1x8x128xf32>
    tpu.vector_store %arg8[%237, %c0_91, %c0_92], %240 {strides = array<i32>} : memref<8x8x128xf32, #tpu.memory_space<vmem>>, vector<1x8x128xf32>,
    %c-1_i32 = arith.constant -1 : i32
    %241 = arith.muli %arg1, %c-1_i32 : i32
    %c4_i32 = arith.constant 4 : i32
    %242 = arith.addi %c4_i32, %241 : i32
    %c8_i32_93 = arith.constant 8 : i32
    %243 = arith.muli %20, %c8_i32_93 : i32
    %244 = arith.addi %243, %242 : i32
    %245 = arith.sitofp %244 : i32 to f32
    %c0_94 = arith.constant 0 : index
    %c0_95 = arith.constant 0 : index
    %246 = vector.load %arg9[%c0_94, %c0_95] : memref<8x128xf32, #tpu.memory_space<vmem>>, vector<8x128xf32>
    %c0_96 = arith.constant 0 : index
    %c0_97 = arith.constant 0 : index
    %247 = vector.load %arg10[%c0_96, %c0_97] : memref<8x128xf32, #tpu.memory_space<vmem>>, vector<8x128xf32>
    %cst_98 = arith.constant dense<0.000000e+00> : vector<8x512xf32>
    %248 = tpu.matmul %246, %15, %cst_98 {dimension_numbers = #tpu.dot_dimension_numbers<[1], [0], [0], [1], [0, 0, 1, 1], [], []>} : vector<8x128xf32>, vector<128x512xf32>, vector<8x512xf32> -> vector<8x512xf32>
    %249 = arith.index_cast %242 : i32 to index
    %c0_99 = arith.constant 0 : index
    %c0_100 = arith.constant 0 : index
    %250 = vector.load %arg11[%249, %c0_99, %c0_100] : memref<8x8x512xf32, #tpu.memory_space<vmem>>, vector<1x8x512xf32>
    %251 = vector.shape_cast %250 : vector<1x8x512xf32> to vector<8x512xf32>
    %252 = arith.addf %248, %251 : vector<8x512xf32>
    %253 = vector.extract_strided_slice %252 {offsets = [0, 0], sizes = [8, 128], strides = [1, 1]} : vector<8x512xf32> to vector<8x128xf32>
    %254 = arith.negf %253 : vector<8x128xf32>
    %255 = math.exp %254 : vector<8x128xf32>
    %cst_101 = arith.constant 1.000000e+00 : f32
    %256 = vector.broadcast %cst_101 : f32 to vector<8x128xf32>
    %257 = arith.addf %256, %255 : vector<8x128xf32>
    %258 = arith.divf %256, %257 : vector<8x128xf32>
    %259 = vector.extract_strided_slice %252 {offsets = [0, 128], sizes = [8, 128], strides = [1, 1]} : vector<8x512xf32> to vector<8x128xf32>
    %260 = arith.negf %259 : vector<8x128xf32>
    %261 = math.exp %260 : vector<8x128xf32>
    %cst_102 = arith.constant 1.000000e+00 : f32
    %262 = vector.broadcast %cst_102 : f32 to vector<8x128xf32>
    %263 = arith.addf %262, %261 : vector<8x128xf32>
    %264 = arith.divf %262, %263 : vector<8x128xf32>
    %265 = vector.extract_strided_slice %252 {offsets = [0, 256], sizes = [8, 128], strides = [1, 1]} : vector<8x512xf32> to vector<8x128xf32>
    %266 = math.tanh %265 : vector<8x128xf32>
    %267 = vector.extract_strided_slice %252 {offsets = [0, 384], sizes = [8, 128], strides = [1, 1]} : vector<8x512xf32> to vector<8x128xf32>
    %268 = arith.negf %267 : vector<8x128xf32>
    %269 = math.exp %268 : vector<8x128xf32>
    %cst_103 = arith.constant 1.000000e+00 : f32
    %270 = vector.broadcast %cst_103 : f32 to vector<8x128xf32>
    %271 = arith.addf %270, %269 : vector<8x128xf32>
    %272 = arith.divf %270, %271 : vector<8x128xf32>
    %273 = arith.mulf %264, %247 : vector<8x128xf32>
    %274 = arith.mulf %258, %266 : vector<8x128xf32>
    %275 = arith.addf %273, %274 : vector<8x128xf32>
    %276 = math.tanh %275 : vector<8x128xf32>
    %277 = arith.mulf %272, %276 : vector<8x128xf32>
    %278 = vector.broadcast %245 : f32 to vector<8x1xf32>
    %279 = arith.cmpf ogt, %16, %278 : vector<8x1xf32>
    %280 = vector.shape_cast %279 : vector<8x1xi1> to vector<8x1xi1>
    %281 = vector.broadcast %280 : vector<8x1xi1> to vector<8x128xi1>
    %282 = arith.select %281, %275, %247 : vector<8x128xi1>, vector<8x128xf32>
    %c0_104 = arith.constant 0 : index
    %c0_105 = arith.constant 0 : index
    %283 = vector.load %arg10[%c0_104, %c0_105] : memref<8x128xf32, #tpu.memory_space<vmem>>, vector<8x128xf32>
    tpu.vector_store %arg10[%c0_104, %c0_105], %282 {strides = array<i32>} : memref<8x128xf32, #tpu.memory_space<vmem>>, vector<8x128xf32>,
    %284 = vector.shape_cast %279 : vector<8x1xi1> to vector<8x1xi1>
    %285 = vector.broadcast %284 : vector<8x1xi1> to vector<8x128xi1>
    %286 = arith.select %285, %277, %246 : vector<8x128xi1>, vector<8x128xf32>
    %c0_106 = arith.constant 0 : index
    %c0_107 = arith.constant 0 : index
    %287 = vector.load %arg9[%c0_106, %c0_107] : memref<8x128xf32, #tpu.memory_space<vmem>>, vector<8x128xf32>
    tpu.vector_store %arg9[%c0_106, %c0_107], %286 {strides = array<i32>} : memref<8x128xf32, #tpu.memory_space<vmem>>, vector<8x128xf32>,
    %cst_108 = arith.constant 0.000000e+00 : f32
    %288 = vector.shape_cast %279 : vector<8x1xi1> to vector<8x1xi1>
    %289 = vector.broadcast %288 : vector<8x1xi1> to vector<8x128xi1>
    %290 = vector.broadcast %cst_108 : f32 to vector<8x128xf32>
    %291 = arith.select %289, %277, %290 : vector<8x128xi1>, vector<8x128xf32>
    %292 = arith.index_cast %242 : i32 to index
    %c0_109 = arith.constant 0 : index
    %c0_110 = arith.constant 0 : index
    %293 = vector.load %arg8[%292, %c0_109, %c0_110] : memref<8x8x128xf32, #tpu.memory_space<vmem>>, vector<1x8x128xf32>
    %294 = vector.shape_cast %293 : vector<1x8x128xf32> to vector<8x128xf32>
    %295 = vector.shape_cast %291 : vector<8x128xf32> to vector<1x8x128xf32>
    tpu.vector_store %arg8[%292, %c0_109, %c0_110], %295 {strides = array<i32>} : memref<8x8x128xf32, #tpu.memory_space<vmem>>, vector<1x8x128xf32>,
    %c-3_i32 = arith.constant -3 : i32
    %296 = arith.muli %arg1, %c-3_i32 : i32
    %c5_i32_111 = arith.constant 5 : i32
    %297 = arith.addi %c5_i32_111, %296 : i32
    %c8_i32_112 = arith.constant 8 : i32
    %298 = arith.muli %20, %c8_i32_112 : i32
    %299 = arith.addi %298, %297 : i32
    %300 = arith.sitofp %299 : i32 to f32
    %c0_113 = arith.constant 0 : index
    %c0_114 = arith.constant 0 : index
    %301 = vector.load %arg9[%c0_113, %c0_114] : memref<8x128xf32, #tpu.memory_space<vmem>>, vector<8x128xf32>
    %c0_115 = arith.constant 0 : index
    %c0_116 = arith.constant 0 : index
    %302 = vector.load %arg10[%c0_115, %c0_116] : memref<8x128xf32, #tpu.memory_space<vmem>>, vector<8x128xf32>
    %cst_117 = arith.constant dense<0.000000e+00> : vector<8x512xf32>
    %303 = tpu.matmul %301, %15, %cst_117 {dimension_numbers = #tpu.dot_dimension_numbers<[1], [0], [0], [1], [0, 0, 1, 1], [], []>} : vector<8x128xf32>, vector<128x512xf32>, vector<8x512xf32> -> vector<8x512xf32>
    %304 = arith.index_cast %297 : i32 to index
    %c0_118 = arith.constant 0 : index
    %c0_119 = arith.constant 0 : index
    %305 = vector.load %arg11[%304, %c0_118, %c0_119] : memref<8x8x512xf32, #tpu.memory_space<vmem>>, vector<1x8x512xf32>
    %306 = vector.shape_cast %305 : vector<1x8x512xf32> to vector<8x512xf32>
    %307 = arith.addf %303, %306 : vector<8x512xf32>
    %308 = vector.extract_strided_slice %307 {offsets = [0, 0], sizes = [8, 128], strides = [1, 1]} : vector<8x512xf32> to vector<8x128xf32>
    %309 = arith.negf %308 : vector<8x128xf32>
    %310 = math.exp %309 : vector<8x128xf32>
    %cst_120 = arith.constant 1.000000e+00 : f32
    %311 = vector.broadcast %cst_120 : f32 to vector<8x128xf32>
    %312 = arith.addf %311, %310 : vector<8x128xf32>
    %313 = arith.divf %311, %312 : vector<8x128xf32>
    %314 = vector.extract_strided_slice %307 {offsets = [0, 128], sizes = [8, 128], strides = [1, 1]} : vector<8x512xf32> to vector<8x128xf32>
    %315 = arith.negf %314 : vector<8x128xf32>
    %316 = math.exp %315 : vector<8x128xf32>
    %cst_121 = arith.constant 1.000000e+00 : f32
    %317 = vector.broadcast %cst_121 : f32 to vector<8x128xf32>
    %318 = arith.addf %317, %316 : vector<8x128xf32>
    %319 = arith.divf %317, %318 : vector<8x128xf32>
    %320 = vector.extract_strided_slice %307 {offsets = [0, 256], sizes = [8, 128], strides = [1, 1]} : vector<8x512xf32> to vector<8x128xf32>
    %321 = math.tanh %320 : vector<8x128xf32>
    %322 = vector.extract_strided_slice %307 {offsets = [0, 384], sizes = [8, 128], strides = [1, 1]} : vector<8x512xf32> to vector<8x128xf32>
    %323 = arith.negf %322 : vector<8x128xf32>
    %324 = math.exp %323 : vector<8x128xf32>
    %cst_122 = arith.constant 1.000000e+00 : f32
    %325 = vector.broadcast %cst_122 : f32 to vector<8x128xf32>
    %326 = arith.addf %325, %324 : vector<8x128xf32>
    %327 = arith.divf %325, %326 : vector<8x128xf32>
    %328 = arith.mulf %319, %302 : vector<8x128xf32>
    %329 = arith.mulf %313, %321 : vector<8x128xf32>
    %330 = arith.addf %328, %329 : vector<8x128xf32>
    %331 = math.tanh %330 : vector<8x128xf32>
    %332 = arith.mulf %327, %331 : vector<8x128xf32>
    %333 = vector.broadcast %300 : f32 to vector<8x1xf32>
    %334 = arith.cmpf ogt, %16, %333 : vector<8x1xf32>
    %335 = vector.shape_cast %334 : vector<8x1xi1> to vector<8x1xi1>
    %336 = vector.broadcast %335 : vector<8x1xi1> to vector<8x128xi1>
    %337 = arith.select %336, %330, %302 : vector<8x128xi1>, vector<8x128xf32>
    %c0_123 = arith.constant 0 : index
    %c0_124 = arith.constant 0 : index
    %338 = vector.load %arg10[%c0_123, %c0_124] : memref<8x128xf32, #tpu.memory_space<vmem>>, vector<8x128xf32>
    tpu.vector_store %arg10[%c0_123, %c0_124], %337 {strides = array<i32>} : memref<8x128xf32, #tpu.memory_space<vmem>>, vector<8x128xf32>,
    %339 = vector.shape_cast %334 : vector<8x1xi1> to vector<8x1xi1>
    %340 = vector.broadcast %339 : vector<8x1xi1> to vector<8x128xi1>
    %341 = arith.select %340, %332, %301 : vector<8x128xi1>, vector<8x128xf32>
    %c0_125 = arith.constant 0 : index
    %c0_126 = arith.constant 0 : index
    %342 = vector.load %arg9[%c0_125, %c0_126] : memref<8x128xf32, #tpu.memory_space<vmem>>, vector<8x128xf32>
    tpu.vector_store %arg9[%c0_125, %c0_126], %341 {strides = array<i32>} : memref<8x128xf32, #tpu.memory_space<vmem>>, vector<8x128xf32>,
    %cst_127 = arith.constant 0.000000e+00 : f32
    %343 = vector.shape_cast %334 : vector<8x1xi1> to vector<8x1xi1>
    %344 = vector.broadcast %343 : vector<8x1xi1> to vector<8x128xi1>
    %345 = vector.broadcast %cst_127 : f32 to vector<8x128xf32>
    %346 = arith.select %344, %332, %345 : vector<8x128xi1>, vector<8x128xf32>
    %347 = arith.index_cast %297 : i32 to index
    %c0_128 = arith.constant 0 : index
    %c0_129 = arith.constant 0 : index
    %348 = vector.load %arg8[%347, %c0_128, %c0_129] : memref<8x8x128xf32, #tpu.memory_space<vmem>>, vector<1x8x128xf32>
    %349 = vector.shape_cast %348 : vector<1x8x128xf32> to vector<8x128xf32>
    %350 = vector.shape_cast %346 : vector<8x128xf32> to vector<1x8x128xf32>
    tpu.vector_store %arg8[%347, %c0_128, %c0_129], %350 {strides = array<i32>} : memref<8x8x128xf32, #tpu.memory_space<vmem>>, vector<1x8x128xf32>,
    %c-5_i32 = arith.constant -5 : i32
    %351 = arith.muli %arg1, %c-5_i32 : i32
    %c6_i32 = arith.constant 6 : i32
    %352 = arith.addi %c6_i32, %351 : i32
    %c8_i32_130 = arith.constant 8 : i32
    %353 = arith.muli %20, %c8_i32_130 : i32
    %354 = arith.addi %353, %352 : i32
    %355 = arith.sitofp %354 : i32 to f32
    %c0_131 = arith.constant 0 : index
    %c0_132 = arith.constant 0 : index
    %356 = vector.load %arg9[%c0_131, %c0_132] : memref<8x128xf32, #tpu.memory_space<vmem>>, vector<8x128xf32>
    %c0_133 = arith.constant 0 : index
    %c0_134 = arith.constant 0 : index
    %357 = vector.load %arg10[%c0_133, %c0_134] : memref<8x128xf32, #tpu.memory_space<vmem>>, vector<8x128xf32>
    %cst_135 = arith.constant dense<0.000000e+00> : vector<8x512xf32>
    %358 = tpu.matmul %356, %15, %cst_135 {dimension_numbers = #tpu.dot_dimension_numbers<[1], [0], [0], [1], [0, 0, 1, 1], [], []>} : vector<8x128xf32>, vector<128x512xf32>, vector<8x512xf32> -> vector<8x512xf32>
    %359 = arith.index_cast %352 : i32 to index
    %c0_136 = arith.constant 0 : index
    %c0_137 = arith.constant 0 : index
    %360 = vector.load %arg11[%359, %c0_136, %c0_137] : memref<8x8x512xf32, #tpu.memory_space<vmem>>, vector<1x8x512xf32>
    %361 = vector.shape_cast %360 : vector<1x8x512xf32> to vector<8x512xf32>
    %362 = arith.addf %358, %361 : vector<8x512xf32>
    %363 = vector.extract_strided_slice %362 {offsets = [0, 0], sizes = [8, 128], strides = [1, 1]} : vector<8x512xf32> to vector<8x128xf32>
    %364 = arith.negf %363 : vector<8x128xf32>
    %365 = math.exp %364 : vector<8x128xf32>
    %cst_138 = arith.constant 1.000000e+00 : f32
    %366 = vector.broadcast %cst_138 : f32 to vector<8x128xf32>
    %367 = arith.addf %366, %365 : vector<8x128xf32>
    %368 = arith.divf %366, %367 : vector<8x128xf32>
    %369 = vector.extract_strided_slice %362 {offsets = [0, 128], sizes = [8, 128], strides = [1, 1]} : vector<8x512xf32> to vector<8x128xf32>
    %370 = arith.negf %369 : vector<8x128xf32>
    %371 = math.exp %370 : vector<8x128xf32>
    %cst_139 = arith.constant 1.000000e+00 : f32
    %372 = vector.broadcast %cst_139 : f32 to vector<8x128xf32>
    %373 = arith.addf %372, %371 : vector<8x128xf32>
    %374 = arith.divf %372, %373 : vector<8x128xf32>
    %375 = vector.extract_strided_slice %362 {offsets = [0, 256], sizes = [8, 128], strides = [1, 1]} : vector<8x512xf32> to vector<8x128xf32>
    %376 = math.tanh %375 : vector<8x128xf32>
    %377 = vector.extract_strided_slice %362 {offsets = [0, 384], sizes = [8, 128], strides = [1, 1]} : vector<8x512xf32> to vector<8x128xf32>
    %378 = arith.negf %377 : vector<8x128xf32>
    %379 = math.exp %378 : vector<8x128xf32>
    %cst_140 = arith.constant 1.000000e+00 : f32
    %380 = vector.broadcast %cst_140 : f32 to vector<8x128xf32>
    %381 = arith.addf %380, %379 : vector<8x128xf32>
    %382 = arith.divf %380, %381 : vector<8x128xf32>
    %383 = arith.mulf %374, %357 : vector<8x128xf32>
    %384 = arith.mulf %368, %376 : vector<8x128xf32>
    %385 = arith.addf %383, %384 : vector<8x128xf32>
    %386 = math.tanh %385 : vector<8x128xf32>
    %387 = arith.mulf %382, %386 : vector<8x128xf32>
    %388 = vector.broadcast %355 : f32 to vector<8x1xf32>
    %389 = arith.cmpf ogt, %16, %388 : vector<8x1xf32>
    %390 = vector.shape_cast %389 : vector<8x1xi1> to vector<8x1xi1>
    %391 = vector.broadcast %390 : vector<8x1xi1> to vector<8x128xi1>
    %392 = arith.select %391, %385, %357 : vector<8x128xi1>, vector<8x128xf32>
    %c0_141 = arith.constant 0 : index
    %c0_142 = arith.constant 0 : index
    %393 = vector.load %arg10[%c0_141, %c0_142] : memref<8x128xf32, #tpu.memory_space<vmem>>, vector<8x128xf32>
    tpu.vector_store %arg10[%c0_141, %c0_142], %392 {strides = array<i32>} : memref<8x128xf32, #tpu.memory_space<vmem>>, vector<8x128xf32>,
    %394 = vector.shape_cast %389 : vector<8x1xi1> to vector<8x1xi1>
    %395 = vector.broadcast %394 : vector<8x1xi1> to vector<8x128xi1>
    %396 = arith.select %395, %387, %356 : vector<8x128xi1>, vector<8x128xf32>
    %c0_143 = arith.constant 0 : index
    %c0_144 = arith.constant 0 : index
    %397 = vector.load %arg9[%c0_143, %c0_144] : memref<8x128xf32, #tpu.memory_space<vmem>>, vector<8x128xf32>
    tpu.vector_store %arg9[%c0_143, %c0_144], %396 {strides = array<i32>} : memref<8x128xf32, #tpu.memory_space<vmem>>, vector<8x128xf32>,
    %cst_145 = arith.constant 0.000000e+00 : f32
    %398 = vector.shape_cast %389 : vector<8x1xi1> to vector<8x1xi1>
    %399 = vector.broadcast %398 : vector<8x1xi1> to vector<8x128xi1>
    %400 = vector.broadcast %cst_145 : f32 to vector<8x128xf32>
    %401 = arith.select %399, %387, %400 : vector<8x128xi1>, vector<8x128xf32>
    %402 = arith.index_cast %352 : i32 to index
    %c0_146 = arith.constant 0 : index
    %c0_147 = arith.constant 0 : index
    %403 = vector.load %arg8[%402, %c0_146, %c0_147] : memref<8x8x128xf32, #tpu.memory_space<vmem>>, vector<1x8x128xf32>
    %404 = vector.shape_cast %403 : vector<1x8x128xf32> to vector<8x128xf32>
    %405 = vector.shape_cast %401 : vector<8x128xf32> to vector<1x8x128xf32>
    tpu.vector_store %arg8[%402, %c0_146, %c0_147], %405 {strides = array<i32>} : memref<8x8x128xf32, #tpu.memory_space<vmem>>, vector<1x8x128xf32>,
    %c-7_i32 = arith.constant -7 : i32
    %406 = arith.muli %arg1, %c-7_i32 : i32
    %c7_i32_148 = arith.constant 7 : i32
    %407 = arith.addi %c7_i32_148, %406 : i32
    %c8_i32_149 = arith.constant 8 : i32
    %408 = arith.muli %20, %c8_i32_149 : i32
    %409 = arith.addi %408, %407 : i32
    %410 = arith.sitofp %409 : i32 to f32
    %c0_150 = arith.constant 0 : index
    %c0_151 = arith.constant 0 : index
    %411 = vector.load %arg9[%c0_150, %c0_151] : memref<8x128xf32, #tpu.memory_space<vmem>>, vector<8x128xf32>
    %c0_152 = arith.constant 0 : index
    %c0_153 = arith.constant 0 : index
    %412 = vector.load %arg10[%c0_152, %c0_153] : memref<8x128xf32, #tpu.memory_space<vmem>>, vector<8x128xf32>
    %cst_154 = arith.constant dense<0.000000e+00> : vector<8x512xf32>
    %413 = tpu.matmul %411, %15, %cst_154 {dimension_numbers = #tpu.dot_dimension_numbers<[1], [0], [0], [1], [0, 0, 1, 1], [], []>} : vector<8x128xf32>, vector<128x512xf32>, vector<8x512xf32> -> vector<8x512xf32>
    %414 = arith.index_cast %407 : i32 to index
    %c0_155 = arith.constant 0 : index
    %c0_156 = arith.constant 0 : index
    %415 = vector.load %arg11[%414, %c0_155, %c0_156] : memref<8x8x512xf32, #tpu.memory_space<vmem>>, vector<1x8x512xf32>
    %416 = vector.shape_cast %415 : vector<1x8x512xf32> to vector<8x512xf32>
    %417 = arith.addf %413, %416 : vector<8x512xf32>
    %418 = vector.extract_strided_slice %417 {offsets = [0, 0], sizes = [8, 128], strides = [1, 1]} : vector<8x512xf32> to vector<8x128xf32>
    %419 = arith.negf %418 : vector<8x128xf32>
    %420 = math.exp %419 : vector<8x128xf32>
    %cst_157 = arith.constant 1.000000e+00 : f32
    %421 = vector.broadcast %cst_157 : f32 to vector<8x128xf32>
    %422 = arith.addf %421, %420 : vector<8x128xf32>
    %423 = arith.divf %421, %422 : vector<8x128xf32>
    %424 = vector.extract_strided_slice %417 {offsets = [0, 128], sizes = [8, 128], strides = [1, 1]} : vector<8x512xf32> to vector<8x128xf32>
    %425 = arith.negf %424 : vector<8x128xf32>
    %426 = math.exp %425 : vector<8x128xf32>
    %cst_158 = arith.constant 1.000000e+00 : f32
    %427 = vector.broadcast %cst_158 : f32 to vector<8x128xf32>
    %428 = arith.addf %427, %426 : vector<8x128xf32>
    %429 = arith.divf %427, %428 : vector<8x128xf32>
    %430 = vector.extract_strided_slice %417 {offsets = [0, 256], sizes = [8, 128], strides = [1, 1]} : vector<8x512xf32> to vector<8x128xf32>
    %431 = math.tanh %430 : vector<8x128xf32>
    %432 = vector.extract_strided_slice %417 {offsets = [0, 384], sizes = [8, 128], strides = [1, 1]} : vector<8x512xf32> to vector<8x128xf32>
    %433 = arith.negf %432 : vector<8x128xf32>
    %434 = math.exp %433 : vector<8x128xf32>
    %cst_159 = arith.constant 1.000000e+00 : f32
    %435 = vector.broadcast %cst_159 : f32 to vector<8x128xf32>
    %436 = arith.addf %435, %434 : vector<8x128xf32>
    %437 = arith.divf %435, %436 : vector<8x128xf32>
    %438 = arith.mulf %429, %412 : vector<8x128xf32>
    %439 = arith.mulf %423, %431 : vector<8x128xf32>
    %440 = arith.addf %438, %439 : vector<8x128xf32>
    %441 = math.tanh %440 : vector<8x128xf32>
    %442 = arith.mulf %437, %441 : vector<8x128xf32>
    %443 = vector.broadcast %410 : f32 to vector<8x1xf32>
    %444 = arith.cmpf ogt, %16, %443 : vector<8x1xf32>
    %445 = vector.shape_cast %444 : vector<8x1xi1> to vector<8x1xi1>
    %446 = vector.broadcast %445 : vector<8x1xi1> to vector<8x128xi1>
    %447 = arith.select %446, %440, %412 : vector<8x128xi1>, vector<8x128xf32>
    %c0_160 = arith.constant 0 : index
    %c0_161 = arith.constant 0 : index
    %448 = vector.load %arg10[%c0_160, %c0_161] : memref<8x128xf32, #tpu.memory_space<vmem>>, vector<8x128xf32>
    tpu.vector_store %arg10[%c0_160, %c0_161], %447 {strides = array<i32>} : memref<8x128xf32, #tpu.memory_space<vmem>>, vector<8x128xf32>,
    %449 = vector.shape_cast %444 : vector<8x1xi1> to vector<8x1xi1>
    %450 = vector.broadcast %449 : vector<8x1xi1> to vector<8x128xi1>
    %451 = arith.select %450, %442, %411 : vector<8x128xi1>, vector<8x128xf32>
    %c0_162 = arith.constant 0 : index
    %c0_163 = arith.constant 0 : index
    %452 = vector.load %arg9[%c0_162, %c0_163] : memref<8x128xf32, #tpu.memory_space<vmem>>, vector<8x128xf32>
    tpu.vector_store %arg9[%c0_162, %c0_163], %451 {strides = array<i32>} : memref<8x128xf32, #tpu.memory_space<vmem>>, vector<8x128xf32>,
    %cst_164 = arith.constant 0.000000e+00 : f32
    %453 = vector.shape_cast %444 : vector<8x1xi1> to vector<8x1xi1>
    %454 = vector.broadcast %453 : vector<8x1xi1> to vector<8x128xi1>
    %455 = vector.broadcast %cst_164 : f32 to vector<8x128xf32>
    %456 = arith.select %454, %442, %455 : vector<8x128xi1>, vector<8x128xf32>
    %457 = arith.index_cast %407 : i32 to index
    %c0_165 = arith.constant 0 : index
    %c0_166 = arith.constant 0 : index
    %458 = vector.load %arg8[%457, %c0_165, %c0_166] : memref<8x8x128xf32, #tpu.memory_space<vmem>>, vector<1x8x128xf32>
    %459 = vector.shape_cast %458 : vector<1x8x128xf32> to vector<8x128xf32>
    %460 = vector.shape_cast %456 : vector<8x128xf32> to vector<1x8x128xf32>
    tpu.vector_store %arg8[%457, %c0_165, %c0_166], %460 {strides = array<i32>} : memref<8x8x128xf32, #tpu.memory_space<vmem>>, vector<1x8x128xf32>,
    return
  }
  func.func @transform_0(%arg0: i32, %arg1: i32, %arg2: i32) -> (i32, i32) {
    %c0_i32 = arith.constant 0 : i32
    %c0_i32_0 = arith.constant 0 : i32
    return %arg0, %c0_i32 : i32, i32
  }
  func.func @transform_1(%arg0: i32, %arg1: i32, %arg2: i32) -> (i32, i32, i32) {
    %c2_i32 = arith.constant 2 : i32
    %0 = arith.muli %c2_i32, %arg2 : i32
    %c0_i32 = arith.constant 0 : i32
    %1 = arith.subi %c0_i32, %0 : i32
    %2 = arith.muli %arg1, %1 : i32
    %3 = arith.addi %arg2, %2 : i32
    %c0_i32_0 = arith.constant 0 : i32
    %c0_i32_1 = arith.constant 0 : i32
    return %3, %arg0, %c0_i32_0 : i32, i32, i32
  }
  func.func @transform_2(%arg0: i32, %arg1: i32, %arg2: i32) -> (i32, i32, i32) {
    %c0_i32 = arith.constant 0 : i32
    %c0_i32_0 = arith.constant 0 : i32
    %c0_i32_1 = arith.constant 0 : i32
    return %arg1, %c0_i32, %c0_i32_0 : i32, i32, i32
  }
  func.func @transform_3(%arg0: i32, %arg1: i32, %arg2: i32) -> (i32, i32, i32) {
    %c0_i32 = arith.constant 0 : i32
    %c0_i32_0 = arith.constant 0 : i32
    %c0_i32_1 = arith.constant 0 : i32
    return %arg1, %c0_i32, %c0_i32_0 : i32, i32, i32
  }
  func.func @transform_4(%arg0: i32, %arg1: i32, %arg2: i32) -> (i32, i32, i32) {
    %c0_i32 = arith.constant 0 : i32
    %c0_i32_0 = arith.constant 0 : i32
    %c0_i32_1 = arith.constant 0 : i32
    return %arg1, %c0_i32, %c0_i32_0 : i32, i32, i32
  }
  func.func @transform_5(%arg0: i32, %arg1: i32, %arg2: i32) -> (i32, i32, i32) {
    %c2_i32 = arith.constant 2 : i32
    %0 = arith.muli %c2_i32, %arg2 : i32
    %c0_i32 = arith.constant 0 : i32
    %1 = arith.subi %c0_i32, %0 : i32
    %2 = arith.muli %arg1, %1 : i32
    %3 = arith.addi %arg2, %2 : i32
    %c0_i32_0 = arith.constant 0 : i32
    return %3, %arg0, %arg1 : i32, i32, i32
  }
}

</mosaic_0001>

<bundles_post_ra>
// kernel: tpu_custom_call.1
= control target key start
LH: loop header
LB: loop body
LE: loop exit
PB: predicated region body
PF: predicated region fallthrough
CT: control target
= control target key end

     0   :  { %s4598_s0 = inlined_call_operand.vmem [shape: f32[8,1], index: 0, kind: input, shape index: {}]   ;;  %s4599_s1 = inlined_call_operand.hbm [shape: f32[8,8,128], index: 1, kind: input, shape index: {}]   ;;  %s4600_s2 = inlined_call_operand.hbm [shape: f32[2,128,512], index: 2, kind: input, shape index: {}]   ;;  %s4601_s3 = inlined_call_operand.hbm [shape: f32[2,128,512], index: 3, kind: input, shape index: {}]   ;;  %s4602_s4 = inlined_call_operand.vmem [shape: f32[2,1,512], index: 4, kind: input, shape index: {}]   ;;  %s4603_s5 = inlined_call_operand.hbm [shape: f32[8,8,256], index: 5, kind: output, shape index: {}]  }
   0x1   :  { %4699 = sst [smem:[#allocation37_spill]] %s4600_s2 }
   0x2   :  { %10 = vsyncpa [#allocation6], 0 }
   0x3   :  { %12 = vsyncpa [#allocation6 + $0x1], 0 }
   0x4   :  { %13 = vsyncpa [#allocation9], 0 }
   0x5   :  { %15 = vsyncpa [#allocation9 + $0x1], 0 }
   0x6   :  { %16 = vsyncpa [#allocation7], 0 }
   0x7   :  { %18 = vsyncpa [#allocation7 + $0x1], 0  ;;  %s3216_s18 = smov 0   ;;  %s3218_s19 = smov 0  }
   0x8   :  { %s3220_s20 = smov 0   ;;  %s3222_s21 = smov 0  }
   0x9   :  { %s3224_s22 = smov 0   ;;  %s3226_s23 = smov 0  }
   0xa LB: > { %4700 = sst [smem:[#allocation15_spill]] %s3167_s22  ;;  %s3247_s24 = sadd.s32 4294967295, %s3171_s23   ;;  %s3171_s23 = sphi %s3226_s23, %s24_s23   ;;  %s3167_s22 = sphi %s3224_s22, %s4852_s22   ;;  %s3163_s21 = sphi %s3222_s21, %s4851_s21   ;;  %s3159_s20 = sphi %s3220_s20, %s4855_s20   ;;  %s3155_s19 = sphi %s3218_s19, %s4854_s19   ;;  %s3151_s18 = sphi %s3216_s18, %s4853_s18  }
   0xb   : > { %s2626_s25 = sadd.s32 4294967294, %s3171_s23   ;;  %s39_s26 = sadd.s32 1, %s3167_s22 }
   0xc   : > { %s112_s27 = sadd.s32 1, %s3159_s20  ;;  %p41_p0 = scmp.ge.s32.totalorder %s39_s26, 2 }
   0xd   : > { %p119_p1 = scmp.ne.s32.totalorder %s3159_s20, %s3155_s19  ;;  %p120_p2 = scmp.eq.s32.totalorder %s3171_s23, 0 }
   0xe   : > { %p125_p3 = scmp.ne.s32.totalorder %s3155_s19, %s3151_s18  ;;  %s4857_s26 = smov (%p41_p0, %s39_s26), 0 }
   0xf   : > { %4701 = sst [smem:[#allocation16_spill]] %s4857_s26  ;;  %p3261_p4 = por %p120_p2, %p119_p1 }
  0x10   : > { %p4604_p5 = scmp.eq.s32.totalorder %s3247_s24, 0  ;;  %s109_s29 = ssub.s32 %s3167_s22, %s4857_s26 }
  0x11   : > { %p213_p6 = scmp.eq.s32.totalorder %s3247_s24, 1  ;;  %p110_p7 = scmp.eq.s32.totalorder %s109_s29, 0 }
  0x12   : > { %p3271_p8 = por %p4604_p5, %p125_p3  ;;  %p219_p10 = scmp.eq.s32.totalorder %s2626_s25, 1 }
  0x13   : > { %p3275_p9 = por %p213_p6, %p119_p1  ;;  %p2749_p13 = scmp.lt.s32.totalorder %s3171_s23, 2 }
  0x14   : > { %s3280_s7 = scalar_select %p110_p7, %s3159_s20, %s112_s27  }
  0x15   : > { %s4704_s6 = scalar_select %p3275_p9, 1, 0 }
  0x16   : > { %p3282_p11 = por %p219_p10, %p125_p3  ;;  %s272_s9 = sand.u32 1, %s3171_s23  }
  0x17   : > { %s274_s10 = sand.u32 1, %s3159_s20   ;;  %s2719_s12 = sshll.u32 %s3167_s22, 13 }
  0x18   : > { %s4705_s8 = scalar_select %p3282_p11, 1, 0 }
  0x19   : > { %s3290_s11 = sshll.u32 %s274_s10, 9  ;;  %s4706_s2 = sld [smem:[#allocation37_spill]] }
  0x1a   : > { %s276_s16 = scalar_lea.vmem [#allocation8], %s3290_s11  ;;  %p3301_p0 = pnand %p2749_p13, %p3261_p4 }
  0x1b   : > { %s283_s17 = sshll.u32 %s276_s16, 4  ;;  %s3305_s27 = scalar_lea.sflag [#allocation9], %s272_s9  ;;  %s284_s17 = int_to_ptr.vmem [resolvable:$true] %s283_s17 }
  0x1c   : > { %p4607_p1 = pneg %p3301_p0  ;;  %s3018_s29 = scalar_lea.vmem %s284_s17, 8192 }
  0x1d   : > { %p3019_p3 = scmp.ne.s32.totalorder %s284_s17, %s3018_s29  ;;  %s3173_s10 = smov [#allocation8]  }
  0x1e   : > { %s3023_s13 = sshll.u32 %s3173_s10, 4  ;;  %s3024_s13 = int_to_ptr.vmem [resolvable:$false] %s3023_s13 }
  0x1f   : > { %s282_s15 = scalar_lea.hbm %s4706_s2, %s2719_s12  ;;  %p3021_p6 = pnand %p3019_p3, %p4607_p1 }
  0x20   : > { %s3025_s28 = scalar_lea.vmem %s3024_s13, 16384  ;;  %p3026_p4 = scmp.lt.s32.totalorder %s284_s17, %s3024_s13 }
  0x21   : > { %p3022_p7 = pneg %p3021_p6  ;;  %p3027_p10 = scmp.lt.s32.totalorder %s3025_s28, %s3018_s29 }
  0x23   : > { %p3028_p12 = por %p3027_p10, %p3026_p4 }
  0x25   : > { %p3029_p5 = pnand %p3028_p12, %p3022_p7 }
  0x27   : > { %3032 = shalt.err (!%p3029_p5)
}
  0x28   : > { %s4609_s14 = smov 512   ;;  %s3175_s9 = smov 32  }
  0x29   : > { %2741 = dma.hbm_to_vmem [thread:$0]  (!%p3301_p0), %s282_s15, 8192, %s284_s17, %s3305_s27, %s4609_s14, %s4609_s14, %s3175_s9  }
  0x2a   : > { %s3321_s29 = scalar_lea.hbm %s4601_s3, %s2719_s12  ;;  %s297_s13 = scalar_lea.vmem [#allocation10], %s3290_s11 }
  0x2b   : > { %s304_s28 = sshll.u32 %s297_s13, 4  ;;  %p2637_p5 = scmp.ge.s32.totalorder %s3171_s23, 1  ;;  %s3324_s28 = int_to_ptr.vmem [resolvable:$true] %s304_s28 }
  0x2c   : > { %p319_p12 = scmp.lt.s32.totalorder %s3171_s23, 3  ;;  %s3176_s26 = smov [#allocation5]  }
  0x2d   : > { %s262_s22 = sshll.u32 %s3176_s26, 4  ;;  %p3336_p6 = pnand %p2749_p13, %p120_p2  ;;  %s263_s22 = int_to_ptr.vmem [resolvable:$true] %s262_s22 }
  0x2e   : > { %p3328_p3 = pnand %p2637_p5, %p319_p12  ;;  %s3044_s11 = scalar_lea.vmem %s263_s22, 1024 }
  0x2f   : > { %p3035_p7 = pneg %p3336_p6  ;;  %p3045_p4 = scmp.ne.s32.totalorder %s263_s22, %s3044_s11 }
  0x30   : > { %s3051_s12 = scalar_lea.vmem %s263_s22, 2048  ;;  %p3052_p5 = scmp.lt.s32.totalorder %s263_s22, %s263_s22 }
  0x31   : > { %p3047_p10 = pnand %p3045_p4, %p3035_p7  ;;  %p3053_p12 = scmp.lt.s32.totalorder %s3051_s12, %s3044_s11 }
  0x33   : > { %p3048_p1 = pneg %p3047_p10  ;;  %p3054_p11 = por %p3053_p12, %p3052_p5 }
  0x35   : > { %p3055_p9 = pnand %p3054_p11, %p3048_p1 }
  0x37   : > { %3058 = shalt.err (!%p3055_p9)
}
  0x38   : > { %s3177_s26 = smov 128   ;;  %s3178_s17 = smov 8  }
  0x39   : > { %2738 = dma.hbm_to_vmem [thread:$0]  (!%p3336_p6), %s4599_s1, 1024, %s263_s22, [#allocation6], %s3177_s26, %s3177_s26, %s3178_s17  }
  0x3a   : > { %s3072_s13 = scalar_lea.vmem %s3324_s28, 8192  ;;  %p4710_p13 = pneg %p3301_p0 }
  0x3b   : > { %p3073_p2 = scmp.ne.s32.totalorder %s3324_s28, %s3072_s13  ;;  %s3179_s11 = smov [#allocation10]  }
  0x3c   : > { %s3077_s12 = sshll.u32 %s3179_s11, 4  ;;  %s3078_s12 = int_to_ptr.vmem [resolvable:$false] %s3077_s12 }
  0x3d   : > { %p3075_p7 = pnand %p3073_p2, %p4710_p13  ;;  %s3079_s14 = scalar_lea.vmem %s3078_s12, 16384 }
  0x3e   : > { %p3080_p9 = scmp.lt.s32.totalorder %s3324_s28, %s3078_s12  ;;  %p3081_p11 = scmp.lt.s32.totalorder %s3079_s14, %s3072_s13 }
  0x3f   : > { %p3076_p4 = pneg %p3075_p7 }
  0x40   : > { %p3082_p1 = por %p3081_p11, %p3080_p9 }
  0x42   : > { %p3083_p10 = pnand %p3082_p1, %p3076_p4 }
  0x44   : > { %3086 = shalt.err (!%p3083_p10)
}
  0x45   : > { %s4711_s15 = smov 512   ;;  %323 = sbr.rel (%p3328_p3) target bundleno = 2178 (0x882), region = 40 }
  0x46   : > { %2744 = dma.hbm_to_vmem [thread:$0]  (!%p3301_p0), %s3321_s29, 8192, %s3324_s28, %s3305_s27, %s4711_s15, %s4711_s15, %s3175_s9  }
  0x4a   : > { %p4712_p6 = scmp.eq.s32.totalorder %s3247_s24, 0 }
  0x4c   : > { %3138 = dma.done.wait (%p4712_p6), [#allocation6], 1024   ;;  %p4713_p5 = pmov %p4712_p6 }
  0x4d   : > { %s334_s22 = sand.u32 1, %s3247_s24   ;;  %s3369_s25 = sand.u32 1, %s3155_s19  }
  0x4e   : > { %3140 = vsyncadd (%p4713_p5), [#allocation6], 4294966272  ;;  %s2639_s14 = sshll.u32 %s3369_s25, 9  ;;  %s335_s26 = scalar_lea.sflag [#allocation9], %s334_s22 }
  0x4f   : > { %s3374_s27 = scalar_lea.vmem [#allocation8], %s2639_s14 }
  0x50   : > { %3142 = dma.done.wait (%p3271_p8), %s335_s26, 16384  }
  0x51   : > { %3144 = vsyncadd (%p3271_p8), %s335_s26, 4294950912  ;;  %v4612_v0 = vmov 0.0   ;;  %v4610_v1 = vmov 0   ;;  %v485_v2 = vld [vmem:[%s3374_s27 + $0x1e8] sm:$0xff]  ;;  %v487_v3 = vld [vmem:[%s3374_s27 + $0x1f8] sm:$0xff]  ;;  %s3450_s2 = scalar_lea.vmem [#allocation10], %s2639_s14 }
  0x52   : > { %574 = vmatprep.mubr.f32.mxu0 %v4612_v0  ;;  %687 = vmatprep.mubr.f32.mxu1 %v4612_v0  ;;  %v484_v4 = vld [vmem:[%s3374_s27 + $0x1e0] sm:$0xff]  ;;  %v486_v5 = vld [vmem:[%s3374_s27 + $0x1f0] sm:$0xff]  ;;  %v481_v6 = vld [vmem:[%s3374_s27 + $0x1c8] sm:$0xff]  ;;  %s837_s24 = smul.u32 7, %s3163_s21  ;;  %s3706_s10 = ssub.s32 4, %s3163_s21 }
  0x53   : > { %2811 = vset.pattern.permute.xlu0 %v4610_v1  ;;  %2812 = vset.pattern.permute.xlu1 %v4610_v1  ;;  %v483_v7 = vld [vmem:[%s3374_s27 + $0x1d8] sm:$0xff]  ;;  %v480_v8 = vld [vmem:[%s3374_s27 + $0x1c0] sm:$0xff]  ;;  %v482_v9 = vld [vmem:[%s3374_s27 + $0x1d0] sm:$0xff]  ;;  %s1031_s30 = smul.u32 5, %s3163_s21  ;;  %s1614_s11 = scvt.s32.f32 %s3706_s10 }
  0x54   : > { %510 = vmatprep.subr.mxu0 %v485_v2  ;;  %623 = vmatprep.subr.mxu1 %v487_v3  ;;  %v477_v10 = vld [vmem:[%s3374_s27 + $0x1a8] sm:$0xff]  ;;  %v479_v11 = vld [vmem:[%s3374_s27 + $0x1b8] sm:$0xff]  ;;  %v476_v12 = vld [vmem:[%s3374_s27 + $0x1a0] sm:$0xff]  ;;  %s3656_s9 = scvt.s32.f32 %s837_s24  ;;  %s1999_s13 = smul.u32 4294967291, %s3163_s21 }
  0x55   : > { %511 = vmatpush1.msra.mxu0 %v484_v4  ;;  %624 = vmatpush1.msra.mxu1 %v486_v5  ;;  %v478_v13 = vld [vmem:[%s3374_s27 + $0x1b0] sm:$0xff]  ;;  %v473_v14 = vld [vmem:[%s3374_s27 + $0x188] sm:$0xff]  ;;  %v475_v15 = vld [vmem:[%s3374_s27 + $0x198] sm:$0xff]  ;;  %s3666_s29 = sadd.s32 1, %s1031_s30  ;;  %p401_p8 = scmp.lt.s32.totalorder %s3163_s21, 1 }
  0x56   : > { %512 = vmatprep.subr.mxu0 %v481_v6  ;;  %625 = vmatprep.subr.mxu1 %v483_v7  ;;  %v472_v16 = vld [vmem:[%s3374_s27 + $0x180] sm:$0xff]  ;;  %v474_v17 = vld [vmem:[%s3374_s27 + $0x190] sm:$0xff]  ;;  %v469_v18 = vld [vmem:[%s3374_s27 + $0x168] sm:$0xff]  ;;  %s1034_s16 = scvt.s32.f32 %s3666_s29  ;;  %s2000_s12 = sadd.s32 6, %s1999_s13 }
  0x57   : > { %513 = vmatpush1.msra.mxu0 %v480_v8  ;;  %626 = vmatpush1.msra.mxu1 %v482_v9  ;;  %v471_v19 = vld [vmem:[%s3374_s27 + $0x178] sm:$0xff]  ;;  %v468_v20 = vld [vmem:[%s3374_s27 + $0x160] sm:$0xff]  ;;  %v470_v21 = vld [vmem:[%s3374_s27 + $0x170] sm:$0xff]  ;;  %s2002_s15 = scvt.s32.f32 %s2000_s12  ;;  %s2721_s30 = smul.u32 224, %s3163_s21 }
  0x58   : > { %514 = vmatprep.subr.mxu0 %v477_v10  ;;  %627 = vmatprep.subr.mxu1 %v479_v11  ;;  %v465_v22 = vld [vmem:[%s3374_s27 + $0x148] sm:$0xff]  ;;  %v467_v23 = vld [vmem:[%s3374_s27 + $0x158] sm:$0xff]  ;;  %v464_v24 = vld [vmem:[%s3374_s27 + $0x140] sm:$0xff]  ;;  %s402_s22 = scalar_select %p401_p8, %s3163_s21, 1 }
  0x59   : > { %515 = vmatpush1.msra.mxu0 %v476_v12  ;;  %628 = vmatpush1.msra.mxu1 %v478_v13  ;;  %v466_v25 = vld [vmem:[%s3374_s27 + $0x150] sm:$0xff]  ;;  %v461_v26 = vld [vmem:[%s3374_s27 + $0x128] sm:$0xff]  ;;  %v463_v27 = vld [vmem:[%s3374_s27 + $0x138] sm:$0xff]  ;;  %s2641_s29 = sshll.u32 %s3369_s25, 6  ;;  %s2648_s28 = smul.u32 56, %s3163_s21 }
  0x5a   : > { %516 = vmatprep.subr.mxu0 %v473_v14  ;;  %629 = vmatprep.subr.mxu1 %v475_v15  ;;  %v460_v28 = vld [vmem:[%s3374_s27 + $0x120] sm:$0xff]  ;;  %v462_v29 = vld [vmem:[%s3374_s27 + $0x130] sm:$0xff]  ;;  %v457_v30 = vld [vmem:[%s3374_s27 + $0x108] sm:$0xff]  ;;  %s2642_s14 = sshll.u32 %s402_s22, 2  ;;  %s3870_s17 = scalar_lea.vmem [#allocation11], %s2641_s29 }
  0x5b   : > { %517 = vmatpush1.msra.mxu0 %v472_v16  ;;  %630 = vmatpush1.msra.mxu1 %v474_v17  ;;  %v459_v31 = vld [vmem:[%s3374_s27 + $0x118] sm:$0xff]  ;;  %v456_v32 = vld [vmem:[%s3374_s27 + $0x100] sm:$0xff]  ;;  %v458_v33 = vld [vmem:[%s3374_s27 + $0x110] sm:$0xff]  ;;  %s404_s24 = scalar_lea.vmem %s4602_s4, %s2642_s14  ;;  %s1225_s13 = smul.u32 3, %s3163_s21 }
  0x5c   : > { %518 = vmatprep.subr.mxu0 %v469_v18  ;;  %631 = vmatprep.subr.mxu1 %v471_v19  ;;  %v453_v34 = vld [vmem:[%s3374_s27 + $0xe8] sm:$0xff]  ;;  %v455_v35 = vld [vmem:[%s3374_s27 + $0xf8] sm:$0xff]  ;;  %v452_v36 = vld [vmem:[%s3374_s27 + $0xe0] sm:$0xff]  ;;  %s1805_s12 = smul.u32 4294967293, %s3163_s21  ;;  %p4848_p3 = scmp.ne.s32.totalorder %s4704_s6, 0 }
  0x5d   : > { %519 = vmatpush1.msra.mxu0 %v468_v20  ;;  %632 = vmatpush1.msra.mxu1 %v470_v21  ;;  %v454_v37 = vld [vmem:[%s3374_s27 + $0xf0] sm:$0xff]  ;;  %v449_v38 = vld [vmem:[%s3374_s27 + $0xc8] sm:$0xff]  ;;  %v451_v39 = vld [vmem:[%s3374_s27 + $0xd8] sm:$0xff]  ;;  %s2649_s29 = smul.u32 160, %s3163_s21 }
  0x5e   : > { %520 = vmatprep.subr.mxu0 %v465_v22  ;;  %633 = vmatprep.subr.mxu1 %v467_v23  ;;  %v448_v40 = vld [vmem:[%s3374_s27 + $0xc0] sm:$0xff]  ;;  %v450_v41 = vld [vmem:[%s3374_s27 + $0xd0] sm:$0xff]  ;;  %v445_v42 = vld [vmem:[%s3374_s27 + $0xa8] sm:$0xff]  ;;  %s1806_s26 = sadd.s32 5, %s1805_s12 }
  0x5f   : > { %521 = vmatpush1.msra.mxu0 %v464_v24  ;;  %634 = vmatpush1.msra.mxu1 %v466_v25  ;;  %v447_v43 = vld [vmem:[%s3374_s27 + $0xb8] sm:$0xff]  ;;  %v444_v44 = vld [vmem:[%s3374_s27 + $0xa0] sm:$0xff]  ;;  %v446_v45 = vld [vmem:[%s3374_s27 + $0xb0] sm:$0xff] }
  0x60   : > { %522 = vmatprep.subr.mxu0 %v461_v26  ;;  %635 = vmatprep.subr.mxu1 %v463_v27  ;;  %v441_v46 = vld [vmem:[%s3374_s27 + $0x88] sm:$0xff]  ;;  %v443_v47 = vld [vmem:[%s3374_s27 + $0x98] sm:$0xff]  ;;  %v440_v48 = vld [vmem:[%s3374_s27 + $0x80] sm:$0xff] }
  0x61   : > { %523 = vmatpush1.msra.mxu0 %v460_v28  ;;  %636 = vmatpush1.msra.mxu1 %v462_v29  ;;  %v442_v49 = vld [vmem:[%s3374_s27 + $0x90] sm:$0xff]  ;;  %v437_v50 = vld [vmem:[%s3374_s27 + $0x68] sm:$0xff]  ;;  %v439_v51 = vld [vmem:[%s3374_s27 + $0x78] sm:$0xff] }
  0x62   : > { %524 = vmatprep.subr.mxu0 %v457_v30  ;;  %637 = vmatprep.subr.mxu1 %v459_v31  ;;  %v436_v52 = vld [vmem:[%s3374_s27 + $0x60] sm:$0xff]  ;;  %v438_v53 = vld [vmem:[%s3374_s27 + $0x70] sm:$0xff]  ;;  %v433_v54 = vld [vmem:[%s3374_s27 + $0x48] sm:$0xff] }
  0x63   : > { %525 = vmatpush1.msra.mxu0 %v456_v32  ;;  %638 = vmatpush1.msra.mxu1 %v458_v33  ;;  %v435_v55 = vld [vmem:[%s3374_s27 + $0x58] sm:$0xff]  ;;  %v432_v56 = vld [vmem:[%s3374_s27 + $0x40] sm:$0xff]  ;;  %v434_v57 = vld [vmem:[%s3374_s27 + $0x50] sm:$0xff] }
  0x64   : > { %526 = vmatprep.subr.mxu0 %v453_v34  ;;  %639 = vmatprep.subr.mxu1 %v455_v35  ;;  %v429_v58 = vld [vmem:[%s3374_s27 + $0x28] sm:$0xff]  ;;  %v431_v59 = vld [vmem:[%s3374_s27 + $0x38] sm:$0xff]  ;;  %v428_v60 = vld [vmem:[%s3374_s27 + $0x20] sm:$0xff] }
  0x65   : > { %527 = vmatpush1.msra.mxu0 %v452_v36  ;;  %640 = vmatpush1.msra.mxu1 %v454_v37  ;;  %v430_v61 = vld [vmem:[%s3374_s27 + $0x30] sm:$0xff]  ;;  %v425_v62 = vld [vmem:[%s3374_s27 + $0x8] sm:$0xff]  ;;  %v427_v63 = vld [vmem:[%s3374_s27 + $0x18] sm:$0xff] }
  0x66   : > { %528 = vmatprep.subr.mxu0 %v449_v38  ;;  %641 = vmatprep.subr.mxu1 %v451_v39  ;;  %v424_v2 = vld [vmem:[%s3374_s27] sm:$0xff]  ;;  %v426_v3 = vld [vmem:[%s3374_s27 + $0x10] sm:$0xff]  ;;  %v3453_v5 = vld [vmem:[%s3450_s2 + $0x1e8] sm:$0xff]  ;;  %s1808_s27 = scvt.s32.f32 %s1806_s26 }
  0x67   : > { %529 = vmatpush1.msra.mxu0 %v448_v40  ;;  %642 = vmatpush1.msra.mxu1 %v450_v41  ;;  %v416_v4 = vld [vmem:[#allocation5] sm:$0xff]  ;;  %4714 = vst [vmem:[#allocation17_spill] sm:$0xff] %v3453_v5  ;;  %v3456_v6 = vld [vmem:[%s3450_s2 + $0x1f8] sm:$0xff]  ;;  %v3462_v8 = vld [vmem:[%s3450_s2 + $0x1f0] sm:$0xff] }
  0x68   : > { %530 = vmatprep.subr.mxu0 %v445_v42  ;;  %643 = vmatprep.subr.mxu1 %v447_v43  ;;  %4715 = vst [vmem:[#allocation18_spill] sm:$0xff] %v3456_v6  ;;  %v3459_v7 = vld [vmem:[%s3450_s2 + $0x1e0] sm:$0xff]  ;;  %v417_v9 = vld [vmem:[#allocation5 + $0x8] sm:$0xff]  ;;  %v3480_v13 = vld [vmem:[%s3450_s2 + $0x1d8] sm:$0xff] }
  0x69   : > { %531 = vmatpush1.msra.mxu0 %v444_v44  ;;  %644 = vmatpush1.msra.mxu1 %v446_v45  ;;  %v3468_v10 = vld [vmem:[%s3450_s2 + $0x1c8] sm:$0xff]  ;;  %v3473_v11 = vld [vmem:[%s3450_s2 + $0x1c0] sm:$0xff]  ;;  %v418_v14 = vld [vmem:[#allocation5 + $0x10] sm:$0xff] }
  0x6a   : > { %532 = vmatprep.subr.mxu0 %v441_v46  ;;  %645 = vmatprep.subr.mxu1 %v443_v47  ;;  %v3477_v12 = vld [vmem:[%s3450_s2 + $0x1a8] sm:$0xff]  ;;  %v3487_v15 = vld [vmem:[%s3450_s2 + $0x1a0] sm:$0xff]  ;;  %v3490_v16 = vld [vmem:[%s3450_s2 + $0x1d0] sm:$0xff] }
  0x6b   : > { %533 = vmatpush1.msra.mxu0 %v440_v48  ;;  %646 = vmatpush1.msra.mxu1 %v442_v49  ;;  %v3495_v17 = vld [vmem:[%s3450_s2 + $0x188] sm:$0xff]  ;;  %v3498_v18 = vld [vmem:[%s3450_s2 + $0x1b8] sm:$0xff]  ;;  %v3503_v19 = vld [vmem:[%s3450_s2 + $0x180] sm:$0xff] }
  0x6c   : > { %534 = vmatprep.subr.mxu0 %v437_v50  ;;  %647 = vmatprep.subr.mxu1 %v439_v51  ;;  %v3506_v20 = vld [vmem:[%s3450_s2 + $0x1b0] sm:$0xff]  ;;  %v419_v21 = vld [vmem:[#allocation5 + $0x18] sm:$0xff]  ;;  %v3513_v22 = vld [vmem:[%s3450_s2 + $0x168] sm:$0xff] }
  0x6d   : > { %535 = vmatpush1.msra.mxu0 %v436_v52  ;;  %648 = vmatpush1.msra.mxu1 %v438_v53  ;;  %v3516_v23 = vld [vmem:[%s3450_s2 + $0x198] sm:$0xff]  ;;  %v3521_v24 = vld [vmem:[%s3450_s2 + $0x160] sm:$0xff]  ;;  %v3524_v25 = vld [vmem:[%s3450_s2 + $0x190] sm:$0xff] }
  0x6e   : > { %536 = vmatprep.subr.mxu0 %v433_v54  ;;  %649 = vmatprep.subr.mxu1 %v435_v55  ;;  %v3527_v26 = vld [vmem:[%s3450_s2 + $0x148] sm:$0xff]  ;;  %v3530_v27 = vld [vmem:[%s3450_s2 + $0x178] sm:$0xff]  ;;  %v3537_v28 = vld [vmem:[%s3450_s2 + $0x140] sm:$0xff] }
  0x6f   : > { %537 = vmatpush1.msra.mxu0 %v432_v56  ;;  %650 = vmatpush1.msra.mxu1 %v434_v57  ;;  %v3540_v29 = vld [vmem:[%s3450_s2 + $0x170] sm:$0xff]  ;;  %v420_v30 = vld [vmem:[#allocation5 + $0x20] sm:$0xff]  ;;  %v3547_v31 = vld [vmem:[%s3450_s2 + $0x128] sm:$0xff] }
  0x70   : > { %538 = vmatprep.subr.mxu0 %v429_v58  ;;  %651 = vmatprep.subr.mxu1 %v431_v59  ;;  %v3550_v32 = vld [vmem:[%s3450_s2 + $0x158] sm:$0xff]  ;;  %v3555_v33 = vld [vmem:[%s3450_s2 + $0x120] sm:$0xff]  ;;  %v3558_v34 = vld [vmem:[%s3450_s2 + $0x150] sm:$0xff] }
  0x71   : > { %539 = vmatpush1.msra.mxu0 %v428_v60  ;;  %652 = vmatpush1.msra.mxu1 %v430_v61  ;;  %v3561_v35 = vld [vmem:[%s3450_s2 + $0x108] sm:$0xff]  ;;  %v3564_v36 = vld [vmem:[%s3450_s2 + $0x138] sm:$0xff]  ;;  %v3571_v37 = vld [vmem:[%s3450_s2 + $0x100] sm:$0xff] }
  0x72   : > { %540 = vmatprep.subr.mxu0 %v425_v62  ;;  %653 = vmatprep.subr.mxu1 %v427_v63  ;;  %v3574_v38 = vld [vmem:[%s3450_s2 + $0x130] sm:$0xff]  ;;  %v421_v39 = vld [vmem:[#allocation5 + $0x28] sm:$0xff]  ;;  %v3584_v41 = vld [vmem:[%s3450_s2 + $0x118] sm:$0xff] }
  0x73   : > { %541 = vmatpush1.msra.mxu0 %v424_v2  ;;  %654 = vmatpush1.msra.mxu1 %v426_v3  ;;  %v3581_v40 = vld [vmem:[%s3450_s2 + $0xe8] sm:$0xff]  ;;  %v3589_v42 = vld [vmem:[%s3450_s2 + $0xe0] sm:$0xff]  ;;  %v3592_v43 = vld [vmem:[%s3450_s2 + $0x110] sm:$0xff] }
  0x74   : > { %575 = vmatmul.mubr.f32.vlgmr.msra.gmra.mxu0 %v416_v4  ;;  %688 = vmatmul.mubr.f32.vlgmr.msra.gmra.mxu1 %v416_v4  ;;  %v3595_v44 = vld [vmem:[%s3450_s2 + $0xc8] sm:$0xff]  ;;  %v3598_v45 = vld [vmem:[%s3450_s2 + $0xf8] sm:$0xff]  ;;  %v3605_v46 = vld [vmem:[%s3450_s2 + $0xc0] sm:$0xff] }
  0x75   : > { %580 = vmatprep.mubr.f32.mxu0 %v4612_v0  ;;  %693 = vmatprep.mubr.f32.mxu1 %v4612_v0  ;;  %v3608_v47 = vld [vmem:[%s3450_s2 + $0xf0] sm:$0xff]  ;;  %v3615_v49 = vld [vmem:[%s3450_s2 + $0xa8] sm:$0xff]  ;;  %v3618_v50 = vld [vmem:[%s3450_s2 + $0xd8] sm:$0xff] }
  0x76   : > { %850 = vmatprep.subr.mxu0 %v3453_v5  ;;  %921 = vmatprep.subr.mxu1 %v3456_v6  ;;  %v422_v48 = vld [vmem:[#allocation5 + $0x30] sm:$0xff]  ;;  %v3623_v51 = vld [vmem:[%s3450_s2 + $0xa0] sm:$0xff]  ;;  %v3629_v53 = vld [vmem:[%s3450_s2 + $0x88] sm:$0xff] }
  0x77   : > { %851 = vmatpush1.msra.mxu0 %v3459_v7  ;;  %922 = vmatpush1.msra.mxu1 %v3462_v8  ;;  %v3626_v52 = vld [vmem:[%s3450_s2 + $0xd0] sm:$0xff]  ;;  %v3632_v54 = vld [vmem:[%s3450_s2 + $0xb8] sm:$0xff]  ;;  %v3641_v55 = vld [vmem:[%s3450_s2 + $0x80] sm:$0xff] }
  0x78   : > { %581 = vmatmul.mubr.f32.gmra.mxu0 %v417_v9  ;;  %694 = vmatmul.mubr.f32.gmra.mxu1 %v417_v9  ;;  %v3644_v56 = vld [vmem:[%s3450_s2 + $0xb0] sm:$0xff]  ;;  %v423_v57 = vld [vmem:[#allocation5 + $0x38] sm:$0xff]  ;;  %v3651_v58 = vld [vmem:[%s3450_s2 + $0x68] sm:$0xff] }
  0x79   : > { %852 = vmatprep.subr.mxu0 %v3468_v10  ;;  %586 = vmatprep.mubr.f32.mxu0 %v4612_v0  ;;  %4716 = vst [vmem:[#allocation19_spill] sm:$0xff] %v3651_v58  ;;  %v3654_v59 = vld [vmem:[%s3450_s2 + $0x98] sm:$0xff]  ;;  %v3661_v60 = vld [vmem:[%s3450_s2 + $0x60] sm:$0xff]  ;;  %v3664_v61 = vld [vmem:[%s3450_s2 + $0x90] sm:$0xff] }
  0x7a   : > { %699 = vmatprep.mubr.f32.mxu1 %v4612_v0  ;;  %853 = vmatpush1.msra.mxu0 %v3473_v11  ;;  %4717 = vst [vmem:[#allocation20_spill] sm:$0xff] %v3661_v60  ;;  %4718 = vst [vmem:[#allocation21_spill] sm:$0xff] %v3664_v61  ;;  %v3669_v62 = vld [vmem:[%s3450_s2 + $0x48] sm:$0xff]  ;;  %v3672_v63 = vld [vmem:[%s3450_s2 + $0x78] sm:$0xff] }
  0x7b   : > { %854 = vmatprep.subr.mxu0 %v3477_v12  ;;  %923 = vmatprep.subr.mxu1 %v3480_v13  ;;  %4719 = vst [vmem:[#allocation22_spill] sm:$0xff] %v3669_v62  ;;  %4720 = vst [vmem:[#allocation23_spill] sm:$0xff] %v3672_v63  ;;  %v3677_v2 = vld [vmem:[%s3450_s2 + $0x40] sm:$0xff]  ;;  %v3680_v3 = vld [vmem:[%s3450_s2 + $0x70] sm:$0xff] }
  0x7c   : > { %587 = vmatmul.mubr.f32.gmra.mxu0 %v418_v14  ;;  %700 = vmatmul.mubr.f32.gmra.mxu1 %v418_v14  ;;  %4721 = vst [vmem:[#allocation24_spill] sm:$0xff] %v3677_v2  ;;  %4722 = vst [vmem:[#allocation25_spill] sm:$0xff] %v3680_v3  ;;  %v3685_v4 = vld [vmem:[%s3450_s2 + $0x28] sm:$0xff]  ;;  %v3688_v9 = vld [vmem:[%s3450_s2 + $0x58] sm:$0xff] }
  0x7d   : > { %855 = vmatpush1.msra.mxu0 %v3487_v15  ;;  %924 = vmatpush1.msra.mxu1 %v3490_v16  ;;  %4723 = vst [vmem:[#allocation26_spill] sm:$0xff] %v3685_v4  ;;  %4724 = vst [vmem:[#allocation27_spill] sm:$0xff] %v3688_v9  ;;  %v3693_v14 = vld [vmem:[%s4598_s0] sm:$0xff]  ;;  %v3720_v1 = vld [vmem:[%s3450_s2] sm:$0xff] }
  0x7e   : > { %856 = vmatprep.subr.mxu0 %v3495_v17  ;;  %925 = vmatprep.subr.mxu1 %v3498_v18  ;;  %4725 = vst [vmem:[#allocation28_spill] sm:$0xff] %v3693_v14  ;;  %4730 = vst [vmem:[#allocation33_spill] sm:$0xff] %v3720_v1 }
  0x7f   : > { %592 = vmatprep.mubr.f32.mxu0 %v4612_v0  ;;  %705 = vmatprep.mubr.f32.mxu1 %v4612_v0 }
  0x80   : > { %857 = vmatpush1.msra.mxu0 %v3503_v19  ;;  %926 = vmatpush1.msra.mxu1 %v3506_v20 }
  0x81   : > { %593 = vmatmul.mubr.f32.gmra.mxu0 %v419_v21  ;;  %706 = vmatmul.mubr.f32.gmra.mxu1 %v419_v21  ;;  %v1016_v21 = vstv %s3656_s9  ;;  %s845_s9 = scalar_lea.vmem [#allocation4], %s2721_s30 }
  0x82   : > { %858 = vmatprep.subr.mxu0 %v3513_v22  ;;  %927 = vmatprep.subr.mxu1 %v3516_v23  ;;  %vm1017_vm0 = vcmp.gt.f32.partialorder %v3693_v14, %v1016_v21  ;;  %v3737_v21 = vld [vmem:[%s3450_s2 + $0x10] sm:$0xff] }
  0x83   : > { %859 = vmatpush1.msra.mxu0 %v3521_v24  ;;  %928 = vmatpush1.msra.mxu1 %v3524_v25  ;;  %4734 = vst [vmem:[#allocation36_spill] sm:$0xff] %v3737_v21 }
  0x84   : > { %860 = vmatprep.subr.mxu0 %v3527_v26  ;;  %929 = vmatprep.subr.mxu1 %v3530_v27 }
  0x85   : > { %598 = vmatprep.mubr.f32.mxu0 %v4612_v0  ;;  %711 = vmatprep.mubr.f32.mxu1 %v4612_v0 }
  0x86   : > { %861 = vmatpush1.msra.mxu0 %v3537_v28  ;;  %930 = vmatpush1.msra.mxu1 %v3540_v29 }
  0x87   : > { %599 = vmatmul.mubr.f32.gmra.mxu0 %v420_v30  ;;  %712 = vmatmul.mubr.f32.gmra.mxu1 %v420_v30  ;;  %v3700_v30 = vld [vmem:[%s3450_s2 + $0x20] sm:$0xff] }
  0x88   : > { %862 = vmatprep.subr.mxu0 %v3547_v31  ;;  %931 = vmatprep.subr.mxu1 %v3550_v32  ;;  %4726 = vst [vmem:[#allocation29_spill] sm:$0xff] %v3700_v30 }
  0x89   : > { %863 = vmatpush1.msra.mxu0 %v3555_v33  ;;  %932 = vmatpush1.msra.mxu1 %v3558_v34 }
  0x8a   : > { %864 = vmatprep.subr.mxu0 %v3561_v35  ;;  %933 = vmatprep.subr.mxu1 %v3564_v36 }
  0x8b   : > { %604 = vmatprep.mubr.f32.mxu0 %v4612_v0  ;;  %717 = vmatprep.mubr.f32.mxu1 %v4612_v0 }
  0x8c   : > { %865 = vmatpush1.msra.mxu0 %v3571_v37  ;;  %934 = vmatpush1.msra.mxu1 %v3574_v38 }
  0x8d   : > { %605 = vmatmul.mubr.f32.gmra.mxu0 %v421_v39  ;;  %718 = vmatmul.mubr.f32.gmra.mxu1 %v421_v39  ;;  %v3703_v39 = vld [vmem:[%s3450_s2 + $0x50] sm:$0xff] }
  0x8e   : > { %866 = vmatprep.subr.mxu0 %v3581_v40  ;;  %935 = vmatprep.subr.mxu1 %v3584_v41  ;;  %4727 = vst [vmem:[#allocation30_spill] sm:$0xff] %v3703_v39 }
  0x8f   : > { %867 = vmatpush1.msra.mxu0 %v3589_v42  ;;  %936 = vmatpush1.msra.mxu1 %v3592_v43 }
  0x90   : > { %868 = vmatprep.subr.mxu0 %v3595_v44  ;;  %937 = vmatprep.subr.mxu1 %v3598_v45 }
  0x91   : > { %610 = vmatprep.mubr.f32.mxu0 %v4612_v0  ;;  %723 = vmatprep.mubr.f32.mxu1 %v4612_v0 }
  0x92   : > { %869 = vmatpush1.msra.mxu0 %v3605_v46  ;;  %938 = vmatpush1.msra.mxu1 %v3608_v47 }
  0x93   : > { %611 = vmatmul.mubr.f32.gmra.mxu0 %v422_v48  ;;  %724 = vmatmul.mubr.f32.gmra.mxu1 %v422_v48  ;;  %v3712_v48 = vld [vmem:[%s3450_s2 + $0x8] sm:$0xff] }
  0x94   : > { %870 = vmatprep.subr.mxu0 %v3615_v49  ;;  %939 = vmatprep.subr.mxu1 %v3618_v50  ;;  %4728 = vst [vmem:[#allocation31_spill] sm:$0xff] %v3712_v48 }
  0x95   : > { %871 = vmatpush1.msra.mxu0 %v3623_v51  ;;  %940 = vmatpush1.msra.mxu1 %v3626_v52 }
  0x96   : > { %872 = vmatprep.subr.mxu0 %v3629_v53  ;;  %941 = vmatprep.subr.mxu1 %v3632_v54 }
  0x97   : > { %616 = vmatprep.mubr.f32.mxu0 %v4612_v0  ;;  %729 = vmatprep.mubr.f32.mxu1 %v4612_v0  ;;  %v3726_v0 = vld [vmem:[%s3450_s2 + $0x30] sm:$0xff] }
  0x98   : > { %873 = vmatpush1.msra.mxu0 %v3641_v55  ;;  %942 = vmatpush1.msra.mxu1 %v3644_v56  ;;  %4731 = vst [vmem:[#allocation34_spill] sm:$0xff] %v3726_v0 }
  0x99   : > { %617 = vmatmul.mubr.f32.gmra.mxu0 %v423_v57  ;;  %730 = vmatmul.mubr.f32.gmra.mxu1 %v423_v57  ;;  %v3715_v57 = vld [vmem:[%s3450_s2 + $0x38] sm:$0xff] }
  0x9a   : > { %874 = vmatprep.subr.mxu0 %v3651_v58  ;;  %943 = vmatprep.subr.mxu1 %v3654_v59  ;;  %4729 = vst [vmem:[#allocation32_spill] sm:$0xff] %v3715_v57 }
  0x9b   : > { %875 = vmatpush1.msra.mxu0 %v3661_v60  ;;  %944 = vmatpush1.msra.mxu1 %v3664_v61 }
  0x9c   : > { %876 = vmatprep.subr.mxu0 %v3669_v62  ;;  %945 = vmatprep.subr.mxu1 %v3672_v63  ;;  %v3732_v62 = vld [vmem:[%s3450_s2 + $0x18] sm:$0xff] }
  0x9d   : > { %877 = vmatpush1.msra.mxu0 %v3677_v2  ;;  %946 = vmatpush1.msra.mxu1 %v3680_v3  ;;  %v1210_v2 = vstv %s1034_s16  ;;  %4732 = vst [vmem:[#allocation35_spill] sm:$0xff] %v3732_v62  ;;  %s1029_s16 = scalar_lea.vmem %s3870_s17, %s2648_s28 [#allocation11]  ;;  %s2496_s28 = scalar_lea.vmem [#allocation4], %s2649_s29 }
  0x9e   : > { %878 = vmatprep.subr.mxu0 %v3685_v4  ;;  %947 = vmatprep.subr.mxu1 %v3688_v9  ;;  %v4733_v4 = vmov 0.0   ;;  %vm1211_vm1 = vcmp.gt.f32.partialorder %v3693_v14, %v1210_v2  ;;  %v2178_v2 = vstv %s2002_s15  ;;  %s1226_s15 = sadd.s32 2, %s1225_s13 }
  0x9f   : > { %879 = vmatpush1.msra.mxu0 %v3700_v30  ;;  %948 = vmatpush1.msra.mxu1 %v3703_v39  ;;  %v4735_v30 = vmov 0   ;;  %vm2179_vm3 = vcmp.gt.f32.partialorder %v3693_v14, %v2178_v2  ;;  %v4737_v2 = vld [vmem:[#allocation27_spill] sm:$0xff]  ;;  %s1228_s14 = scvt.s32.f32 %s1226_s15  ;;  %s2667_s15 = smul.u32 24, %s3163_s21 }
  0xa0   : > { %880 = vmatprep.subr.mxu0 %v3712_v48  ;;  %949 = vmatprep.subr.mxu1 %v3715_v57  ;;  %v1018_v9 = vsel %vm1017_vm0, 1, %v4735_v30  ;;  %v1790_v48 = vstv %s1614_s11  ;;  %s1419_s11 = sadd.s32 3, %s3163_s21 }
  0xa1   : > { %881 = vmatpush1.msra.mxu0 %v3720_v1  ;;  %914 = vmatprep.mubr.f32.mxu0 %v4733_v4  ;;  %v1212_v1 = vsel %vm1211_vm1, 1, %v4735_v30  ;;  %vm1791_vm2 = vcmp.gt.f32.partialorder %v3693_v14, %v1790_v48  ;;  %v4736_v48 = vld [vmem:[#allocation22_spill] sm:$0xff]  ;;  %v4741_v14 = vld [vmem:[#allocation31_spill] sm:$0xff]  ;;  %s1421_s22 = scvt.s32.f32 %s1419_s11  ;;  %s2659_s11 = smul.u32 96, %s3163_s21 }
  0xa2   : > { %950 = vmatpush1.msra.mxu1 %v3726_v0  ;;  %915 = vmatmul.mubr.f32.vlgmr.msra.gmra.mxu0 %v4733_v4 }
  0xa3   : > { %951 = vmatprep.subr.mxu1 %v3732_v62  ;;  %985 = vmatprep.mubr.f32.mxu1 %v4733_v4  ;;  %s2504_s12 = scalar_lea.vmem [#allocation4], %s2659_s11  ;;  %s2695_s11 = smul.u32 4294967136, %s3163_s21 }
  0xa4   : > { %952 = vmatpush1.msra.mxu1 %v3737_v21  ;;  %1020 = vperm.xlu0 %2811, %v1018_v9   ;;  %v1792_v9 = vsel %vm1791_vm2, 1, %v4735_v30 }
  0xa5   : > { %986 = vmatmul.mubr.f32.vlgmr.msra.gmra.mxu1 %v4733_v4  ;;  %1044 = vmatprep.subr.mxu0 %v3453_v5 }
  0xa6   : > { %1115 = vmatprep.subr.mxu1 %v3456_v6  ;;  %1045 = vmatpush1.msra.mxu0 %v3459_v7 }
  0xa7   : > { %1116 = vmatpush1.msra.mxu1 %v3462_v8  ;;  %1046 = vmatprep.subr.mxu0 %v3468_v10 }
  0xa8   : > { %1214 = vperm.xlu0 %2811, %v1212_v1   ;;  %1117 = vmatprep.subr.mxu1 %v3480_v13  ;;  %v2180_v1 = vsel %vm2179_vm3, 1, %v4735_v30  ;;  %v4740_v30 = vld [vmem:[#allocation29_spill] sm:$0xff] }
  0xa9   : > { %1047 = vmatpush1.msra.mxu0 %v3473_v11  ;;  %1118 = vmatpush1.msra.mxu1 %v3490_v16 }
  0xaa   : > { %1048 = vmatprep.subr.mxu0 %v3477_v12  ;;  %1119 = vmatprep.subr.mxu1 %v3498_v18 }
  0xab   : > { %1049 = vmatpush1.msra.mxu0 %v3487_v15  ;;  %1120 = vmatpush1.msra.mxu1 %v3506_v20 }
  0xac   : > { %1794 = vperm.xlu0 %2811, %v1792_v9   ;;  %1050 = vmatprep.subr.mxu0 %v3495_v17  ;;  %v4738_v9 = vld [vmem:[#allocation24_spill] sm:$0xff] }
  0xad   : > { %1121 = vmatprep.subr.mxu1 %v3516_v23  ;;  %1051 = vmatpush1.msra.mxu0 %v3503_v19 }
  0xae   : > { %1122 = vmatpush1.msra.mxu1 %v3524_v25  ;;  %1052 = vmatprep.subr.mxu0 %v3513_v22 }
  0xaf   : > { %1123 = vmatprep.subr.mxu1 %v3530_v27  ;;  %1053 = vmatpush1.msra.mxu0 %v3521_v24 }
  0xb0   : > { %2182 = vperm.xlu0 %2811, %v2180_v1   ;;  %1124 = vmatpush1.msra.mxu1 %v3540_v29  ;;  %v4739_v1 = vld [vmem:[#allocation26_spill] sm:$0xff] }
  0xb1   : > { %1054 = vmatprep.subr.mxu0 %v3527_v26  ;;  %1125 = vmatprep.subr.mxu1 %v3550_v32 }
  0xb2   : > { %1055 = vmatpush1.msra.mxu0 %v3537_v28  ;;  %1126 = vmatpush1.msra.mxu1 %v3558_v34 }
  0xb3   : > { %1056 = vmatprep.subr.mxu0 %v3547_v31  ;;  %1127 = vmatprep.subr.mxu1 %v3564_v36 }
  0xb4   : > { %1057 = vmatpush1.msra.mxu0 %v3555_v33  ;;  %1128 = vmatpush1.msra.mxu1 %v3574_v38 }
  0xb5   : > { %1058 = vmatprep.subr.mxu0 %v3561_v35  ;;  %1129 = vmatprep.subr.mxu1 %v3584_v41 }
  0xb6   : > { %1059 = vmatpush1.msra.mxu0 %v3571_v37  ;;  %1130 = vmatpush1.msra.mxu1 %v3592_v43 }
  0xb7   : > { %1060 = vmatprep.subr.mxu0 %v3581_v40  ;;  %1131 = vmatprep.subr.mxu1 %v3598_v45 }
  0xb8   : > { %1061 = vmatpush1.msra.mxu0 %v3589_v42  ;;  %1132 = vmatpush1.msra.mxu1 %v3608_v47 }
  0xb9   : > { %1062 = vmatprep.subr.mxu0 %v3595_v44  ;;  %1133 = vmatprep.subr.mxu1 %v3618_v50 }
  0xba   : > { %1063 = vmatpush1.msra.mxu0 %v3605_v46  ;;  %1134 = vmatpush1.msra.mxu1 %v3626_v52 }
  0xbb   : > { %1064 = vmatprep.subr.mxu0 %v3615_v49  ;;  %1135 = vmatprep.subr.mxu1 %v3632_v54 }
  0xbc   : > { %1065 = vmatpush1.msra.mxu0 %v3623_v51  ;;  %1136 = vmatpush1.msra.mxu1 %v3644_v56 }
  0xbd   : > { %1066 = vmatprep.subr.mxu0 %v3629_v53  ;;  %1137 = vmatprep.subr.mxu1 %v3654_v59 }
  0xbe   : > { %1067 = vmatpush1.msra.mxu0 %v3641_v55  ;;  %1138 = vmatpush1.msra.mxu1 %v3664_v61 }
  0xbf   : > { %1068 = vmatprep.subr.mxu0 %v3651_v58  ;;  %1139 = vmatprep.subr.mxu1 %v3672_v63 }
  0xc0   : > { %1069 = vmatpush1.msra.mxu0 %v3661_v60  ;;  %1140 = vmatpush1.msra.mxu1 %v3680_v3 }
  0xc1   : > { %1070 = vmatprep.subr.mxu0 %v4736_v48  ;;  %1141 = vmatprep.subr.mxu1 %v4737_v2  ;;  %v4742_v48 = vld [vmem:[#allocation33_spill] sm:$0xff] }
  0xc2   : > { %1071 = vmatpush1.msra.mxu0 %v4738_v9  ;;  %1142 = vmatpush1.msra.mxu1 %v3703_v39 }
  0xc3   : > { %1072 = vmatprep.subr.mxu0 %v4739_v1  ;;  %1143 = vmatprep.subr.mxu1 %v3715_v57 }
  0xc4   : > { %1073 = vmatpush1.msra.mxu0 %v4740_v30  ;;  %1144 = vmatpush1.msra.mxu1 %v3726_v0  ;;  %v490_v30 = vlaneseq }
  0xc5   : > { %1074 = vmatprep.subr.mxu0 %v4741_v14  ;;  %1145 = vmatprep.subr.mxu1 %v3732_v62  ;;  %v488_v14 = vld [vmem:[%s404_s24] sm:$0xf]  ;;  %s2193_s24 = smul.u32 4294967289, %s3163_s21 }
  0xc6   : > { %1075 = vmatpush1.msra.mxu0 %v4742_v48  ;;  %1108 = vmatprep.mubr.f32.mxu0 %v4733_v4  ;;  %v491_v0 = vshrl.u32 %v490_v30, 7 }
  0xc7   : > { %1146 = vmatpush1.msra.mxu1 %v3737_v21  ;;  %1179 = vmatprep.mubr.f32.mxu1 %v4733_v4  ;;  %s2194_s30 = sadd.s32 7, %s2193_s24  ;;  %s2722_s24 = sshll.u32 %s3706_s10, 5 }
  0xc8   : > { %1238 = vmatprep.subr.mxu0 %v3453_v5  ;;  %1309 = vmatprep.subr.mxu1 %v3456_v6  ;;  %v492_v48 = vsub.s32 0, %v491_v0  ;;  %v500_v62 = vsub.s32 2, %v491_v0  ;;  %v496_v57 = vsub.s32 1, %v491_v0  ;;  %v504_v21 = vsub.s32 3, %v491_v0 }
  0xca   : > { %v3825_v1 = vrot.slane %v488_v14, %v492_v48  ;;  %v3827_v4 = vrot.slane %v488_v14, %v500_v62  ;;  %v3829_v5 = vrot.slane %v488_v14, %v496_v57  ;;  %v3831_v6 = vrot.slane %v488_v14, %v504_v21 }
 0x134   : > { %v576_v39 = vpop.f32.mrf.mxu0  ;;  %v689_v9 = vpop.f32.mrf.mxu1 }
 0x135   : > { %v577_v30 = vadd.f32 %v576_v39, %v3825_v1  ;;  %v690_v2 = vadd.f32 %v689_v9, %v3827_v4 }
 0x136   : > { %v578_v3 = vpop.f32.mrf.mxu0  ;;  %v691_v60 = vpop.f32.mrf.mxu1 }
 0x137   : > { %736 = vst [vmem:[#allocation4] sm:$0xff] %v577_v30  ;;  %738 = vst [vmem:[#allocation4 + $0x10] sm:$0xff] %v690_v2  ;;  %v579_v0 = vadd.f32 %v578_v3, %v3829_v5  ;;  %v692_v48 = vadd.f32 %v691_v60, %v3831_v6 }
 0x138   : > { %v582_v62 = vpop.f32.mrf.mxu0  ;;  %v695_v63 = vpop.f32.mrf.mxu1 }
 0x139   : > { %737 = vst [vmem:[#allocation4 + $0x8] sm:$0xff] %v579_v0  ;;  %739 = vst [vmem:[#allocation4 + $0x18] sm:$0xff] %v692_v48  ;;  %v583_v14 = vadd.f32 %v582_v62, %v3825_v1  ;;  %v696_v57 = vadd.f32 %v695_v63, %v3827_v4 }
 0x13a   : > { %v584_v21 = vpop.f32.mrf.mxu0  ;;  %v697_v39 = vpop.f32.mrf.mxu1 }
 0x13b   : > { %740 = vst [vmem:[#allocation4 + $0x20] sm:$0xff] %v583_v14  ;;  %742 = vst [vmem:[#allocation4 + $0x30] sm:$0xff] %v696_v57  ;;  %v585_v9 = vadd.f32 %v584_v21, %v3829_v5  ;;  %v698_v2 = vadd.f32 %v697_v39, %v3831_v6 }
 0x13c   : > { %v588_v30 = vpop.f32.mrf.mxu0  ;;  %v701_v3 = vpop.f32.mrf.mxu1 }
 0x13d   : > { %741 = vst [vmem:[#allocation4 + $0x28] sm:$0xff] %v585_v9  ;;  %743 = vst [vmem:[#allocation4 + $0x38] sm:$0xff] %v698_v2  ;;  %v589_v60 = vadd.f32 %v588_v30, %v3825_v1  ;;  %v702_v0 = vadd.f32 %v701_v3, %v3827_v4 }
 0x13e   : > { %v590_v48 = vpop.f32.mrf.mxu0  ;;  %v703_v62 = vpop.f32.mrf.mxu1 }
 0x13f   : > { %744 = vst [vmem:[#allocation4 + $0x40] sm:$0xff] %v589_v60  ;;  %746 = vst [vmem:[#allocation4 + $0x50] sm:$0xff] %v702_v0  ;;  %v591_v63 = vadd.f32 %v590_v48, %v3829_v5  ;;  %v704_v14 = vadd.f32 %v703_v62, %v3831_v6 }
 0x141   : > { %745 = vst [vmem:[#allocation4 + $0x48] sm:$0xff] %v591_v63  ;;  %747 = vst [vmem:[#allocation4 + $0x58] sm:$0xff] %v704_v14  ;;  %v594_v57 = vpop.f32.mrf.mxu0  ;;  %v707_v21 = vpop.f32.mrf.mxu1 }
 0x142   : > { %v595_v39 = vadd.f32 %v594_v57, %v3825_v1  ;;  %v708_v9 = vadd.f32 %v707_v21, %v3827_v4 }
 0x143   : > { %v596_v2 = vpop.f32.mrf.mxu0  ;;  %v709_v30 = vpop.f32.mrf.mxu1 }
 0x144   : > { %748 = vst [vmem:[#allocation4 + $0x60] sm:$0xff] %v595_v39  ;;  %750 = vst [vmem:[#allocation4 + $0x70] sm:$0xff] %v708_v9  ;;  %v597_v3 = vadd.f32 %v596_v2, %v3829_v5  ;;  %v710_v60 = vadd.f32 %v709_v30, %v3831_v6 }
 0x146   : > { %749 = vst [vmem:[#allocation4 + $0x68] sm:$0xff] %v597_v3  ;;  %751 = vst [vmem:[#allocation4 + $0x78] sm:$0xff] %v710_v60 }
 0x147   : > { %v600_v0 = vpop.f32.mrf.mxu0  ;;  %v713_v48 = vpop.f32.mrf.mxu1 }
 0x148   : > { %v601_v62 = vadd.f32 %v600_v0, %v3825_v1  ;;  %v714_v63 = vadd.f32 %v713_v48, %v3827_v4 }
 0x149   : > { %v602_v14 = vpop.f32.mrf.mxu0  ;;  %v715_v57 = vpop.f32.mrf.mxu1 }
 0x14a   : > { %752 = vst [vmem:[#allocation4 + $0x80] sm:$0xff] %v601_v62  ;;  %754 = vst [vmem:[#allocation4 + $0x90] sm:$0xff] %v714_v63  ;;  %v603_v21 = vadd.f32 %v602_v14, %v3829_v5  ;;  %v716_v39 = vadd.f32 %v715_v57, %v3831_v6 }
 0x14c   : > { %753 = vst [vmem:[#allocation4 + $0x88] sm:$0xff] %v603_v21  ;;  %755 = vst [vmem:[#allocation4 + $0x98] sm:$0xff] %v716_v39 }
 0x14d   : > { %v606_v9 = vpop.f32.mrf.mxu0  ;;  %v719_v2 = vpop.f32.mrf.mxu1 }
 0x14e   : > { %v607_v30 = vadd.f32 %v606_v9, %v3825_v1  ;;  %v720_v3 = vadd.f32 %v719_v2, %v3827_v4 }
 0x14f   : > { %v608_v60 = vpop.f32.mrf.mxu0  ;;  %v721_v0 = vpop.f32.mrf.mxu1 }
 0x150   : > { %756 = vst [vmem:[#allocation4 + $0xa0] sm:$0xff] %v607_v30  ;;  %758 = vst [vmem:[#allocation4 + $0xb0] sm:$0xff] %v720_v3  ;;  %v609_v48 = vadd.f32 %v608_v60, %v3829_v5  ;;  %v722_v62 = vadd.f32 %v721_v0, %v3831_v6 }
 0x152   : > { %757 = vst [vmem:[#allocation4 + $0xa8] sm:$0xff] %v609_v48  ;;  %759 = vst [vmem:[#allocation4 + $0xb8] sm:$0xff] %v722_v62 }
 0x153   : > { %v612_v63 = vpop.f32.mrf.mxu0  ;;  %v725_v14 = vpop.f32.mrf.mxu1 }
 0x154   : > { %v613_v57 = vadd.f32 %v612_v63, %v3825_v1  ;;  %v726_v21 = vadd.f32 %v725_v14, %v3827_v4 }
 0x155   : > { %v614_v39 = vpop.f32.mrf.mxu0  ;;  %v727_v9 = vpop.f32.mrf.mxu1 }
 0x156   : > { %760 = vst [vmem:[#allocation4 + $0xc0] sm:$0xff] %v613_v57  ;;  %762 = vst [vmem:[#allocation4 + $0xd0] sm:$0xff] %v726_v21  ;;  %v615_v2 = vadd.f32 %v614_v39, %v3829_v5  ;;  %v728_v30 = vadd.f32 %v727_v9, %v3831_v6 }
 0x158   : > { %761 = vst [vmem:[#allocation4 + $0xc8] sm:$0xff] %v615_v2  ;;  %763 = vst [vmem:[#allocation4 + $0xd8] sm:$0xff] %v728_v30 }
 0x159   : > { %v618_v3 = vpop.f32.mrf.mxu0  ;;  %v731_v60 = vpop.f32.mrf.mxu1 }
 0x15a   : > { %v619_v0 = vadd.f32 %v618_v3, %v3825_v1  ;;  %v732_v48 = vadd.f32 %v731_v60, %v3827_v4 }
 0x15b   : > { %v620_v62 = vpop.f32.mrf.mxu0  ;;  %v733_v63 = vpop.f32.mrf.mxu1 }
 0x15c   : > { %764 = vst [vmem:[#allocation4 + $0xe0] sm:$0xff] %v619_v0  ;;  %766 = vst [vmem:[#allocation4 + $0xf0] sm:$0xff] %v732_v48  ;;  %v621_v14 = vadd.f32 %v620_v62, %v3829_v5  ;;  %v734_v57 = vadd.f32 %v733_v63, %v3831_v6 }
 0x15e   : > { %765 = vst [vmem:[#allocation4 + $0xe8] sm:$0xff] %v621_v14  ;;  %767 = vst [vmem:[#allocation4 + $0xf8] sm:$0xff] %v734_v57 }
 0x162   : > { %v916_v21 = vpop.f32.mrf.mxu0 }
 0x164   : > { %v918_v2 = vpop.f32.mrf.mxu0 }
 0x165   : > { %v846_v39 = vld [vmem:[%s845_s9] sm:$0xff]  ;;  %v847_v9 = vld [vmem:[%s845_s9 + $0x8] sm:$0xff]  ;;  %v987_v60 = vpop.f32.mrf.mxu1  ;;  %v849_v0 = vld [vmem:[%s845_s9 + $0x18] sm:$0xff] }
 0x166   : > { %v917_v30 = vadd.f32 %v916_v21, %v846_v39  ;;  %v919_v1 = vadd.f32 %v918_v2, %v847_v9  ;;  %v848_v62 = vld [vmem:[%s845_s9 + $0x10] sm:$0xff]  ;;  %v1021_v2 = vpop.permute.xlu0 %1020  ;;  %s2196_s9 = scvt.s32.f32 %s2194_s30  ;;  %s1619_s30 = scalar_lea.vmem [#allocation4], %s2722_s24 }
 0x167   : > { %v989_v48 = vpop.f32.mrf.mxu1  ;;  %v988_v63 = vadd.f32 %v987_v60, %v848_v62  ;;  %vm1022_vm4 = vcmp.eq.s32.totalorder %v1021_v2, 1  ;;  %v2653_v2 = vld [vmem:[%s2496_s28 + $0x38] sm:$0xff]  ;;  %s2716_s24 = sshll.u32 %s3163_s21, 7 }
 0x168   : > { %v2645_v3 = vmul.f32 -1.442695, %v917_v30  ;;  %v2646_v4 = vmul.f32 -1.442695, %v919_v1  ;;  %v990_v5 = vadd.f32 %v989_v48, %v849_v0 }
 0x16a   : > { %2813 = vpow2.f32 %v2645_v3  ;;  %v2647_v6 = vmul.f32 -1.442695, %v990_v5 }
 0x16b   : > { %2815 = vpow2.f32 %v2646_v4 }
 0x16c   : > { %2817 = vpow2.f32 %v2647_v6  ;;  %v2651_v6 = vld [vmem:[%s2496_s28 + $0x28] sm:$0xff] }
 0x16d   : > { %2819 = vtanh.f32 %v988_v63 }
 0x177   : > { %v2814_v14 = vpop.eup %2813 }
 0x178   : > { %v2816_v57 = vpop.eup %2815  ;;  %v995_v58 = vadd.f32 1.0, %v2814_v14 }
 0x179   : > { %v1001_v61 = vadd.f32 1.0, %v2816_v57  ;;  %v2818_v21 = vpop.eup %2817 }
 0x17a   : > { %2821 = vrcp.f32 %v995_v58  ;;  %v2820_v39 = vpop.eup %2819  ;;  %v1008_v1 = vadd.f32 1.0, %v2818_v21 }
 0x17b   : > { %2823 = vrcp.f32 %v1001_v61 }
 0x17c   : > { %2825 = vrcp.f32 %v1008_v1 }
 0x187   : > { %v2822_v9 = vpop.eup %2821 }
 0x188   : > { %v2824_v30 = vpop.eup %2823  ;;  %v1012_v3 = vmul.f32 %v2822_v9, %v2820_v39 }
 0x189   : > { %v1011_v4 = vmul.f32 0.0, %v2824_v30  ;;  %v2826_v48 = vpop.eup %2825 }
 0x18b   : > { %v1013_v60 = vadd.f32 %v1012_v3, %v1011_v4  ;;  %v2652_v3 = vld [vmem:[%s2496_s28 + $0x30] sm:$0xff] }
 0x18d   : > { %2827 = vtanh.f32 %v1013_v60  ;;  %v3866_v0 = vsel %vm1022_vm4, %v1013_v60, 0.0 }
 0x19a   : > { %v2828_v58 = vpop.eup %2827 }
 0x19b   : > { %v1015_v61 = vmul.f32 %v2828_v58, %v2826_v48 }
 0x19d   : > { %v3873_v5 = vsel %vm1022_vm4, %v1015_v61, 0.0  ;;  %2723 = vmatmul.mubr.msk.f32.vlgmr.msra.gmra.mxu0 %vm1022_vm4, %v1015_v61  ;;  %2724 = vmatmul.mubr.msk.f32.vlgmr.msra.gmra.mxu1 %vm1022_vm4, %v1015_v61 }
 0x19e   : > { %1030 = vst [vmem:[%s1029_s16] sm:$0xff] %v3873_v5  ;;  %1239 = vmatpush1.msra.mxu0 %v3459_v7  ;;  %1310 = vmatpush1.msra.mxu1 %v3462_v8  ;;  %v4743_v7 = vld [vmem:[#allocation21_spill] sm:$0xff]  ;;  %v4744_v8 = vld [vmem:[#allocation19_spill] sm:$0xff]  ;;  %s2657_s16 = smul.u32 40, %s3163_s21 }
 0x19f   : > { %1240 = vmatprep.subr.mxu0 %v3468_v10  ;;  %1311 = vmatprep.subr.mxu1 %v3480_v13  ;;  %v4745_v10 = vld [vmem:[#allocation23_spill] sm:$0xff]  ;;  %v4748_v13 = vld [vmem:[#allocation22_spill] sm:$0xff] }
 0x1a0   : > { %1241 = vmatpush1.msra.mxu0 %v3473_v11  ;;  %1312 = vmatpush1.msra.mxu1 %v3490_v16  ;;  %v4746_v11 = vld [vmem:[#allocation20_spill] sm:$0xff]  ;;  %s2500_s13 = scalar_lea.vmem %s3870_s17, %s2657_s16 [#allocation11]  ;;  %s2693_s16 = smul.u32 4294967272, %s3163_s21 }
 0x1a1   : > { %1242 = vmatprep.subr.mxu0 %v3477_v12  ;;  %1313 = vmatprep.subr.mxu1 %v3498_v18  ;;  %v4747_v12 = vld [vmem:[#allocation25_spill] sm:$0xff]  ;;  %v4750_v16 = vld [vmem:[#allocation24_spill] sm:$0xff]  ;;  %v4752_v18 = vld [vmem:[#allocation26_spill] sm:$0xff] }
 0x1a2   : > { %1243 = vmatpush1.msra.mxu0 %v3487_v15  ;;  %1314 = vmatpush1.msra.mxu1 %v3506_v20  ;;  %v4749_v15 = vld [vmem:[#allocation27_spill] sm:$0xff]  ;;  %v4754_v20 = vld [vmem:[#allocation29_spill] sm:$0xff] }
 0x1a3   : > { %1244 = vmatprep.subr.mxu0 %v3495_v17  ;;  %1315 = vmatprep.subr.mxu1 %v3516_v23  ;;  %v4751_v17 = vld [vmem:[#allocation30_spill] sm:$0xff]  ;;  %v4756_v23 = vld [vmem:[#allocation31_spill] sm:$0xff] }
 0x1a4   : > { %1245 = vmatpush1.msra.mxu0 %v3503_v19  ;;  %1316 = vmatpush1.msra.mxu1 %v3524_v25  ;;  %v4753_v19 = vld [vmem:[#allocation32_spill] sm:$0xff]  ;;  %v4758_v25 = vld [vmem:[#allocation33_spill] sm:$0xff] }
 0x1a5   : > { %1246 = vmatprep.subr.mxu0 %v3513_v22  ;;  %1317 = vmatprep.subr.mxu1 %v3530_v27  ;;  %v4755_v22 = vld [vmem:[#allocation34_spill] sm:$0xff]  ;;  %v4760_v27 = vld [vmem:[#allocation36_spill] sm:$0xff] }
 0x1a6   : > { %1247 = vmatpush1.msra.mxu0 %v3521_v24  ;;  %1318 = vmatpush1.msra.mxu1 %v3540_v29  ;;  %v4757_v24 = vld [vmem:[#allocation35_spill] sm:$0xff]  ;;  %v4762_v29 = vld [vmem:[#allocation18_spill] sm:$0xff] }
 0x1a7   : > { %1248 = vmatprep.subr.mxu0 %v3527_v26  ;;  %1319 = vmatprep.subr.mxu1 %v3550_v32  ;;  %v4759_v26 = vmov 0.0   ;;  %v1404_v32 = vstv %s1228_s14  ;;  %s2669_s14 = sshll.u32 %s3163_s21, 5 }
 0x1a8   : > { %1249 = vmatpush1.msra.mxu0 %v3537_v28  ;;  %1320 = vmatpush1.msra.mxu1 %v3558_v34  ;;  %v4761_v28 = vld [vmem:[#allocation17_spill] sm:$0xff]  ;;  %v4764_v34 = vmov 0   ;;  %s2511_s26 = scalar_lea.vmem [#allocation4], %s2669_s14  ;;  %s2705_s14 = smul.u32 4294967072, %s3163_s21 }
 0x1a9   : > { %1250 = vmatprep.subr.mxu0 %v3547_v31  ;;  %1321 = vmatprep.subr.mxu1 %v3564_v36  ;;  %v1597_v31 = vstv %s1421_s22  ;;  %v1984_v36 = vstv %s1808_s27  ;;  %s2508_s22 = scalar_lea.vmem %s3870_s17, %s2667_s15 [#allocation11]  ;;  %s2703_s15 = smul.u32 4294967256, %s3163_s21 }
 0x1aa   : > { %1251 = vmatpush1.msra.mxu0 %v3555_v33  ;;  %1322 = vmatpush1.msra.mxu1 %v3574_v38  ;;  %v4763_v33 = vld [vmem:[#allocation28_spill] sm:$0xff]  ;;  %v2372_v38 = vstv %s2196_s9  ;;  %s2684_s9 = sshll.u32 %s3706_s10, 3  ;;  %s2685_s10 = smul.u32 4294967200, %s3163_s21 }
 0x1ab   : > { %1252 = vmatprep.subr.mxu0 %v3561_v35  ;;  %1323 = vmatprep.subr.mxu1 %v3584_v41  ;;  %vm1405_vm5 = vcmp.gt.f32.partialorder %v4763_v33, %v1404_v32  ;;  %vm1598_vm6 = vcmp.gt.f32.partialorder %v4763_v33, %v1597_v31  ;;  %vm1985_vm7 = vcmp.gt.f32.partialorder %v4763_v33, %v1984_v36  ;;  %v1215_v36 = vpop.permute.xlu0 %1214  ;;  %s1803_s29 = scalar_lea.vmem %s3870_s17, %s2684_s9 [#allocation11] }
 0x1ac   : > { %1253 = vmatpush1.msra.mxu0 %v3571_v37  ;;  %1324 = vmatpush1.msra.mxu1 %v3592_v43  ;;  %v1406_v35 = vsel %vm1405_vm5, 1, %v4764_v34  ;;  %v1599_v37 = vsel %vm1598_vm6, 1, %v4764_v34  ;;  %vm2373_vm8 = vcmp.gt.f32.partialorder %v4763_v33, %v2372_v38  ;;  %vm1216_vm9 = vcmp.eq.s32.totalorder %v1215_v36, 1  ;;  %v4067_v36 = vld [vmem:[%s3450_s2 + $0x130] sm:$0xff] }
 0x1ad   : > { %1254 = vmatprep.subr.mxu0 %v3581_v40  ;;  %1325 = vmatprep.subr.mxu1 %v3598_v45  ;;  %v1986_v40 = vsel %vm1985_vm7, 1, %v4764_v34  ;;  %v2374_v41 = vsel %vm2373_vm8, 1, %v4764_v34 }
 0x1ae   : > { %1255 = vmatpush1.msra.mxu0 %v3589_v42  ;;  %1326 = vmatpush1.msra.mxu1 %v3608_v47  ;;  %v2650_v42 = vld [vmem:[%s2496_s28 + $0x20] sm:$0xff]  ;;  %s2522_s28 = scalar_lea.vmem [#allocation4], %s2685_s10  ;;  %s4550_s10 = scalar_lea.hbm %s4603_s5, %s2716_s24 }
 0x1af   : > { %1256 = vmatprep.subr.mxu0 %v3595_v44  ;;  %1327 = vmatprep.subr.mxu1 %v3618_v50 }
 0x1b0   : > { %1257 = vmatpush1.msra.mxu0 %v3605_v46  ;;  %1328 = vmatpush1.msra.mxu1 %v3626_v52 }
 0x1b1   : > { %1258 = vmatprep.subr.mxu0 %v3615_v49  ;;  %1329 = vmatprep.subr.mxu1 %v3632_v54 }
 0x1b2   : > { %1259 = vmatpush1.msra.mxu0 %v3623_v51  ;;  %1330 = vmatpush1.msra.mxu1 %v3644_v56 }
 0x1b3   : > { %1260 = vmatprep.subr.mxu0 %v3629_v53  ;;  %1331 = vmatprep.subr.mxu1 %v3654_v59 }
 0x1b4   : > { %1261 = vmatpush1.msra.mxu0 %v3641_v55  ;;  %1332 = vmatpush1.msra.mxu1 %v4743_v7 }
 0x1b5   : > { %1262 = vmatprep.subr.mxu0 %v4744_v8  ;;  %1333 = vmatprep.subr.mxu1 %v4745_v10 }
 0x1b6   : > { %1263 = vmatpush1.msra.mxu0 %v4746_v11  ;;  %1334 = vmatpush1.msra.mxu1 %v4747_v12 }
 0x1b7   : > { %1264 = vmatprep.subr.mxu0 %v4748_v13  ;;  %1335 = vmatprep.subr.mxu1 %v4749_v15 }
 0x1b8   : > { %1265 = vmatpush1.msra.mxu0 %v4750_v16  ;;  %1336 = vmatpush1.msra.mxu1 %v4751_v17 }
 0x1b9   : > { %1266 = vmatprep.subr.mxu0 %v4752_v18  ;;  %1337 = vmatprep.subr.mxu1 %v4753_v19 }
 0x1ba   : > { %1267 = vmatpush1.msra.mxu0 %v4754_v20  ;;  %1338 = vmatpush1.msra.mxu1 %v4755_v22 }
 0x1bb   : > { %1268 = vmatprep.subr.mxu0 %v4756_v23  ;;  %1339 = vmatprep.subr.mxu1 %v4757_v24 }
 0x1bc   : > { %1269 = vmatpush1.msra.mxu0 %v4758_v25  ;;  %1302 = vmatprep.mubr.f32.mxu0 %v4759_v26 }
 0x1bd   : > { %1340 = vmatpush1.msra.mxu1 %v4760_v27  ;;  %1373 = vmatprep.mubr.f32.mxu1 %v4759_v26 }
 0x1be   : > { %1431 = vmatprep.subr.mxu0 %v4761_v28  ;;  %1502 = vmatprep.subr.mxu1 %v4762_v29 }
 0x1bf   : > { %1408 = vperm.xlu1 %2812, %v1406_v35  }
 0x1c3   : > { %1601 = vperm.xlu1 %2812, %v1599_v37  }
 0x1c7   : > { %1988 = vperm.xlu1 %2812, %v1986_v40  }
 0x1cb   : > { %2376 = vperm.xlu1 %2812, %v2374_v41  }
 0x25d   : > { %v1110_v44 = vpop.f32.mrf.mxu0  ;;  %v1181_v21 = vpop.f32.mrf.mxu1 }
 0x25e   : > { %v1111_v62 = vadd.f32 %v2650_v42, %v1110_v44  ;;  %v1182_v60 = vadd.f32 %v2652_v3, %v1181_v21  ;;  %v3991_v21 = vld [vmem:[%s3450_s2 + $0x1a8] sm:$0xff]  ;;  %v4015_v3 = vld [vmem:[%s3450_s2 + $0x180] sm:$0xff] }
 0x25f   : > { %v1112_v63 = vpop.f32.mrf.mxu0  ;;  %v1183_v9 = vpop.f32.mrf.mxu1 }
 0x260   : > { %v2654_v14 = vmul.f32 -1.442695, %v1111_v62  ;;  %v1113_v57 = vadd.f32 %v2651_v6, %v1112_v63  ;;  %v1184_v30 = vadd.f32 %v2653_v2, %v1183_v9  ;;  %v3971_v6 = vld [vmem:[%s3450_s2 + $0x1f0] sm:$0xff]  ;;  %v3979_v63 = vld [vmem:[%s3450_s2 + $0x1d8] sm:$0xff]  ;;  %v3999_v9 = vld [vmem:[%s3450_s2 + $0x1a0] sm:$0xff] }
 0x261   : > { %v4003_v2 = vld [vmem:[%s3450_s2 + $0x1b0] sm:$0xff] }
 0x262   : > { %2829 = vpow2.f32 %v2654_v14  ;;  %v2655_v39 = vmul.f32 -1.442695, %v1113_v57  ;;  %v2656_v1 = vmul.f32 -1.442695, %v1184_v30  ;;  %v3983_v14 = vld [vmem:[%s3450_s2 + $0x1c0] sm:$0xff]  ;;  %v3987_v57 = vld [vmem:[%s3450_s2 + $0x1d0] sm:$0xff] }
 0x263   : > { %v4007_v30 = vld [vmem:[%s3450_s2 + $0x188] sm:$0xff] }
 0x264   : > { %2831 = vpow2.f32 %v2655_v39  ;;  %v3995_v39 = vld [vmem:[%s3450_s2 + $0x1b8] sm:$0xff] }
 0x265   : > { %2833 = vpow2.f32 %v2656_v1  ;;  %v4011_v1 = vld [vmem:[%s3450_s2 + $0x198] sm:$0xff] }
 0x26f   : > { %v2830_v4 = vpop.eup %2829 }
 0x270   : > { %v1189_v48 = vadd.f32 1.0, %v2830_v4  ;;  %v4019_v4 = vld [vmem:[%s3450_s2 + $0x190] sm:$0xff] }
 0x271   : > { %v2832_v58 = vpop.eup %2831 }
 0x272   : > { %2835 = vrcp.f32 %v1189_v48  ;;  %v1195_v61 = vadd.f32 1.0, %v2832_v58  ;;  %v2834_v28 = vpop.eup %2833  ;;  %v4027_v48 = vld [vmem:[%s3450_s2 + $0x178] sm:$0xff]  ;;  %v4031_v58 = vld [vmem:[%s3450_s2 + $0x160] sm:$0xff] }
 0x273   : > { %2837 = vtanh.f32 %v1182_v60  ;;  %v1202_v33 = vadd.f32 1.0, %v2834_v28  ;;  %v4023_v60 = vld [vmem:[%s3450_s2 + $0x168] sm:$0xff] }
 0x274   : > { %2839 = vrcp.f32 %v1195_v61  ;;  %v4035_v61 = vld [vmem:[%s3450_s2 + $0x170] sm:$0xff]  ;;  %v4039_v28 = vld [vmem:[%s3450_s2 + $0x148] sm:$0xff] }
 0x275   : > { %2841 = vrcp.f32 %v1202_v33  ;;  %v4055_v33 = vld [vmem:[%s3450_s2 + $0x128] sm:$0xff] }
 0x27f   : > { %v2836_v29 = vpop.eup %2835 }
 0x280   : > { %v2838_v31 = vpop.eup %2837 }
 0x281   : > { %v2840_v32 = vpop.eup %2839  ;;  %v1206_v34 = vmul.f32 %v2838_v31, %v2836_v29  ;;  %v4043_v29 = vld [vmem:[%s3450_s2 + $0x158] sm:$0xff]  ;;  %v4047_v31 = vld [vmem:[%s3450_s2 + $0x140] sm:$0xff] }
 0x282   : > { %v1205_v35 = vmul.f32 %v2840_v32, %v3866_v0  ;;  %v2842_v40 = vpop.eup %2841  ;;  %v4051_v32 = vld [vmem:[%s3450_s2 + $0x150] sm:$0xff] }
 0x284   : > { %v1207_v37 = vadd.f32 %v1206_v34, %v1205_v35  ;;  %v4059_v34 = vld [vmem:[%s3450_s2 + $0x138] sm:$0xff]  ;;  %v4063_v35 = vld [vmem:[%s3450_s2 + $0x120] sm:$0xff] }
 0x286   : > { %2843 = vtanh.f32 %v1207_v37  ;;  %v3957_v38 = vsel %vm1216_vm9, %v1207_v37, %v3866_v0  ;;  %v3967_v0 = vld [vmem:[%s3450_s2 + $0x1e0] sm:$0xff]  ;;  %v4071_v37 = vld [vmem:[%s3450_s2 + $0x108] sm:$0xff] }
 0x287   : > { %4765 = vst [vmem:[#allocation21_spill] sm:$0xff] %v4071_v37 }
 0x293   : > { %v2844_v41 = vpop.eup %2843 }
 0x294   : > { %v1209_v42 = vmul.f32 %v2844_v41, %v2842_v40  ;;  %v4075_v40 = vld [vmem:[%s3450_s2 + $0x118] sm:$0xff]  ;;  %v4079_v41 = vld [vmem:[%s3450_s2 + $0x100] sm:$0xff] }
 0x296   : > { %v3962_v44 = vsel %vm1216_vm9, %v1209_v42, %v3873_v5  ;;  %v1221_v62 = vsel %vm1216_vm9, %v1209_v42, 0.0  ;;  %v3975_v5 = vld [vmem:[%s3450_s2 + $0x1c8] sm:$0xff] }
 0x297   : > { %2658 = vst [vmem:[%s2500_s13 + $0x8] sm:$0xff] %v1221_v62  ;;  %1303 = vmatmul.mubr.f32.vlgmr.msra.gmra.mxu0 %v3962_v44  ;;  %1374 = vmatmul.mubr.f32.vlgmr.msra.gmra.mxu1 %v3962_v44  ;;  %v4084_v42 = vld [vmem:[%s3450_s2 + $0xe8] sm:$0xff]  ;;  %v4089_v62 = vld [vmem:[%s3450_s2 + $0xe0] sm:$0xff]  ;;  %s2526_s13 = scalar_lea.vmem %s3870_s17, %s2693_s16 [#allocation11]  ;;  %s3182_s16 = smov [#allocation11]  }
 0x298   : > { %1432 = vmatpush1.msra.mxu0 %v3967_v0  ;;  %1503 = vmatpush1.msra.mxu1 %v3971_v6 }
 0x299   : > { %1433 = vmatprep.subr.mxu0 %v3975_v5  ;;  %1504 = vmatprep.subr.mxu1 %v3979_v63 }
 0x29a   : > { %1434 = vmatpush1.msra.mxu0 %v3983_v14  ;;  %1505 = vmatpush1.msra.mxu1 %v3987_v57 }
 0x29b   : > { %1435 = vmatprep.subr.mxu0 %v3991_v21  ;;  %1506 = vmatprep.subr.mxu1 %v3995_v39 }
 0x29c   : > { %1436 = vmatpush1.msra.mxu0 %v3999_v9  ;;  %1507 = vmatpush1.msra.mxu1 %v4003_v2 }
 0x29d   : > { %1437 = vmatprep.subr.mxu0 %v4007_v30  ;;  %1508 = vmatprep.subr.mxu1 %v4011_v1 }
 0x29e   : > { %1438 = vmatpush1.msra.mxu0 %v4015_v3  ;;  %1509 = vmatpush1.msra.mxu1 %v4019_v4 }
 0x29f   : > { %1439 = vmatprep.subr.mxu0 %v4023_v60  ;;  %1510 = vmatprep.subr.mxu1 %v4027_v48 }
 0x2a0   : > { %1440 = vmatpush1.msra.mxu0 %v4031_v58  ;;  %1511 = vmatpush1.msra.mxu1 %v4035_v61 }
 0x2a1   : > { %1441 = vmatprep.subr.mxu0 %v4039_v28  ;;  %1512 = vmatprep.subr.mxu1 %v4043_v29 }
 0x2a2   : > { %1442 = vmatpush1.msra.mxu0 %v4047_v31  ;;  %1513 = vmatpush1.msra.mxu1 %v4051_v32 }
 0x2a3   : > { %1443 = vmatprep.subr.mxu0 %v4055_v33  ;;  %1514 = vmatprep.subr.mxu1 %v4059_v34 }
 0x2a4   : > { %1444 = vmatpush1.msra.mxu0 %v4063_v35  ;;  %1515 = vmatpush1.msra.mxu1 %v4067_v36 }
 0x2a5   : > { %1445 = vmatprep.subr.mxu0 %v4071_v37  ;;  %1516 = vmatprep.subr.mxu1 %v4075_v40  ;;  %v4094_v37 = vld [vmem:[%s3450_s2 + $0xc8] sm:$0xff] }
 0x2a6   : > { %1446 = vmatpush1.msra.mxu0 %v4079_v41  ;;  %1517 = vmatpush1.msra.mxu1 %v3592_v43  ;;  %v4127_v43 = vld [vmem:[%s3450_s2 + $0x1e8] sm:$0xff] }
 0x2a7   : > { %1447 = vmatprep.subr.mxu0 %v4084_v42  ;;  %1518 = vmatprep.subr.mxu1 %v3598_v45  ;;  %4766 = vst [vmem:[#allocation19_spill] sm:$0xff] %v4127_v43  ;;  %v4131_v45 = vld [vmem:[%s3450_s2 + $0x1f8] sm:$0xff] }
 0x2a8   : > { %1448 = vmatpush1.msra.mxu0 %v4089_v62  ;;  %1519 = vmatpush1.msra.mxu1 %v3608_v47  ;;  %4767 = vst [vmem:[#allocation23_spill] sm:$0xff] %v4131_v45 }
 0x2a9   : > { %1449 = vmatprep.subr.mxu0 %v4094_v37  ;;  %1520 = vmatprep.subr.mxu1 %v3618_v50  ;;  %v2661_v50 = vld [vmem:[%s2504_s12 + $0x48] sm:$0xff] }
 0x2aa   : > { %1450 = vmatpush1.msra.mxu0 %v3605_v46  ;;  %1521 = vmatpush1.msra.mxu1 %v3626_v52  ;;  %v2660_v46 = vld [vmem:[%s2504_s12 + $0x40] sm:$0xff] }
 0x2ab   : > { %1451 = vmatprep.subr.mxu0 %v3615_v49  ;;  %1522 = vmatprep.subr.mxu1 %v3632_v54 }
 0x2ac   : > { %1452 = vmatpush1.msra.mxu0 %v3623_v51  ;;  %1523 = vmatpush1.msra.mxu1 %v3644_v56 }
 0x2ad   : > { %1453 = vmatprep.subr.mxu0 %v3629_v53  ;;  %1524 = vmatprep.subr.mxu1 %v3654_v59  ;;  %v2663_v59 = vld [vmem:[%s2504_s12 + $0x58] sm:$0xff] }
 0x2ae   : > { %1454 = vmatpush1.msra.mxu0 %v3641_v55  ;;  %1525 = vmatpush1.msra.mxu1 %v4743_v7 }
 0x2af   : > { %1455 = vmatprep.subr.mxu0 %v4744_v8  ;;  %1526 = vmatprep.subr.mxu1 %v4745_v10  ;;  %v2662_v10 = vld [vmem:[%s2504_s12 + $0x50] sm:$0xff]  ;;  %s2530_s12 = scalar_lea.vmem [#allocation4], %s2695_s11 }
 0x2b0   : > { %1456 = vmatpush1.msra.mxu0 %v4746_v11  ;;  %1527 = vmatpush1.msra.mxu1 %v4747_v12 }
 0x2b1   : > { %1457 = vmatprep.subr.mxu0 %v4748_v13  ;;  %1528 = vmatprep.subr.mxu1 %v4749_v15 }
 0x2b2   : > { %1458 = vmatpush1.msra.mxu0 %v4750_v16  ;;  %1529 = vmatpush1.msra.mxu1 %v4751_v17 }
 0x2b3   : > { %1459 = vmatprep.subr.mxu0 %v4752_v18  ;;  %1530 = vmatprep.subr.mxu1 %v4753_v19 }
 0x2b4   : > { %1460 = vmatpush1.msra.mxu0 %v4754_v20  ;;  %1531 = vmatpush1.msra.mxu1 %v4755_v22  ;;  %v1409_v20 = vpop.permute.xlu1 %1408 }
 0x2b5   : > { %1461 = vmatprep.subr.mxu0 %v4756_v23  ;;  %1532 = vmatprep.subr.mxu1 %v4757_v24  ;;  %vm1410_vm10 = vcmp.eq.s32.totalorder %v1409_v20, 1  ;;  %v4247_v20 = vld [vmem:[%s3450_s2 + $0x70] sm:$0xff] }
 0x2b6   : > { %1462 = vmatpush1.msra.mxu0 %v4758_v25  ;;  %1495 = vmatprep.mubr.f32.mxu0 %v4759_v26  ;;  %4774 = vst [vmem:[#allocation30_spill] sm:$0xff] %v4247_v20 }
 0x2b7   : > { %1533 = vmatpush1.msra.mxu1 %v4760_v27  ;;  %1566 = vmatprep.mubr.f32.mxu1 %v4759_v26 }
 0x2b8   : > { %1624 = vmatprep.subr.mxu0 %v4127_v43  ;;  %1695 = vmatprep.subr.mxu1 %v4131_v45 }
 0x357   : > { %v1304_v47 = vpop.f32.mrf.mxu0  ;;  %v1375_v54 = vpop.f32.mrf.mxu1 }
 0x358   : > { %v1305_v49 = vadd.f32 %v2660_v46, %v1304_v47  ;;  %v1376_v12 = vadd.f32 %v2662_v10, %v1375_v54  ;;  %v4186_v54 = vld [vmem:[%s3450_s2 + $0xf0] sm:$0xff]  ;;  %v4211_v10 = vld [vmem:[%s3450_s2 + $0xa0] sm:$0xff] }
 0x359   : > { %v1306_v51 = vpop.f32.mrf.mxu0  ;;  %v1377_v56 = vpop.f32.mrf.mxu1 }
 0x35a   : > { %v2664_v52 = vmul.f32 -1.442695, %v1305_v49  ;;  %v1307_v53 = vadd.f32 %v2661_v50, %v1306_v51  ;;  %v1378_v7 = vadd.f32 %v2663_v59, %v1377_v56  ;;  %v4195_v56 = vld [vmem:[%s3450_s2 + $0xc0] sm:$0xff]  ;;  %v4199_v59 = vld [vmem:[%s3450_s2 + $0xd0] sm:$0xff] }
 0x35c   : > { %2845 = vpow2.f32 %v2664_v52  ;;  %v2665_v55 = vmul.f32 -1.442695, %v1307_v53  ;;  %v2666_v8 = vmul.f32 -1.442695, %v1378_v7  ;;  %v4181_v53 = vld [vmem:[%s3450_s2 + $0xf8] sm:$0xff]  ;;  %v4203_v7 = vld [vmem:[%s3450_s2 + $0xa8] sm:$0xff] }
 0x35e   : > { %2847 = vpow2.f32 %v2665_v55  ;;  %v4191_v55 = vld [vmem:[%s3450_s2 + $0xd8] sm:$0xff] }
 0x35f   : > { %2849 = vpow2.f32 %v2666_v8  ;;  %v4207_v8 = vld [vmem:[%s3450_s2 + $0xb8] sm:$0xff] }
 0x369   : > { %v2846_v11 = vpop.eup %2845 }
 0x36a   : > { %v1383_v13 = vadd.f32 1.0, %v2846_v11  ;;  %v4215_v11 = vld [vmem:[%s3450_s2 + $0xb0] sm:$0xff] }
 0x36b   : > { %v2848_v15 = vpop.eup %2847 }
 0x36c   : > { %2851 = vrcp.f32 %v1383_v13  ;;  %v1389_v16 = vadd.f32 1.0, %v2848_v15  ;;  %v2850_v17 = vpop.eup %2849  ;;  %v4223_v13 = vld [vmem:[%s3450_s2 + $0x98] sm:$0xff]  ;;  %v4227_v15 = vld [vmem:[%s3450_s2 + $0x80] sm:$0xff] }
 0x36d   : > { %2853 = vtanh.f32 %v1376_v12  ;;  %v1396_v23 = vadd.f32 1.0, %v2850_v17  ;;  %v4219_v12 = vld [vmem:[%s3450_s2 + $0x88] sm:$0xff]  ;;  %4769 = vst [vmem:[#allocation20_spill] sm:$0xff] %v4227_v15 }
 0x36e   : > { %2855 = vrcp.f32 %v1389_v16  ;;  %v4231_v16 = vld [vmem:[%s3450_s2 + $0x90] sm:$0xff]  ;;  %v4235_v17 = vld [vmem:[%s3450_s2 + $0x68] sm:$0xff] }
 0x36f   : > { %2857 = vrcp.f32 %v1396_v23  ;;  %4770 = vst [vmem:[#allocation25_spill] sm:$0xff] %v4231_v16  ;;  %4771 = vst [vmem:[#allocation22_spill] sm:$0xff] %v4235_v17  ;;  %v4255_v23 = vld [vmem:[%s3450_s2 + $0x58] sm:$0xff] }
 0x370   : > { %4776 = vst [vmem:[#allocation32_spill] sm:$0xff] %v4255_v23 }
 0x379   : > { %v2852_v18 = vpop.eup %2851 }
 0x37a   : > { %v2854_v19 = vpop.eup %2853 }
 0x37b   : > { %v2856_v22 = vpop.eup %2855  ;;  %v1400_v25 = vmul.f32 %v2854_v19, %v2852_v18  ;;  %v4239_v18 = vld [vmem:[%s3450_s2 + $0x78] sm:$0xff]  ;;  %v4243_v19 = vld [vmem:[%s3450_s2 + $0x60] sm:$0xff] }
 0x37c   : > { %v1399_v24 = vmul.f32 %v2856_v22, %v3957_v38  ;;  %v2858_v47 = vpop.eup %2857  ;;  %4772 = vst [vmem:[#allocation27_spill] sm:$0xff] %v4239_v18  ;;  %4773 = vst [vmem:[#allocation24_spill] sm:$0xff] %v4243_v19  ;;  %v4251_v22 = vld [vmem:[%s3450_s2 + $0x48] sm:$0xff] }
 0x37d   : > { %4775 = vst [vmem:[#allocation26_spill] sm:$0xff] %v4251_v22 }
 0x37e   : > { %v1401_v27 = vadd.f32 %v1400_v25, %v1399_v24  ;;  %v4259_v24 = vld [vmem:[%s3450_s2 + $0x40] sm:$0xff]  ;;  %v4263_v25 = vld [vmem:[%s3450_s2 + $0x50] sm:$0xff] }
 0x37f   : > { %4777 = vst [vmem:[#allocation29_spill] sm:$0xff] %v4259_v24  ;;  %4778 = vst [vmem:[#allocation34_spill] sm:$0xff] %v4263_v25 }
 0x380   : > { %2859 = vtanh.f32 %v1401_v27  ;;  %v4137_v46 = vsel %vm1410_vm10, %v1401_v27, %v3957_v38  ;;  %v4768_v38 = vld [vmem:[#allocation21_spill] sm:$0xff]  ;;  %v4267_v27 = vld [vmem:[%s3450_s2 + $0x28] sm:$0xff] }
 0x381   : > { %4779 = vst [vmem:[#allocation31_spill] sm:$0xff] %v4267_v27 }
 0x38d   : > { %v2860_v49 = vpop.eup %2859 }
 0x38e   : > { %v1403_v50 = vmul.f32 %v2860_v49, %v2858_v47  ;;  %v4271_v47 = vld [vmem:[%s3450_s2 + $0x38] sm:$0xff]  ;;  %v4275_v49 = vld [vmem:[%s3450_s2 + $0x20] sm:$0xff] }
 0x38f   : > { %4780 = vst [vmem:[#allocation35_spill] sm:$0xff] %v4271_v47  ;;  %4781 = vst [vmem:[#allocation33_spill] sm:$0xff] %v4275_v49 }
 0x390   : > { %v4142_v51 = vsel %vm1410_vm10, %v1403_v50, %v3962_v44  ;;  %v1415_v52 = vsel %vm1410_vm10, %v1403_v50, 0.0  ;;  %v4176_v44 = vld [vmem:[%s3450_s2 + $0x110] sm:$0xff] }
 0x391   : > { %2668 = vst [vmem:[%s2508_s22 + $0x10] sm:$0xff] %v1415_v52  ;;  %1496 = vmatmul.mubr.f32.vlgmr.msra.gmra.mxu0 %v4142_v51  ;;  %1567 = vmatmul.mubr.f32.vlgmr.msra.gmra.mxu1 %v4142_v51  ;;  %v4279_v50 = vld [vmem:[%s3450_s2 + $0x30] sm:$0xff]  ;;  %v4283_v52 = vld [vmem:[%s3450_s2 + $0x8] sm:$0xff]  ;;  %s2534_s22 = scalar_lea.vmem %s3870_s17, %s2703_s15 [#allocation11] }
 0x392   : > { %1625 = vmatpush1.msra.mxu0 %v3967_v0  ;;  %1696 = vmatpush1.msra.mxu1 %v3971_v6  ;;  %4782 = vst [vmem:[#allocation36_spill] sm:$0xff] %v4279_v50  ;;  %4783 = vst [vmem:[#allocation17_spill] sm:$0xff] %v4283_v52 }
 0x393   : > { %1626 = vmatprep.subr.mxu0 %v3975_v5  ;;  %1697 = vmatprep.subr.mxu1 %v3979_v63 }
 0x394   : > { %1627 = vmatpush1.msra.mxu0 %v3983_v14  ;;  %1698 = vmatpush1.msra.mxu1 %v3987_v57 }
 0x395   : > { %1628 = vmatprep.subr.mxu0 %v3991_v21  ;;  %1699 = vmatprep.subr.mxu1 %v3995_v39 }
 0x396   : > { %1629 = vmatpush1.msra.mxu0 %v3999_v9  ;;  %1700 = vmatpush1.msra.mxu1 %v4003_v2 }
 0x397   : > { %1630 = vmatprep.subr.mxu0 %v4007_v30  ;;  %1701 = vmatprep.subr.mxu1 %v4011_v1 }
 0x398   : > { %1631 = vmatpush1.msra.mxu0 %v4015_v3  ;;  %1702 = vmatpush1.msra.mxu1 %v4019_v4 }
 0x399   : > { %1632 = vmatprep.subr.mxu0 %v4023_v60  ;;  %1703 = vmatprep.subr.mxu1 %v4027_v48 }
 0x39a   : > { %1633 = vmatpush1.msra.mxu0 %v4031_v58  ;;  %1704 = vmatpush1.msra.mxu1 %v4035_v61 }
 0x39b   : > { %1634 = vmatprep.subr.mxu0 %v4039_v28  ;;  %1705 = vmatprep.subr.mxu1 %v4043_v29 }
 0x39c   : > { %1635 = vmatpush1.msra.mxu0 %v4047_v31  ;;  %1706 = vmatpush1.msra.mxu1 %v4051_v32 }
 0x39d   : > { %1636 = vmatprep.subr.mxu0 %v4055_v33  ;;  %1707 = vmatprep.subr.mxu1 %v4059_v34 }
 0x39e   : > { %1637 = vmatpush1.msra.mxu0 %v4063_v35  ;;  %1708 = vmatpush1.msra.mxu1 %v4067_v36 }
 0x39f   : > { %1638 = vmatprep.subr.mxu0 %v4768_v38  ;;  %1709 = vmatprep.subr.mxu1 %v4075_v40 }
 0x3a0   : > { %1639 = vmatpush1.msra.mxu0 %v4079_v41  ;;  %1710 = vmatpush1.msra.mxu1 %v4176_v44 }
 0x3a1   : > { %1640 = vmatprep.subr.mxu0 %v4084_v42  ;;  %1711 = vmatprep.subr.mxu1 %v4181_v53 }
 0x3a2   : > { %1641 = vmatpush1.msra.mxu0 %v4089_v62  ;;  %1712 = vmatpush1.msra.mxu1 %v4186_v54 }
 0x3a3   : > { %1642 = vmatprep.subr.mxu0 %v4094_v37  ;;  %1713 = vmatprep.subr.mxu1 %v4191_v55 }
 0x3a4   : > { %1643 = vmatpush1.msra.mxu0 %v4195_v56  ;;  %1714 = vmatpush1.msra.mxu1 %v4199_v59 }
 0x3a5   : > { %1644 = vmatprep.subr.mxu0 %v4203_v7  ;;  %1715 = vmatprep.subr.mxu1 %v4207_v8 }
 0x3a6   : > { %1645 = vmatpush1.msra.mxu0 %v4211_v10  ;;  %1716 = vmatpush1.msra.mxu1 %v4215_v11 }
 0x3a7   : > { %1646 = vmatprep.subr.mxu0 %v4219_v12  ;;  %1717 = vmatprep.subr.mxu1 %v4223_v13 }
 0x3a8   : > { %1647 = vmatpush1.msra.mxu0 %v4227_v15  ;;  %1718 = vmatpush1.msra.mxu1 %v4231_v16 }
 0x3a9   : > { %1648 = vmatprep.subr.mxu0 %v4235_v17  ;;  %1719 = vmatprep.subr.mxu1 %v4239_v18 }
 0x3aa   : > { %1649 = vmatpush1.msra.mxu0 %v4243_v19  ;;  %1720 = vmatpush1.msra.mxu1 %v4247_v20  ;;  %v2673_v19 = vld [vmem:[%s2511_s26 + $0x78] sm:$0xff] }
 0x3ab   : > { %1650 = vmatprep.subr.mxu0 %v4251_v22  ;;  %1721 = vmatprep.subr.mxu1 %v4255_v23 }
 0x3ac   : > { %1651 = vmatpush1.msra.mxu0 %v4259_v24  ;;  %1722 = vmatpush1.msra.mxu1 %v4263_v25  ;;  %v4287_v25 = vld [vmem:[%s3450_s2 + $0x18] sm:$0xff] }
 0x3ad   : > { %1652 = vmatprep.subr.mxu0 %v4267_v27  ;;  %1723 = vmatprep.subr.mxu1 %v4271_v47  ;;  %4784 = vst [vmem:[#allocation18_spill] sm:$0xff] %v4287_v25  ;;  %v4291_v27 = vld [vmem:[%s3450_s2] sm:$0xff]  ;;  %v4296_v47 = vld [vmem:[%s3450_s2 + $0x10] sm:$0xff]  ;;  %s2677_s2 = sshll.u32 %s3163_s21, 3 }
 0x3ae   : > { %1653 = vmatpush1.msra.mxu0 %v4275_v49  ;;  %1724 = vmatpush1.msra.mxu1 %v4279_v50  ;;  %4785 = vst [vmem:[#allocation28_spill] sm:$0xff] %v4291_v27  ;;  %4786 = vst [vmem:[#allocation21_spill] sm:$0xff] %v4296_v47  ;;  %v2671_v49 = vld [vmem:[%s2511_s26 + $0x68] sm:$0xff]  ;;  %s2514_s27 = scalar_lea.vmem %s3870_s17, %s2677_s2 [#allocation11]  ;;  %s2713_s2 = smul.u32 4294967240, %s3163_s21 }
 0x3af   : > { %1654 = vmatprep.subr.mxu0 %v4283_v52  ;;  %1725 = vmatprep.subr.mxu1 %v4287_v25  ;;  %v2670_v52 = vld [vmem:[%s2511_s26 + $0x60] sm:$0xff] }
 0x3b0   : > { %1655 = vmatpush1.msra.mxu0 %v4291_v27  ;;  %1688 = vmatprep.mubr.f32.mxu0 %v4759_v26 }
 0x3b1   : > { %1726 = vmatpush1.msra.mxu1 %v4296_v47  ;;  %1759 = vmatprep.mubr.f32.mxu1 %v4759_v26 }
 0x3b2   : > { %1818 = vmatprep.subr.mxu0 %v4127_v43  ;;  %1889 = vmatprep.subr.mxu1 %v4131_v45  ;;  %v2672_v43 = vld [vmem:[%s2511_s26 + $0x70] sm:$0xff]  ;;  %s2538_s26 = scalar_lea.vmem [#allocation4], %s2705_s14 }
 0x451   : > { %v1497_v25 = vpop.f32.mrf.mxu0  ;;  %v1568_v22 = vpop.f32.mrf.mxu1 }
 0x452   : > { %v1498_v50 = vadd.f32 %v2670_v52, %v1497_v25  ;;  %v1569_v45 = vadd.f32 %v2672_v43, %v1568_v22  ;;  %v4789_v22 = vld [vmem:[#allocation22_spill] sm:$0xff]  ;;  %v4790_v52 = vld [vmem:[#allocation27_spill] sm:$0xff] }
 0x453   : > { %v1499_v24 = vpop.f32.mrf.mxu0  ;;  %v1570_v47 = vpop.f32.mrf.mxu1 }
 0x454   : > { %v2674_v27 = vmul.f32 -1.442695, %v1498_v50  ;;  %v1500_v23 = vadd.f32 %v2671_v49, %v1499_v24  ;;  %v1571_v26 = vadd.f32 %v2673_v19, %v1570_v47  ;;  %v1602_v19 = vpop.permute.xlu1 %1601 }
 0x455   : > { %vm1603_vm11 = vcmp.eq.s32.totalorder %v1602_v19, 1  ;;  %v4799_v19 = vld [vmem:[#allocation33_spill] sm:$0xff] }
 0x456   : > { %2861 = vpow2.f32 %v2674_v27  ;;  %v2675_v20 = vmul.f32 -1.442695, %v1500_v23  ;;  %v2676_v18 = vmul.f32 -1.442695, %v1571_v26 }
 0x458   : > { %2863 = vpow2.f32 %v2675_v20 }
 0x459   : > { %2865 = vpow2.f32 %v2676_v18 }
 0x463   : > { %v2862_v17 = vpop.eup %2861 }
 0x464   : > { %v1576_v16 = vadd.f32 1.0, %v2862_v17 }
 0x465   : > { %v2864_v15 = vpop.eup %2863 }
 0x466   : > { %2867 = vrcp.f32 %v1576_v16  ;;  %v1582_v25 = vadd.f32 1.0, %v2864_v15  ;;  %v2866_v24 = vpop.eup %2865 }
 0x467   : > { %2869 = vtanh.f32 %v1569_v45  ;;  %v1589_v49 = vadd.f32 1.0, %v2866_v24  ;;  %v4792_v24 = vld [vmem:[#allocation30_spill] sm:$0xff] }
 0x468   : > { %2871 = vrcp.f32 %v1582_v25  ;;  %v4791_v25 = vld [vmem:[#allocation24_spill] sm:$0xff] }
 0x469   : > { %2873 = vrcp.f32 %v1589_v49  ;;  %v4796_v49 = vld [vmem:[#allocation34_spill] sm:$0xff] }
 0x473   : > { %v2868_v27 = vpop.eup %2867 }
 0x474   : > { %v2870_v23 = vpop.eup %2869 }
 0x475   : > { %v2872_v20 = vpop.eup %2871  ;;  %v1593_v50 = vmul.f32 %v2870_v23, %v2868_v27  ;;  %v4793_v27 = vld [vmem:[#allocation26_spill] sm:$0xff]  ;;  %v4794_v23 = vld [vmem:[#allocation32_spill] sm:$0xff] }
 0x476   : > { %v1592_v26 = vmul.f32 %v2872_v20, %v4137_v46  ;;  %v2874_v45 = vpop.eup %2873  ;;  %v4795_v20 = vld [vmem:[#allocation29_spill] sm:$0xff] }
 0x478   : > { %v1594_v47 = vadd.f32 %v1593_v50, %v1592_v26  ;;  %v4797_v50 = vld [vmem:[#allocation31_spill] sm:$0xff] }
 0x479   : > { %v4798_v26 = vld [vmem:[#allocation35_spill] sm:$0xff] }
 0x47a   : > { %2875 = vtanh.f32 %v1594_v47  ;;  %v4305_v43 = vsel %vm1603_vm11, %v1594_v47, %v4137_v46  ;;  %v4787_v46 = vld [vmem:[#allocation20_spill] sm:$0xff] }
 0x47b   : > { %v4800_v47 = vld [vmem:[#allocation36_spill] sm:$0xff] }
 0x487   : > { %v2876_v15 = vpop.eup %2875 }
 0x488   : > { %v1596_v16 = vmul.f32 %v2876_v15, %v2874_v45  ;;  %v4801_v45 = vld [vmem:[#allocation17_spill] sm:$0xff]  ;;  %v4802_v15 = vld [vmem:[#allocation18_spill] sm:$0xff] }
 0x48a   : > { %v4310_v17 = vsel %vm1603_vm11, %v1596_v16, %v4142_v51  ;;  %v1608_v18 = vsel %vm1603_vm11, %v1596_v16, 0.0  ;;  %v4788_v51 = vld [vmem:[#allocation25_spill] sm:$0xff]  ;;  %v4803_v16 = vld [vmem:[#allocation28_spill] sm:$0xff] }
 0x48b   : > { %2678 = vst [vmem:[%s2514_s27 + $0x18] sm:$0xff] %v1608_v18  ;;  %1689 = vmatmul.mubr.f32.vlgmr.msra.gmra.mxu0 %v4310_v17  ;;  %1760 = vmatmul.mubr.f32.vlgmr.msra.gmra.mxu1 %v4310_v17  ;;  %v4804_v18 = vmov 0.0   ;;  %s2409_s27 = sshll.u32 %s3870_s17, 4  ;;  %s4544_s27 = int_to_ptr.vmem [resolvable:$true] %s2409_s27 }
 0x48c   : > { %1819 = vmatpush1.msra.mxu0 %v3967_v0  ;;  %1890 = vmatpush1.msra.mxu1 %v3971_v6  ;;  %s3087_s21 = scalar_lea.vmem %s4544_s27, 1024 }
 0x48d   : > { %1820 = vmatprep.subr.mxu0 %v3975_v5  ;;  %1891 = vmatprep.subr.mxu1 %v3979_v63  ;;  %p3088_p0 = scmp.ne.s32.totalorder %s4544_s27, %s3087_s21 }
 0x48e   : > { %1821 = vmatpush1.msra.mxu0 %v3983_v14  ;;  %1892 = vmatpush1.msra.mxu1 %v3987_v57 }
 0x48f   : > { %1822 = vmatprep.subr.mxu0 %v3991_v21  ;;  %1893 = vmatprep.subr.mxu1 %v3995_v39  ;;  %p3089_p12 = pnand %p3088_p0, %p4848_p3 }
 0x490   : > { %1823 = vmatpush1.msra.mxu0 %v3999_v9  ;;  %1894 = vmatpush1.msra.mxu1 %v4003_v2 }
 0x491   : > { %1824 = vmatprep.subr.mxu0 %v4007_v30  ;;  %1895 = vmatprep.subr.mxu1 %v4011_v1  ;;  %p3090_p2 = pneg %p3089_p12 }
 0x492   : > { %1825 = vmatpush1.msra.mxu0 %v4015_v3  ;;  %1896 = vmatpush1.msra.mxu1 %v4019_v4 }
 0x493   : > { %1826 = vmatprep.subr.mxu0 %v4023_v60  ;;  %1897 = vmatprep.subr.mxu1 %v4027_v48 }
 0x494   : > { %1827 = vmatpush1.msra.mxu0 %v4031_v58  ;;  %1898 = vmatpush1.msra.mxu1 %v4035_v61 }
 0x495   : > { %1828 = vmatprep.subr.mxu0 %v4039_v28  ;;  %1899 = vmatprep.subr.mxu1 %v4043_v29 }
 0x496   : > { %1829 = vmatpush1.msra.mxu0 %v4047_v31  ;;  %1900 = vmatpush1.msra.mxu1 %v4051_v32 }
 0x497   : > { %1830 = vmatprep.subr.mxu0 %v4055_v33  ;;  %1901 = vmatprep.subr.mxu1 %v4059_v34 }
 0x498   : > { %1831 = vmatpush1.msra.mxu0 %v4063_v35  ;;  %1902 = vmatpush1.msra.mxu1 %v4067_v36 }
 0x499   : > { %1832 = vmatprep.subr.mxu0 %v4768_v38  ;;  %1903 = vmatprep.subr.mxu1 %v4075_v40 }
 0x49a   : > { %1833 = vmatpush1.msra.mxu0 %v4079_v41  ;;  %1904 = vmatpush1.msra.mxu1 %v4176_v44 }
 0x49b   : > { %1834 = vmatprep.subr.mxu0 %v4084_v42  ;;  %1905 = vmatprep.subr.mxu1 %v4181_v53 }
 0x49c   : > { %1835 = vmatpush1.msra.mxu0 %v4089_v62  ;;  %1906 = vmatpush1.msra.mxu1 %v4186_v54 }
 0x49d   : > { %1836 = vmatprep.subr.mxu0 %v4094_v37  ;;  %1907 = vmatprep.subr.mxu1 %v4191_v55 }
 0x49e   : > { %1837 = vmatpush1.msra.mxu0 %v4195_v56  ;;  %1908 = vmatpush1.msra.mxu1 %v4199_v59 }
 0x49f   : > { %1838 = vmatprep.subr.mxu0 %v4203_v7  ;;  %1909 = vmatprep.subr.mxu1 %v4207_v8 }
 0x4a0   : > { %1839 = vmatpush1.msra.mxu0 %v4211_v10  ;;  %1910 = vmatpush1.msra.mxu1 %v4215_v11 }
 0x4a1   : > { %1840 = vmatprep.subr.mxu0 %v4219_v12  ;;  %1911 = vmatprep.subr.mxu1 %v4223_v13 }
 0x4a2   : > { %1841 = vmatpush1.msra.mxu0 %v4787_v46  ;;  %1912 = vmatpush1.msra.mxu1 %v4788_v51 }
 0x4a3   : > { %1842 = vmatprep.subr.mxu0 %v4789_v22  ;;  %1913 = vmatprep.subr.mxu1 %v4790_v52 }
 0x4a4   : > { %1843 = vmatpush1.msra.mxu0 %v4791_v25  ;;  %1914 = vmatpush1.msra.mxu1 %v4792_v24  ;;  %v1623_v25 = vld [vmem:[%s1619_s30 + $0x18] sm:$0xff] }
 0x4a5   : > { %1844 = vmatprep.subr.mxu0 %v4793_v27  ;;  %1915 = vmatprep.subr.mxu1 %v4794_v23  ;;  %v4805_v23 = vld [vmem:[#allocation21_spill] sm:$0xff] }
 0x4a6   : > { %1845 = vmatpush1.msra.mxu0 %v4795_v20  ;;  %1916 = vmatpush1.msra.mxu1 %v4796_v49  ;;  %v4806_v49 = vld [vmem:[#allocation19_spill] sm:$0xff] }
 0x4a7   : > { %1846 = vmatprep.subr.mxu0 %v4797_v50  ;;  %1917 = vmatprep.subr.mxu1 %v4798_v26  ;;  %v4807_v50 = vld [vmem:[#allocation23_spill] sm:$0xff] }
 0x4a8   : > { %1847 = vmatpush1.msra.mxu0 %v4799_v19  ;;  %1918 = vmatpush1.msra.mxu1 %v4800_v47  ;;  %v1620_v19 = vld [vmem:[%s1619_s30] sm:$0xff] }
 0x4a9   : > { %1848 = vmatprep.subr.mxu0 %v4801_v45  ;;  %1919 = vmatprep.subr.mxu1 %v4802_v15  ;;  %v1621_v45 = vld [vmem:[%s1619_s30 + $0x8] sm:$0xff] }
 0x4aa   : > { %1849 = vmatpush1.msra.mxu0 %v4803_v16  ;;  %1882 = vmatprep.mubr.f32.mxu0 %v4804_v18 }
 0x4ab   : > { %1920 = vmatpush1.msra.mxu1 %v4805_v23  ;;  %1953 = vmatprep.mubr.f32.mxu1 %v4804_v18 }
 0x4ac   : > { %2012 = vmatprep.subr.mxu0 %v4806_v49  ;;  %2083 = vmatprep.subr.mxu1 %v4807_v50  ;;  %v1622_v49 = vld [vmem:[%s1619_s30 + $0x10] sm:$0xff]  ;;  %s2542_s30 = scalar_lea.vmem %s3870_s17, %s2713_s2 [#allocation11] }
 0x54b   : > { %v1690_v47 = vpop.f32.mrf.mxu0  ;;  %v1761_v16 = vpop.f32.mrf.mxu1 }
 0x54c   : > { %v1691_v26 = vadd.f32 %v1690_v47, %v1620_v19  ;;  %v1762_v50 = vadd.f32 %v1761_v16, %v1622_v49  ;;  %v4810_v16 = vld [vmem:[#allocation22_spill] sm:$0xff] }
 0x54d   : > { %v1692_v20 = vpop.f32.mrf.mxu0  ;;  %v1763_v23 = vpop.f32.mrf.mxu1 }
 0x54e   : > { %v2681_v15 = vmul.f32 -1.442695, %v1691_v26  ;;  %v1693_v27 = vadd.f32 %v1692_v20, %v1621_v45  ;;  %v1764_v18 = vadd.f32 %v1763_v23, %v1623_v25  ;;  %v1795_v23 = vpop.permute.xlu0 %1794 }
 0x54f   : > { %vm1796_vm12 = vcmp.eq.s32.totalorder %v1795_v23, 1  ;;  %v4820_v23 = vld [vmem:[#allocation33_spill] sm:$0xff] }
 0x550   : > { %2877 = vpow2.f32 %v2681_v15  ;;  %v2682_v24 = vmul.f32 -1.442695, %v1693_v27  ;;  %v2683_v52 = vmul.f32 -1.442695, %v1764_v18  ;;  %v4811_v18 = vld [vmem:[#allocation27_spill] sm:$0xff] }
 0x552   : > { %2879 = vpow2.f32 %v2682_v24 }
 0x553   : > { %2881 = vpow2.f32 %v2683_v52 }
 0x55d   : > { %v2878_v22 = vpop.eup %2877 }
 0x55e   : > { %v1769_v51 = vadd.f32 1.0, %v2878_v22 }
 0x55f   : > { %v2880_v46 = vpop.eup %2879 }
 0x560   : > { %2883 = vrcp.f32 %v1769_v51  ;;  %v1775_v19 = vadd.f32 1.0, %v2880_v46  ;;  %v2882_v20 = vpop.eup %2881 }
 0x561   : > { %2885 = vtanh.f32 %v1762_v50  ;;  %v1782_v47 = vadd.f32 1.0, %v2882_v20  ;;  %v4813_v20 = vld [vmem:[#allocation30_spill] sm:$0xff] }
 0x562   : > { %2887 = vrcp.f32 %v1775_v19  ;;  %v4812_v19 = vld [vmem:[#allocation24_spill] sm:$0xff] }
 0x563   : > { %2889 = vrcp.f32 %v1782_v47  ;;  %v4817_v47 = vld [vmem:[#allocation34_spill] sm:$0xff] }
 0x56d   : > { %v2884_v26 = vpop.eup %2883 }
 0x56e   : > { %v2886_v27 = vpop.eup %2885 }
 0x56f   : > { %v2888_v24 = vpop.eup %2887  ;;  %v1786_v45 = vmul.f32 %v2886_v27, %v2884_v26  ;;  %v4814_v26 = vld [vmem:[#allocation26_spill] sm:$0xff]  ;;  %v4815_v27 = vld [vmem:[#allocation32_spill] sm:$0xff] }
 0x570   : > { %v1785_v25 = vmul.f32 %v2888_v24, %v4305_v43  ;;  %v2890_v46 = vpop.eup %2889  ;;  %v4816_v24 = vld [vmem:[#allocation29_spill] sm:$0xff] }
 0x572   : > { %v1787_v15 = vadd.f32 %v1786_v45, %v1785_v25  ;;  %v4818_v45 = vld [vmem:[#allocation31_spill] sm:$0xff] }
 0x573   : > { %v4819_v25 = vld [vmem:[#allocation35_spill] sm:$0xff] }
 0x574   : > { %2891 = vtanh.f32 %v1787_v15  ;;  %v4383_v51 = vsel %vm1796_vm12, %v1787_v15, %v4305_v43  ;;  %v4808_v43 = vld [vmem:[#allocation20_spill] sm:$0xff] }
 0x575   : > { %v4821_v15 = vld [vmem:[#allocation36_spill] sm:$0xff] }
 0x581   : > { %v2892_v22 = vpop.eup %2891 }
 0x582   : > { %v1789_v52 = vmul.f32 %v2892_v22, %v2890_v46  ;;  %v4822_v46 = vld [vmem:[#allocation17_spill] sm:$0xff]  ;;  %v4823_v22 = vld [vmem:[#allocation18_spill] sm:$0xff] }
 0x584   : > { %v4388_v49 = vsel %vm1796_vm12, %v1789_v52, %v4310_v17  ;;  %v1801_v50 = vsel %vm1796_vm12, %v1789_v52, 0.0  ;;  %v4809_v17 = vld [vmem:[#allocation25_spill] sm:$0xff]  ;;  %v4824_v52 = vld [vmem:[#allocation28_spill] sm:$0xff] }
 0x585   : > { %1804 = vst [vmem:[%s1803_s29] sm:$0xff] %v1801_v50  ;;  %1883 = vmatmul.mubr.f32.vlgmr.msra.gmra.mxu0 %v4388_v49  ;;  %1954 = vmatmul.mubr.f32.vlgmr.msra.gmra.mxu1 %v4388_v49  ;;  %v4825_v50 = vmov 0.0  }
 0x586   : > { %2013 = vmatpush1.msra.mxu0 %v3967_v0  ;;  %2084 = vmatpush1.msra.mxu1 %v3971_v6 }
 0x587   : > { %2014 = vmatprep.subr.mxu0 %v3975_v5  ;;  %2085 = vmatprep.subr.mxu1 %v3979_v63 }
 0x588   : > { %2015 = vmatpush1.msra.mxu0 %v3983_v14  ;;  %2086 = vmatpush1.msra.mxu1 %v3987_v57 }
 0x589   : > { %2016 = vmatprep.subr.mxu0 %v3991_v21  ;;  %2087 = vmatprep.subr.mxu1 %v3995_v39 }
 0x58a   : > { %2017 = vmatpush1.msra.mxu0 %v3999_v9  ;;  %2088 = vmatpush1.msra.mxu1 %v4003_v2 }
 0x58b   : > { %2018 = vmatprep.subr.mxu0 %v4007_v30  ;;  %2089 = vmatprep.subr.mxu1 %v4011_v1 }
 0x58c   : > { %2019 = vmatpush1.msra.mxu0 %v4015_v3  ;;  %2090 = vmatpush1.msra.mxu1 %v4019_v4 }
 0x58d   : > { %2020 = vmatprep.subr.mxu0 %v4023_v60  ;;  %2091 = vmatprep.subr.mxu1 %v4027_v48 }
 0x58e   : > { %2021 = vmatpush1.msra.mxu0 %v4031_v58  ;;  %2092 = vmatpush1.msra.mxu1 %v4035_v61 }
 0x58f   : > { %2022 = vmatprep.subr.mxu0 %v4039_v28  ;;  %2093 = vmatprep.subr.mxu1 %v4043_v29 }
 0x590   : > { %2023 = vmatpush1.msra.mxu0 %v4047_v31  ;;  %2094 = vmatpush1.msra.mxu1 %v4051_v32 }
 0x591   : > { %2024 = vmatprep.subr.mxu0 %v4055_v33  ;;  %2095 = vmatprep.subr.mxu1 %v4059_v34 }
 0x592   : > { %2025 = vmatpush1.msra.mxu0 %v4063_v35  ;;  %2096 = vmatpush1.msra.mxu1 %v4067_v36 }
 0x593   : > { %2026 = vmatprep.subr.mxu0 %v4768_v38  ;;  %2097 = vmatprep.subr.mxu1 %v4075_v40 }
 0x594   : > { %2027 = vmatpush1.msra.mxu0 %v4079_v41  ;;  %2098 = vmatpush1.msra.mxu1 %v4176_v44 }
 0x595   : > { %2028 = vmatprep.subr.mxu0 %v4084_v42  ;;  %2099 = vmatprep.subr.mxu1 %v4181_v53 }
 0x596   : > { %2029 = vmatpush1.msra.mxu0 %v4089_v62  ;;  %2100 = vmatpush1.msra.mxu1 %v4186_v54 }
 0x597   : > { %2030 = vmatprep.subr.mxu0 %v4094_v37  ;;  %2101 = vmatprep.subr.mxu1 %v4191_v55 }
 0x598   : > { %2031 = vmatpush1.msra.mxu0 %v4195_v56  ;;  %2102 = vmatpush1.msra.mxu1 %v4199_v59 }
 0x599   : > { %2032 = vmatprep.subr.mxu0 %v4203_v7  ;;  %2103 = vmatprep.subr.mxu1 %v4207_v8 }
 0x59a   : > { %2033 = vmatpush1.msra.mxu0 %v4211_v10  ;;  %2104 = vmatpush1.msra.mxu1 %v4215_v11 }
 0x59b   : > { %2034 = vmatprep.subr.mxu0 %v4219_v12  ;;  %2105 = vmatprep.subr.mxu1 %v4223_v13 }
 0x59c   : > { %2035 = vmatpush1.msra.mxu0 %v4808_v43  ;;  %2106 = vmatpush1.msra.mxu1 %v4809_v17 }
 0x59d   : > { %2036 = vmatprep.subr.mxu0 %v4810_v16  ;;  %2107 = vmatprep.subr.mxu1 %v4811_v18 }
 0x59e   : > { %2037 = vmatpush1.msra.mxu0 %v4812_v19  ;;  %2108 = vmatpush1.msra.mxu1 %v4813_v20  ;;  %v2689_v19 = vld [vmem:[%s2522_s28 + $0xb8] sm:$0xff] }
 0x59f   : > { %2038 = vmatprep.subr.mxu0 %v4814_v26  ;;  %2109 = vmatprep.subr.mxu1 %v4815_v27  ;;  %v4826_v27 = vld [vmem:[#allocation21_spill] sm:$0xff] }
 0x5a0   : > { %2039 = vmatpush1.msra.mxu0 %v4816_v24  ;;  %2110 = vmatpush1.msra.mxu1 %v4817_v47  ;;  %v4827_v47 = vld [vmem:[#allocation19_spill] sm:$0xff] }
 0x5a1   : > { %2040 = vmatprep.subr.mxu0 %v4818_v45  ;;  %2111 = vmatprep.subr.mxu1 %v4819_v25  ;;  %v4828_v45 = vld [vmem:[#allocation23_spill] sm:$0xff] }
 0x5a2   : > { %2041 = vmatpush1.msra.mxu0 %v4820_v23  ;;  %2112 = vmatpush1.msra.mxu1 %v4821_v15  ;;  %v2686_v23 = vld [vmem:[%s2522_s28 + $0xa0] sm:$0xff] }
 0x5a3   : > { %2042 = vmatprep.subr.mxu0 %v4822_v46  ;;  %2113 = vmatprep.subr.mxu1 %v4823_v22  ;;  %v2687_v46 = vld [vmem:[%s2522_s28 + $0xa8] sm:$0xff] }
 0x5a4   : > { %2043 = vmatpush1.msra.mxu0 %v4824_v52  ;;  %2076 = vmatprep.mubr.f32.mxu0 %v4825_v50 }
 0x5a5   : > { %2114 = vmatpush1.msra.mxu1 %v4826_v27  ;;  %2147 = vmatprep.mubr.f32.mxu1 %v4825_v50 }
 0x5a6   : > { %2206 = vmatprep.subr.mxu0 %v4827_v47  ;;  %2277 = vmatprep.subr.mxu1 %v4828_v45  ;;  %v2688_v47 = vld [vmem:[%s2522_s28 + $0xb0] sm:$0xff]  ;;  %s2388_s28 = scalar_lea.sflag [#allocation7], %s3369_s25 }
 0x645   : > { %v1884_v15 = vpop.f32.mrf.mxu0  ;;  %v1955_v52 = vpop.f32.mrf.mxu1 }
 0x646   : > { %v1885_v25 = vadd.f32 %v2686_v23, %v1884_v15  ;;  %v1956_v45 = vadd.f32 %v2688_v47, %v1955_v52 }
 0x647   : > { %v1886_v24 = vpop.f32.mrf.mxu0  ;;  %v1957_v27 = vpop.f32.mrf.mxu1 }
 0x648   : > { %v2690_v22 = vmul.f32 -1.442695, %v1885_v25  ;;  %v1887_v26 = vadd.f32 %v2687_v46, %v1886_v24  ;;  %v1958_v50 = vadd.f32 %v2689_v19, %v1957_v27  ;;  %v1989_v27 = vpop.permute.xlu1 %1988 }
 0x649   : > { %vm1990_vm13 = vcmp.eq.s32.totalorder %v1989_v27, 1  ;;  %v2707_v27 = vld [vmem:[%s2538_s26 + $0xe8] sm:$0xff] }
 0x64a   : > { %2893 = vpow2.f32 %v2690_v22  ;;  %v2691_v20 = vmul.f32 -1.442695, %v1887_v26  ;;  %v2692_v18 = vmul.f32 -1.442695, %v1958_v50 }
 0x64c   : > { %2895 = vpow2.f32 %v2691_v20 }
 0x64d   : > { %2897 = vpow2.f32 %v2692_v18 }
 0x657   : > { %v2894_v16 = vpop.eup %2893 }
 0x658   : > { %v1963_v17 = vadd.f32 1.0, %v2894_v16 }
 0x659   : > { %v2896_v43 = vpop.eup %2895 }
 0x65a   : > { %2899 = vrcp.f32 %v1963_v17  ;;  %v1969_v23 = vadd.f32 1.0, %v2896_v43  ;;  %v2898_v24 = vpop.eup %2897 }
 0x65b   : > { %2901 = vtanh.f32 %v1956_v45  ;;  %v1976_v15 = vadd.f32 1.0, %v2898_v24 }
 0x65c   : > { %2903 = vrcp.f32 %v1969_v23 }
 0x65d   : > { %2905 = vrcp.f32 %v1976_v15  ;;  %v2706_v15 = vld [vmem:[%s2538_s26 + $0xe0] sm:$0xff] }
 0x667   : > { %v2900_v25 = vpop.eup %2899 }
 0x668   : > { %v2902_v26 = vpop.eup %2901 }
 0x669   : > { %v2904_v20 = vpop.eup %2903  ;;  %v1980_v46 = vmul.f32 %v2902_v26, %v2900_v25 }
 0x66a   : > { %v1979_v19 = vmul.f32 %v2904_v20, %v4383_v51  ;;  %v2906_v43 = vpop.eup %2905 }
 0x66c   : > { %v1981_v22 = vadd.f32 %v1980_v46, %v1979_v19 }
 0x66e   : > { %2907 = vtanh.f32 %v1981_v22  ;;  %v4461_v17 = vsel %vm1990_vm13, %v1981_v22, %v4383_v51 }
 0x67b   : > { %v2908_v16 = vpop.eup %2907 }
 0x67c   : > { %v1983_v18 = vmul.f32 %v2908_v16, %v2906_v43 }
 0x67e   : > { %v4466_v52 = vsel %vm1990_vm13, %v1983_v18, %v4388_v49  ;;  %v1995_v50 = vsel %vm1990_vm13, %v1983_v18, 0.0 }
 0x67f   : > { %2694 = vst [vmem:[%s2526_s13 + $0x28] sm:$0xff] %v1995_v50  ;;  %2077 = vmatmul.mubr.f32.vlgmr.msra.gmra.mxu0 %v4466_v52  ;;  %2148 = vmatmul.mubr.f32.vlgmr.msra.gmra.mxu1 %v4466_v52  ;;  %s3091_s13 = sshll.u32 %s3182_s16, 4  ;;  %s3092_s13 = int_to_ptr.vmem [resolvable:$false] %s3091_s13 }
 0x680   : > { %2207 = vmatpush1.msra.mxu0 %v3967_v0  ;;  %2278 = vmatpush1.msra.mxu1 %v3971_v6  ;;  %v4829_v0 = vld [vmem:[#allocation20_spill] sm:$0xff]  ;;  %v4830_v6 = vld [vmem:[#allocation25_spill] sm:$0xff]  ;;  %s3093_s11 = scalar_lea.vmem %s3092_s13, 2048  ;;  %p3094_p13 = scmp.lt.s32.totalorder %s4544_s27, %s3092_s13 }
 0x681   : > { %2208 = vmatprep.subr.mxu0 %v3975_v5  ;;  %2279 = vmatprep.subr.mxu1 %v3979_v63  ;;  %v4831_v5 = vld [vmem:[#allocation22_spill] sm:$0xff]  ;;  %v4832_v63 = vld [vmem:[#allocation27_spill] sm:$0xff]  ;;  %p3095_p7 = scmp.lt.s32.totalorder %s3093_s11, %s3087_s21 }
 0x682   : > { %2209 = vmatpush1.msra.mxu0 %v3983_v14  ;;  %2280 = vmatpush1.msra.mxu1 %v3987_v57  ;;  %v4833_v14 = vld [vmem:[#allocation24_spill] sm:$0xff]  ;;  %v4834_v57 = vld [vmem:[#allocation30_spill] sm:$0xff] }
 0x683   : > { %2210 = vmatprep.subr.mxu0 %v3991_v21  ;;  %2281 = vmatprep.subr.mxu1 %v3995_v39  ;;  %v4835_v21 = vld [vmem:[#allocation26_spill] sm:$0xff]  ;;  %v4836_v39 = vld [vmem:[#allocation32_spill] sm:$0xff]  ;;  %p3096_p4 = por %p3095_p7, %p3094_p13 }
 0x684   : > { %2211 = vmatpush1.msra.mxu0 %v3999_v9  ;;  %2282 = vmatpush1.msra.mxu1 %v4003_v2  ;;  %v4837_v9 = vld [vmem:[#allocation29_spill] sm:$0xff]  ;;  %v4838_v2 = vld [vmem:[#allocation34_spill] sm:$0xff] }
 0x685   : > { %2212 = vmatprep.subr.mxu0 %v4007_v30  ;;  %2283 = vmatprep.subr.mxu1 %v4011_v1  ;;  %v4839_v30 = vld [vmem:[#allocation31_spill] sm:$0xff]  ;;  %p3097_p9 = pnand %p3096_p4, %p3090_p2 }
 0x686   : > { %2213 = vmatpush1.msra.mxu0 %v4015_v3  ;;  %2284 = vmatpush1.msra.mxu1 %v4019_v4  ;;  %v4840_v1 = vld [vmem:[#allocation35_spill] sm:$0xff]  ;;  %v4841_v3 = vld [vmem:[#allocation33_spill] sm:$0xff]  ;;  %v4842_v4 = vld [vmem:[#allocation36_spill] sm:$0xff] }
 0x687   : > { %2214 = vmatprep.subr.mxu0 %v4023_v60  ;;  %2285 = vmatprep.subr.mxu1 %v4027_v48  ;;  %v4843_v60 = vld [vmem:[#allocation17_spill] sm:$0xff]  ;;  %v4844_v48 = vld [vmem:[#allocation18_spill] sm:$0xff] }
 0x688   : > { %2215 = vmatpush1.msra.mxu0 %v4031_v58  ;;  %2286 = vmatpush1.msra.mxu1 %v4035_v61  ;;  %v4845_v58 = vld [vmem:[#allocation28_spill] sm:$0xff]  ;;  %v4846_v61 = vmov 0.0  }
 0x689   : > { %2216 = vmatprep.subr.mxu0 %v4039_v28  ;;  %2287 = vmatprep.subr.mxu1 %v4043_v29  ;;  %v4847_v28 = vld [vmem:[#allocation21_spill] sm:$0xff]  ;;  %v2696_v29 = vld [vmem:[%s2530_s12 + $0xc0] sm:$0xff] }
 0x68a   : > { %2217 = vmatpush1.msra.mxu0 %v4047_v31  ;;  %2288 = vmatpush1.msra.mxu1 %v4051_v32 }
 0x68b   : > { %2218 = vmatprep.subr.mxu0 %v4055_v33  ;;  %2289 = vmatprep.subr.mxu1 %v4059_v34  ;;  %v2697_v33 = vld [vmem:[%s2530_s12 + $0xc8] sm:$0xff] }
 0x68c   : > { %2219 = vmatpush1.msra.mxu0 %v4063_v35  ;;  %2290 = vmatpush1.msra.mxu1 %v4067_v36 }
 0x68d   : > { %2220 = vmatprep.subr.mxu0 %v4768_v38  ;;  %2291 = vmatprep.subr.mxu1 %v4075_v40 }
 0x68e   : > { %2221 = vmatpush1.msra.mxu0 %v4079_v41  ;;  %2292 = vmatpush1.msra.mxu1 %v4176_v44  ;;  %v2698_v44 = vld [vmem:[%s2530_s12 + $0xd0] sm:$0xff] }
 0x68f   : > { %2222 = vmatprep.subr.mxu0 %v4084_v42  ;;  %2293 = vmatprep.subr.mxu1 %v4181_v53  ;;  %v2699_v42 = vld [vmem:[%s2530_s12 + $0xd8] sm:$0xff] }
 0x690   : > { %2223 = vmatpush1.msra.mxu0 %v4089_v62  ;;  %2294 = vmatpush1.msra.mxu1 %v4186_v54 }
 0x691   : > { %2224 = vmatprep.subr.mxu0 %v4094_v37  ;;  %2295 = vmatprep.subr.mxu1 %v4191_v55 }
 0x692   : > { %2225 = vmatpush1.msra.mxu0 %v4195_v56  ;;  %2296 = vmatpush1.msra.mxu1 %v4199_v59 }
 0x693   : > { %2226 = vmatprep.subr.mxu0 %v4203_v7  ;;  %2297 = vmatprep.subr.mxu1 %v4207_v8 }
 0x694   : > { %2227 = vmatpush1.msra.mxu0 %v4211_v10  ;;  %2298 = vmatpush1.msra.mxu1 %v4215_v11 }
 0x695   : > { %2228 = vmatprep.subr.mxu0 %v4219_v12  ;;  %2299 = vmatprep.subr.mxu1 %v4223_v13  ;;  %v2183_v13 = vpop.permute.xlu0 %2182 }
 0x696   : > { %2229 = vmatpush1.msra.mxu0 %v4829_v0  ;;  %2300 = vmatpush1.msra.mxu1 %v4830_v6  ;;  %vm2184_vm14 = vcmp.eq.s32.totalorder %v2183_v13, 1  ;;  %v2709_v0 = vld [vmem:[%s2538_s26 + $0xf8] sm:$0xff] }
 0x697   : > { %2230 = vmatprep.subr.mxu0 %v4831_v5  ;;  %2301 = vmatprep.subr.mxu1 %v4832_v63  ;;  %v2708_v5 = vld [vmem:[%s2538_s26 + $0xf0] sm:$0xff] }
 0x698   : > { %2231 = vmatpush1.msra.mxu0 %v4833_v14  ;;  %2302 = vmatpush1.msra.mxu1 %v4834_v57 }
 0x699   : > { %2232 = vmatprep.subr.mxu0 %v4835_v21  ;;  %2303 = vmatprep.subr.mxu1 %v4836_v39 }
 0x69a   : > { %2233 = vmatpush1.msra.mxu0 %v4837_v9  ;;  %2304 = vmatpush1.msra.mxu1 %v4838_v2 }
 0x69b   : > { %2234 = vmatprep.subr.mxu0 %v4839_v30  ;;  %2305 = vmatprep.subr.mxu1 %v4840_v1 }
 0x69c   : > { %2235 = vmatpush1.msra.mxu0 %v4841_v3  ;;  %2306 = vmatpush1.msra.mxu1 %v4842_v4 }
 0x69d   : > { %2236 = vmatprep.subr.mxu0 %v4843_v60  ;;  %2307 = vmatprep.subr.mxu1 %v4844_v48 }
 0x69e   : > { %2237 = vmatpush1.msra.mxu0 %v4845_v58  ;;  %2270 = vmatprep.mubr.f32.mxu0 %v4846_v61 }
 0x69f   : > { %2308 = vmatpush1.msra.mxu1 %v4847_v28  ;;  %2341 = vmatprep.mubr.f32.mxu1 %v4846_v61  ;;  %v2377_v61 = vpop.permute.xlu1 %2376 }
 0x6a0   : > { %vm2378_vm15 = vcmp.eq.s32.totalorder %v2377_v61, 1 }
 0x73f   : > { %v2078_v31 = vpop.f32.mrf.mxu0  ;;  %v2149_v37 = vpop.f32.mrf.mxu1 }
 0x740   : > { %v2079_v32 = vadd.f32 %v2696_v29, %v2078_v31  ;;  %v2150_v54 = vadd.f32 %v2698_v44, %v2149_v37 }
 0x741   : > { %v2080_v34 = vpop.f32.mrf.mxu0  ;;  %v2151_v41 = vpop.f32.mrf.mxu1 }
 0x742   : > { %v2700_v35 = vmul.f32 -1.442695, %v2079_v32  ;;  %v2081_v36 = vadd.f32 %v2697_v33, %v2080_v34  ;;  %v2152_v62 = vadd.f32 %v2699_v42, %v2151_v41 }
 0x744   : > { %2909 = vpow2.f32 %v2700_v35  ;;  %v2701_v40 = vmul.f32 -1.442695, %v2081_v36  ;;  %v2702_v38 = vmul.f32 -1.442695, %v2152_v62 }
 0x746   : > { %2911 = vpow2.f32 %v2701_v40 }
 0x747   : > { %2913 = vpow2.f32 %v2702_v38 }
 0x751   : > { %v2910_v53 = vpop.eup %2909 }
 0x752   : > { %v2157_v55 = vadd.f32 1.0, %v2910_v53 }
 0x753   : > { %v2912_v56 = vpop.eup %2911 }
 0x754   : > { %2915 = vrcp.f32 %v2157_v55  ;;  %v2163_v59 = vadd.f32 1.0, %v2912_v56  ;;  %v2914_v7 = vpop.eup %2913 }
 0x755   : > { %2917 = vtanh.f32 %v2150_v54  ;;  %v2170_v12 = vadd.f32 1.0, %v2914_v7 }
 0x756   : > { %2919 = vrcp.f32 %v2163_v59 }
 0x757   : > { %2921 = vrcp.f32 %v2170_v12 }
 0x761   : > { %v2916_v8 = vpop.eup %2915 }
 0x762   : > { %v2918_v10 = vpop.eup %2917 }
 0x763   : > { %v2920_v11 = vpop.eup %2919  ;;  %v2174_v51 = vmul.f32 %v2918_v10, %v2916_v8 }
 0x764   : > { %v2173_v49 = vmul.f32 %v2920_v11, %v4461_v17  ;;  %v2922_v23 = vpop.eup %2921 }
 0x766   : > { %v2175_v47 = vadd.f32 %v2174_v51, %v2173_v49 }
 0x768   : > { %2923 = vtanh.f32 %v2175_v47  ;;  %v2185_v45 = vsel %vm2184_vm14, %v2175_v47, %v4461_v17 }
 0x775   : > { %v2924_v24 = vpop.eup %2923 }
 0x776   : > { %v2177_v25 = vmul.f32 %v2924_v24, %v2922_v23 }
 0x778   : > { %v2187_v26 = vsel %vm2184_vm14, %v2177_v25, %v4466_v52  ;;  %v2189_v20 = vsel %vm2184_vm14, %v2177_v25, 0.0 }
 0x779   : > { %2704 = vst [vmem:[%s2534_s22 + $0x30] sm:$0xff] %v2189_v20  ;;  %2271 = vmatmul.mubr.f32.vlgmr.msra.gmra.mxu0 %v2187_v26  ;;  %2342 = vmatmul.mubr.f32.vlgmr.msra.gmra.mxu1 %v2187_v26 }
 0x839   : > { %v2272_v46 = vpop.f32.mrf.mxu0  ;;  %v2343_v16 = vpop.f32.mrf.mxu1 }
 0x83a   : > { %v2273_v19 = vadd.f32 %v2706_v15, %v2272_v46  ;;  %v2344_v14 = vadd.f32 %v2708_v5, %v2343_v16 }
 0x83b   : > { %v2274_v22 = vpop.f32.mrf.mxu0  ;;  %v2345_v50 = vpop.f32.mrf.mxu1 }
 0x83c   : > { %v2710_v43 = vmul.f32 -1.442695, %v2273_v19  ;;  %v2275_v17 = vadd.f32 %v2707_v27, %v2274_v22  ;;  %v2346_v52 = vadd.f32 %v2709_v0, %v2345_v50 }
 0x83e   : > { %2925 = vpow2.f32 %v2710_v43  ;;  %v2711_v18 = vmul.f32 -1.442695, %v2275_v17  ;;  %v2712_v6 = vmul.f32 -1.442695, %v2346_v52 }
 0x840   : > { %2927 = vpow2.f32 %v2711_v18 }
 0x841   : > { %2929 = vpow2.f32 %v2712_v6 }
 0x84b   : > { %v2926_v63 = vpop.eup %2925 }
 0x84c   : > { %v2351_v57 = vadd.f32 1.0, %v2926_v63 }
 0x84d   : > { %v2928_v21 = vpop.eup %2927 }
 0x84e   : > { %2931 = vrcp.f32 %v2351_v57  ;;  %v2357_v39 = vadd.f32 1.0, %v2928_v21  ;;  %v2930_v9 = vpop.eup %2929 }
 0x84f   : > { %2933 = vtanh.f32 %v2344_v14  ;;  %v2364_v3 = vadd.f32 1.0, %v2930_v9 }
 0x850   : > { %2935 = vrcp.f32 %v2357_v39 }
 0x851   : > { %2937 = vrcp.f32 %v2364_v3 }
 0x85b   : > { %v2932_v2 = vpop.eup %2931 }
 0x85c   : > { %v2934_v30 = vpop.eup %2933 }
 0x85d   : > { %v2936_v1 = vpop.eup %2935  ;;  %v2368_v4 = vmul.f32 %v2934_v30, %v2932_v2 }
 0x85e   : > { %v2367_v60 = vmul.f32 %v2936_v1, %v2185_v45  ;;  %v2938_v58 = vpop.eup %2937 }
 0x860   : > { %v2369_v48 = vadd.f32 %v2368_v4, %v2367_v60 }
 0x862   : > { %2939 = vtanh.f32 %v2369_v48 }
 0x86f   : > { %v2940_v28 = vpop.eup %2939 }
 0x870   : > { %v2371_v29 = vmul.f32 %v2940_v28, %v2938_v58 }
 0x872   : > { %v2383_v31 = vsel %vm2378_vm15, %v2371_v29, 0.0 }
 0x873   : > { %2714 = vst [vmem:[%s2542_s30 + $0x38] sm:$0xff] %v2383_v31 }
 0x874   : > { %3100 = shalt.err (!%p3097_p9)
}
 0x875   : > { %s3101_s17 = scalar_lea.hbm %s4550_s10, 1024  ;;  %s3105_s22 = scalar_lea.hbm %s4603_s5, 2048 }
 0x876   : > { %p3102_p11 = scmp.ne.s32.totalorder %s4550_s10, %s3101_s17  ;;  %p3106_p6 = scmp.lt.s32.totalorder %s4550_s10, %s4603_s5 }
 0x877   : > { %p3107_p5 = scmp.lt.s32.totalorder %s3105_s22, %s3101_s17 }
 0x878   : > { %p3103_p1 = pnand %p3102_p11, %p4848_p3 }
 0x879   : > { %p3108_p8 = por %p3107_p5, %p3106_p6 }
 0x87a   : > { %p3104_p10 = pneg %p3103_p1 }
 0x87c   : > { %p3109_p0 = pnand %p3108_p8, %p3104_p10 }
 0x87e   : > { %3112 = shalt.err (!%p3109_p0)
}
 0x87f   : > { %s3183_s2 = smov 128   ;;  %s3184_s24 = smov 256  }
 0x880   : > { %s3185_s30 = smov 8  }
 0x881   : > { %2733 = dma.vmem_to_hbm [thread:$0]  (%p4848_p3), %s4544_s27, 1024, %s4550_s10, %s2388_s28, %s3183_s2, %s3184_s24, %s3185_s30  }
 0x882 PF: > { %s2424_s9 = sand.u32 1, %s3151_s18   ;;  %p4849_p12 = scmp.ne.s32.totalorder %s4705_s8, 0 }
 0x883   : > { %p4850_p2 = scmp.ge.s32.totalorder %s3171_s23, 2  ;;  %s2425_s29 = scalar_lea.sflag [#allocation7], %s2424_s9 }
 0x885   : > { %p2746_p13 = pnand %p4850_p2, %p4849_p12 }
 0x887   : > { %p2747_p7 = pneg %p2746_p13 }
 0x889   : > { %3146 = dma.done.wait (%p2747_p7), %s2425_s29, 1024  }
 0x88a   : > { %3148 = vsyncadd (%p2747_p7), %s2425_s29, 4294966272  ;;  %s24_s23 = sadd.s32 1, %s3171_s23   ;;  %s4851_s21 = sld [smem:[#allocation15_spill]] }
 0x88b   : > { %p21_p4 = scmp.ge.s32.totalorder %s24_s23, 4   ;;  %s4852_s22 = sld [smem:[#allocation16_spill]] }
 0x88c   : > { %s4853_s18 = smov %s3155_s19  ;;  %s4854_s19 = smov %s3159_s20 }
 0x88d   : > { %s4855_s20 = smov %s3280_s7  ;;  %23 = sbr.rel (!%p21_p4) target bundleno = 10 (0xa), region = 135 }
 0x892   :  { %2430 = vsyncpa [#allocation6], 1 }
 0x893   :  { %2432 = vsyncpa [#allocation6 + $0x1], 1 }
 0x894   :  { %2433 = vsyncpa [#allocation9], 1 }
 0x895   :  { %2435 = vsyncpa [#allocation9 + $0x1], 1 }
 0x896   :  { %2436 = vsyncpa [#allocation7], 1 }
 0x897   :  { %2438 = vsyncpa [#allocation7 + $0x1], 1 }

</bundles_post_ra>
